<compile_context>
chip_gen: v6e
topology: v6e:2x2x1
jax: 0.10.0
libtpu: 0.0.40
codegen_flags: <defaults>
</compile_context>

<pallas_src>
import math

import jax
import jax.numpy as jnp
from jax import lax
from jax.experimental import pallas as pl
from jax.experimental.pallas import tpu as pltpu

BN_EPS = 1e-5


def _bn_relu(h, gamma, beta):
    # training-mode BatchNorm1d over the batch axis, then ReLU (all f32)
    mean = jnp.mean(h, axis=0, keepdims=True)
    var = jnp.mean((h - mean) ** 2, axis=0, keepdims=True)  # biased variance
    y = (h - mean) * lax.rsqrt(var + BN_EPS) * gamma + beta
    return jnp.maximum(y, 0.0)


def _make_kernel(batch, seq_len, emb_dim, vocab, tk):
    def kernel(
        seq_ref, emb_ref,
        w_fc_ref, b_fc_ref,
        w_sh_ref, b_sh_ref, g_sh_ref, be_sh_ref,
        w_t1_ref, b_t1_ref, g_t1_ref, be_t1_ref,
        w_t2_ref, b_t2_ref,
        o_ref,
        x_scr, s_acc,
    ):
        k = pl.program_id(0)

        # ---- step 0: init accumulator + fused embedding gather (one-hot matmul)
        @pl.when(k == 0)
        def _():
            s_acc[...] = jnp.zeros_like(s_acc)
            seq = seq_ref[...]                                   # (B, S) int32
            emb = emb_ref[...]                                   # (V, E) f32
            vio = lax.broadcasted_iota(jnp.int32, (batch, vocab), 1)
            for s in range(seq_len):
                sel = seq[:, s:s + 1]                            # (B, 1)
                onehot = jnp.where(vio == sel, 1.0, 0.0).astype(jnp.float32)
                x_s = jnp.dot(onehot, emb, preferred_element_type=jnp.float32)
                x_scr[s] = x_s.astype(x_scr.dtype)               # (B, E) bf16

        # ---- every step: partial fc matmul over this TK-wide tile of fc_out
        # h_tile = x_flat @ w_fc[:, tile]  decomposed over sequence positions.
        h = jnp.zeros((batch, tk), jnp.float32)
        for s in range(seq_len):
            h = h + jnp.dot(
                x_scr[s],
                w_fc_ref[pl.ds(s * emb_dim, emb_dim), :],
                preferred_element_type=jnp.float32,
            )
        h = h + b_fc_ref[...]
        s_acc[...] += jnp.dot(
            h.astype(w_sh_ref.dtype), w_sh_ref[...],
            preferred_element_type=jnp.float32,
        )

        # ---- last step: shared BN/ReLU + task head
        @pl.when(k == pl.num_programs(0) - 1)
        def _():
            s_val = s_acc[...] + b_sh_ref[...]
            s_val = _bn_relu(s_val, g_sh_ref[...], be_sh_ref[...])
            t = jnp.dot(
                s_val.astype(w_t1_ref.dtype), w_t1_ref[...],
                preferred_element_type=jnp.float32,
            ) + b_t1_ref[...]
            t = _bn_relu(t, g_t1_ref[...], be_t1_ref[...])
            o_ref[...] = jnp.dot(
                t, w_t2_ref[...], preferred_element_type=jnp.float32
            ) + b_t2_ref[...]

    return kernel


def multitask_net_fc_forward(input_seq, params, *, tk=1024):
    """Full fused forward (embedding gather + fc extractor + shared + task head)."""
    batch, seq_len = input_seq.shape
    vocab, emb_dim = params["embedding"].shape
    in_flat = seq_len * emb_dim
    fc_out = params["w_fc"].shape[1]
    shared = params["w_sh"].shape[1]
    num_classes = params["w_t2"].shape[1]

    tk = min(tk, fc_out)
    assert fc_out % tk == 0 and tk % 128 == 0, "TK must be a 128-multiple tile of fc_out"

    kernel = _make_kernel(batch, seq_len, emb_dim, vocab, tk)

    args = (
        input_seq.astype(jnp.int32),
        params["embedding"],
        params["w_fc"], params["b_fc"],
        params["w_sh"], params["b_sh"], params["g_sh"], params["be_sh"],
        params["w_t1"], params["b_t1"], params["g_t1"], params["be_t1"],
        params["w_t2"], params["b_t2"],
    )

    def const(a):
        n = a.ndim
        return pl.BlockSpec(a.shape, lambda k, n=n: (0,) * n)

    in_specs = [
        const(args[0]),                                   # input_seq (B, S)
        const(args[1]),                                   # embedding (V, E)
        pl.BlockSpec((in_flat, tk), lambda k: (0, k)),    # w_fc tile
        pl.BlockSpec((1, tk), lambda k: (0, k)),          # b_fc tile
        pl.BlockSpec((tk, shared), lambda k: (k, 0)),     # w_sh tile
        const(args[5]), const(args[6]), const(args[7]),   # b_sh, g_sh, be_sh
        const(args[8]), const(args[9]), const(args[10]), const(args[11]),  # t1 params
        const(args[12]), const(args[13]),                 # w_t2, b_t2
    ]
    out_specs = pl.BlockSpec((batch, num_classes), lambda k: (0, 0))

    return pl.pallas_call(
        kernel,
        grid_spec=pltpu.PrefetchScalarGridSpec(
            num_scalar_prefetch=0,
            grid=(fc_out // tk,),
            in_specs=in_specs,
            out_specs=out_specs,
            scratch_shapes=[
                pltpu.VMEM((seq_len, batch, emb_dim), jnp.bfloat16),  # gathered x
                pltpu.VMEM((batch, shared), jnp.float32),             # s accumulator
            ],
        ),
        out_shape=jax.ShapeDtypeStruct((batch, num_classes), jnp.float32),
        compiler_params=pltpu.CompilerParams(
            dimension_semantics=("arbitrary",),      # reduction axis over fc_out tiles
            vmem_limit_bytes=32 * 1024 * 1024,       # v7x-safe headroom
        ),
    )(*args)


def init_params(key, *, vocab_size, embedding_dim, seq_len, shared_out_size,
                num_classes):
    """Deterministic synthetic parameters matching the PyTorch module's shapes.

    Large weight matrices are stored in bfloat16 (HBM-traffic halved); biases,
    BN affine params, embedding table and the tiny task-head weight stay f32.
    """
    in_flat = seq_len * embedding_dim          # params['in_size'] * params['in_channel']
    fc_out = 4096                              # extractor_out_size for 'fc'

    keys = jax.random.split(key, 12)

    def linear(kw, kb, fan_in, fan_out, w_dtype=jnp.float32):
        bound = 1.0 / math.sqrt(fan_in)        # PyTorch nn.Linear default init range
        w = jax.random.uniform(kw, (fan_in, fan_out), jnp.float32, -bound, bound)
        b = jax.random.uniform(kb, (1, fan_out), jnp.float32, -bound, bound)
        return w.astype(w_dtype), b

    embedding = jax.random.normal(keys[0], (vocab_size, embedding_dim), jnp.float32)
    embedding = embedding.at[0].set(0.0)       # padding_idx=0

    w_fc, b_fc = linear(keys[1], keys[2], in_flat, fc_out, jnp.bfloat16)
    w_sh, b_sh = linear(keys[3], keys[4], fc_out, shared_out_size, jnp.bfloat16)
    w_t1, b_t1 = linear(keys[5], keys[6], shared_out_size, shared_out_size, jnp.bfloat16)
    w_t2, b_t2 = linear(keys[7], keys[8], shared_out_size, num_classes, jnp.float32)

    ones = lambda n: jnp.ones((1, n), jnp.float32)
    zeros = lambda n: jnp.zeros((1, n), jnp.float32)

    return dict(
        embedding=embedding,
        w_fc=w_fc, b_fc=b_fc,
        w_sh=w_sh, b_sh=b_sh, g_sh=ones(shared_out_size), be_sh=zeros(shared_out_size),
        w_t1=w_t1, b_t1=b_t1, g_t1=ones(shared_out_size), be_t1=zeros(shared_out_size),
        w_t2=w_t2, b_t2=b_t2,
    )


# TODO(synk): 'conv' and 'rnn' extractor branches depend on conv_layers /
# ResLayers1d / LSTM_layers / ResLSTM which are not defined in the source
# module; only the 'fc' extractor path is implemented. BN running statistics
# are not updated (forward-only).

if __name__ == "__main__":
    BATCH = 8
    SEQ_LEN = 8
    EMB_DIM = 32           # -> params['in_size'] * params['in_channel'] = 256
    VOCAB = 64
    SHARED_OUT = 128
    NUM_CLASSES = 16       # tasks_size = {"task_a": 16}

    root = jax.random.PRNGKey(0)
    k_params, k_seq = jax.random.split(root)

    params = init_params(
        k_params,
        vocab_size=VOCAB,
        embedding_dim=EMB_DIM,
        seq_len=SEQ_LEN,
        shared_out_size=SHARED_OUT,
        num_classes=NUM_CLASSES,
    )
    input_seq = jax.random.randint(k_seq, (BATCH, SEQ_LEN), 0, VOCAB, dtype=jnp.int32)

    out = multitask_net_fc_forward(input_seq, params)  # forward("task_a", input_seq)
    jax.block_until_ready(out)
    assert out.shape == (BATCH, NUM_CLASSES) and out.dtype == jnp.float32
    assert bool(jnp.all(jnp.isfinite(out)))
    print("KERNEL_OK")
</pallas_src>

<mosaic_0001>
module attributes {stable_mosaic.version = 11 : i64} {
  func.func @kernel(%arg0: i32, %arg1: memref<8x8xi32, #tpu.memory_space<vmem>>, %arg2: memref<64x32xf32, #tpu.memory_space<vmem>>, %arg3: memref<256x1024xbf16, #tpu.memory_space<vmem>>, %arg4: memref<1x1024xf32, #tpu.memory_space<vmem>>, %arg5: memref<1024x128xbf16, #tpu.memory_space<vmem>>, %arg6: memref<1x128xf32, #tpu.memory_space<vmem>>, %arg7: memref<1x128xf32, #tpu.memory_space<vmem>>, %arg8: memref<1x128xf32, #tpu.memory_space<vmem>>, %arg9: memref<128x128xbf16, #tpu.memory_space<vmem>>, %arg10: memref<1x128xf32, #tpu.memory_space<vmem>>, %arg11: memref<1x128xf32, #tpu.memory_space<vmem>>, %arg12: memref<1x128xf32, #tpu.memory_space<vmem>>, %arg13: memref<128x16xf32, #tpu.memory_space<vmem>>, %arg14: memref<1x16xf32, #tpu.memory_space<vmem>>, %arg15: memref<8x16xf32, #tpu.memory_space<vmem>>, %arg16: memref<8x8x32xbf16, #tpu.memory_space<vmem>>, %arg17: memref<8x128xf32, #tpu.memory_space<vmem>>) attributes {dimension_semantics = [#tpu.dimension_semantics<arbitrary>], iteration_bounds = array<i64: 4>, scalar_prefetch = 0 : i64, scratch_operands = 2 : i64, tpu.core_type = #tpu.core_type<tc>, window_params = [{pipeline_mode = #tpu.pipeline_mode<synchronous>, transform_indices = @transform_0, window_bounds = array<i64: 8, 8>}, {pipeline_mode = #tpu.pipeline_mode<synchronous>, transform_indices = @transform_1, window_bounds = array<i64: 64, 32>}, {transform_indices = @transform_2, window_bounds = array<i64: 256, 1024>}, {transform_indices = @transform_3, window_bounds = array<i64: 1, 1024>}, {transform_indices = @transform_4, window_bounds = array<i64: 1024, 128>}, {pipeline_mode = #tpu.pipeline_mode<synchronous>, transform_indices = @transform_5, window_bounds = array<i64: 1, 128>}, {pipeline_mode = #tpu.pipeline_mode<synchronous>, transform_indices = @transform_6, window_bounds = array<i64: 1, 128>}, {pipeline_mode = #tpu.pipeline_mode<synchronous>, transform_indices = @transform_7, window_bounds = array<i64: 1, 128>}, {pipeline_mode = #tpu.pipeline_mode<synchronous>, transform_indices = @transform_8, window_bounds = array<i64: 128, 128>}, {pipeline_mode = #tpu.pipeline_mode<synchronous>, transform_indices = @transform_9, window_bounds = array<i64: 1, 128>}, {pipeline_mode = #tpu.pipeline_mode<synchronous>, transform_indices = @transform_10, window_bounds = array<i64: 1, 128>}, {pipeline_mode = #tpu.pipeline_mode<synchronous>, transform_indices = @transform_11, window_bounds = array<i64: 1, 128>}, {pipeline_mode = #tpu.pipeline_mode<synchronous>, transform_indices = @transform_12, window_bounds = array<i64: 128, 16>}, {pipeline_mode = #tpu.pipeline_mode<synchronous>, transform_indices = @transform_13, window_bounds = array<i64: 1, 16>}, {pipeline_mode = #tpu.pipeline_mode<synchronous>, transform_indices = @transform_14, window_bounds = array<i64: 8, 16>}]} {
    %c0_i32 = arith.constant 0 : i32
    %0 = arith.cmpi eq, %arg0, %c0_i32 : i32
    %1 = arith.extui %0 : i1 to i32
    %c0_i32_0 = arith.constant 0 : i32
    %2 = arith.cmpi ne, %1, %c0_i32_0 : i32
    scf.if %2 {
      %cst_44 = arith.constant 0.000000e+00 : f32
      %56 = vector.broadcast %cst_44 : f32 to vector<8x128xf32>
      %c0_45 = arith.constant 0 : index
      %c0_46 = arith.constant 0 : index
      %57 = vector.load %arg17[%c0_45, %c0_46] : memref<8x128xf32, #tpu.memory_space<vmem>>, vector<8x128xf32>
      tpu.vector_store %arg17[%c0_45, %c0_46], %56 {strides = array<i32>} : memref<8x128xf32, #tpu.memory_space<vmem>>, vector<8x128xf32>,
      %c0_47 = arith.constant 0 : index
      %c0_48 = arith.constant 0 : index
      %58 = vector.load %arg1[%c0_47, %c0_48] : memref<8x8xi32, #tpu.memory_space<vmem>>, vector<8x8xi32>
      %c0_49 = arith.constant 0 : index
      %c0_50 = arith.constant 0 : index
      %59 = vector.load %arg2[%c0_49, %c0_50] : memref<64x32xf32, #tpu.memory_space<vmem>>, vector<64x32xf32>
      %60 = tpu.iota {dimensions = array<i32: 1>} : vector<8x64xi32>
      %61 = vector.extract_strided_slice %58 {offsets = [0, 0], sizes = [8, 1], strides = [1, 1]} : vector<8x8xi32> to vector<8x1xi32>
      %62 = vector.broadcast %61 : vector<8x1xi32> to vector<8x64xi32>
      %63 = arith.cmpi eq, %60, %62 : vector<8x64xi32>
      %cst_51 = arith.constant 1.000000e+00 : f32
      %cst_52 = arith.constant 0.000000e+00 : f32
      %64 = vector.broadcast %cst_51 : f32 to vector<8x64xf32>
      %65 = vector.broadcast %cst_52 : f32 to vector<8x64xf32>
      %66 = arith.select %63, %64, %65 : vector<8x64xi1>, vector<8x64xf32>
      %cst_53 = arith.constant dense<0.000000e+00> : vector<8x32xf32>
      %67 = tpu.matmul %66, %59, %cst_53 {dimension_numbers = #tpu.dot_dimension_numbers<[1], [0], [0], [1], [0, 0, 1, 1], [], []>} : vector<8x64xf32>, vector<64x32xf32>, vector<8x32xf32> -> vector<8x32xf32>
      %68 = arith.truncf %67 : vector<8x32xf32> to vector<8x32xbf16>
      %c0_54 = arith.constant 0 : index
      %c0_55 = arith.constant 0 : index
      %c0_56 = arith.constant 0 : index
      %69 = vector.load %arg16[%c0_54, %c0_55, %c0_56] : memref<8x8x32xbf16, #tpu.memory_space<vmem>>, vector<1x8x32xbf16>
      %70 = vector.shape_cast %69 : vector<1x8x32xbf16> to vector<8x32xbf16>
      %71 = vector.shape_cast %68 : vector<8x32xbf16> to vector<1x8x32xbf16>
      tpu.vector_store %arg16[%c0_54, %c0_55, %c0_56], %71 {strides = array<i32>} : memref<8x8x32xbf16, #tpu.memory_space<vmem>>, vector<1x8x32xbf16>,
      %72 = vector.extract_strided_slice %58 {offsets = [0, 1], sizes = [8, 1], strides = [1, 1]} : vector<8x8xi32> to vector<8x1xi32>
      %73 = vector.broadcast %72 : vector<8x1xi32> to vector<8x64xi32>
      %74 = arith.cmpi eq, %60, %73 : vector<8x64xi32>
      %cst_57 = arith.constant 1.000000e+00 : f32
      %cst_58 = arith.constant 0.000000e+00 : f32
      %75 = vector.broadcast %cst_57 : f32 to vector<8x64xf32>
      %76 = vector.broadcast %cst_58 : f32 to vector<8x64xf32>
      %77 = arith.select %74, %75, %76 : vector<8x64xi1>, vector<8x64xf32>
      %cst_59 = arith.constant dense<0.000000e+00> : vector<8x32xf32>
      %78 = tpu.matmul %77, %59, %cst_59 {dimension_numbers = #tpu.dot_dimension_numbers<[1], [0], [0], [1], [0, 0, 1, 1], [], []>} : vector<8x64xf32>, vector<64x32xf32>, vector<8x32xf32> -> vector<8x32xf32>
      %79 = arith.truncf %78 : vector<8x32xf32> to vector<8x32xbf16>
      %c1_60 = arith.constant 1 : index
      %c0_61 = arith.constant 0 : index
      %c0_62 = arith.constant 0 : index
      %80 = vector.load %arg16[%c1_60, %c0_61, %c0_62] : memref<8x8x32xbf16, #tpu.memory_space<vmem>>, vector<1x8x32xbf16>
      %81 = vector.shape_cast %80 : vector<1x8x32xbf16> to vector<8x32xbf16>
      %82 = vector.shape_cast %79 : vector<8x32xbf16> to vector<1x8x32xbf16>
      tpu.vector_store %arg16[%c1_60, %c0_61, %c0_62], %82 {strides = array<i32>} : memref<8x8x32xbf16, #tpu.memory_space<vmem>>, vector<1x8x32xbf16>,
      %83 = vector.extract_strided_slice %58 {offsets = [0, 2], sizes = [8, 1], strides = [1, 1]} : vector<8x8xi32> to vector<8x1xi32>
      %84 = vector.broadcast %83 : vector<8x1xi32> to vector<8x64xi32>
      %85 = arith.cmpi eq, %60, %84 : vector<8x64xi32>
      %cst_63 = arith.constant 1.000000e+00 : f32
      %cst_64 = arith.constant 0.000000e+00 : f32
      %86 = vector.broadcast %cst_63 : f32 to vector<8x64xf32>
      %87 = vector.broadcast %cst_64 : f32 to vector<8x64xf32>
      %88 = arith.select %85, %86, %87 : vector<8x64xi1>, vector<8x64xf32>
      %cst_65 = arith.constant dense<0.000000e+00> : vector<8x32xf32>
      %89 = tpu.matmul %88, %59, %cst_65 {dimension_numbers = #tpu.dot_dimension_numbers<[1], [0], [0], [1], [0, 0, 1, 1], [], []>} : vector<8x64xf32>, vector<64x32xf32>, vector<8x32xf32> -> vector<8x32xf32>
      %90 = arith.truncf %89 : vector<8x32xf32> to vector<8x32xbf16>
      %c2_66 = arith.constant 2 : index
      %c0_67 = arith.constant 0 : index
      %c0_68 = arith.constant 0 : index
      %91 = vector.load %arg16[%c2_66, %c0_67, %c0_68] : memref<8x8x32xbf16, #tpu.memory_space<vmem>>, vector<1x8x32xbf16>
      %92 = vector.shape_cast %91 : vector<1x8x32xbf16> to vector<8x32xbf16>
      %93 = vector.shape_cast %90 : vector<8x32xbf16> to vector<1x8x32xbf16>
      tpu.vector_store %arg16[%c2_66, %c0_67, %c0_68], %93 {strides = array<i32>} : memref<8x8x32xbf16, #tpu.memory_space<vmem>>, vector<1x8x32xbf16>,
      %94 = vector.extract_strided_slice %58 {offsets = [0, 3], sizes = [8, 1], strides = [1, 1]} : vector<8x8xi32> to vector<8x1xi32>
      %95 = vector.broadcast %94 : vector<8x1xi32> to vector<8x64xi32>
      %96 = arith.cmpi eq, %60, %95 : vector<8x64xi32>
      %cst_69 = arith.constant 1.000000e+00 : f32
      %cst_70 = arith.constant 0.000000e+00 : f32
      %97 = vector.broadcast %cst_69 : f32 to vector<8x64xf32>
      %98 = vector.broadcast %cst_70 : f32 to vector<8x64xf32>
      %99 = arith.select %96, %97, %98 : vector<8x64xi1>, vector<8x64xf32>
      %cst_71 = arith.constant dense<0.000000e+00> : vector<8x32xf32>
      %100 = tpu.matmul %99, %59, %cst_71 {dimension_numbers = #tpu.dot_dimension_numbers<[1], [0], [0], [1], [0, 0, 1, 1], [], []>} : vector<8x64xf32>, vector<64x32xf32>, vector<8x32xf32> -> vector<8x32xf32>
      %101 = arith.truncf %100 : vector<8x32xf32> to vector<8x32xbf16>
      %c3_72 = arith.constant 3 : index
      %c0_73 = arith.constant 0 : index
      %c0_74 = arith.constant 0 : index
      %102 = vector.load %arg16[%c3_72, %c0_73, %c0_74] : memref<8x8x32xbf16, #tpu.memory_space<vmem>>, vector<1x8x32xbf16>
      %103 = vector.shape_cast %102 : vector<1x8x32xbf16> to vector<8x32xbf16>
      %104 = vector.shape_cast %101 : vector<8x32xbf16> to vector<1x8x32xbf16>
      tpu.vector_store %arg16[%c3_72, %c0_73, %c0_74], %104 {strides = array<i32>} : memref<8x8x32xbf16, #tpu.memory_space<vmem>>, vector<1x8x32xbf16>,
      %105 = vector.extract_strided_slice %58 {offsets = [0, 4], sizes = [8, 1], strides = [1, 1]} : vector<8x8xi32> to vector<8x1xi32>
      %106 = vector.broadcast %105 : vector<8x1xi32> to vector<8x64xi32>
      %107 = arith.cmpi eq, %60, %106 : vector<8x64xi32>
      %cst_75 = arith.constant 1.000000e+00 : f32
      %cst_76 = arith.constant 0.000000e+00 : f32
      %108 = vector.broadcast %cst_75 : f32 to vector<8x64xf32>
      %109 = vector.broadcast %cst_76 : f32 to vector<8x64xf32>
      %110 = arith.select %107, %108, %109 : vector<8x64xi1>, vector<8x64xf32>
      %cst_77 = arith.constant dense<0.000000e+00> : vector<8x32xf32>
      %111 = tpu.matmul %110, %59, %cst_77 {dimension_numbers = #tpu.dot_dimension_numbers<[1], [0], [0], [1], [0, 0, 1, 1], [], []>} : vector<8x64xf32>, vector<64x32xf32>, vector<8x32xf32> -> vector<8x32xf32>
      %112 = arith.truncf %111 : vector<8x32xf32> to vector<8x32xbf16>
      %c4_78 = arith.constant 4 : index
      %c0_79 = arith.constant 0 : index
      %c0_80 = arith.constant 0 : index
      %113 = vector.load %arg16[%c4_78, %c0_79, %c0_80] : memref<8x8x32xbf16, #tpu.memory_space<vmem>>, vector<1x8x32xbf16>
      %114 = vector.shape_cast %113 : vector<1x8x32xbf16> to vector<8x32xbf16>
      %115 = vector.shape_cast %112 : vector<8x32xbf16> to vector<1x8x32xbf16>
      tpu.vector_store %arg16[%c4_78, %c0_79, %c0_80], %115 {strides = array<i32>} : memref<8x8x32xbf16, #tpu.memory_space<vmem>>, vector<1x8x32xbf16>,
      %116 = vector.extract_strided_slice %58 {offsets = [0, 5], sizes = [8, 1], strides = [1, 1]} : vector<8x8xi32> to vector<8x1xi32>
      %117 = vector.broadcast %116 : vector<8x1xi32> to vector<8x64xi32>
      %118 = arith.cmpi eq, %60, %117 : vector<8x64xi32>
      %cst_81 = arith.constant 1.000000e+00 : f32
      %cst_82 = arith.constant 0.000000e+00 : f32
      %119 = vector.broadcast %cst_81 : f32 to vector<8x64xf32>
      %120 = vector.broadcast %cst_82 : f32 to vector<8x64xf32>
      %121 = arith.select %118, %119, %120 : vector<8x64xi1>, vector<8x64xf32>
      %cst_83 = arith.constant dense<0.000000e+00> : vector<8x32xf32>
      %122 = tpu.matmul %121, %59, %cst_83 {dimension_numbers = #tpu.dot_dimension_numbers<[1], [0], [0], [1], [0, 0, 1, 1], [], []>} : vector<8x64xf32>, vector<64x32xf32>, vector<8x32xf32> -> vector<8x32xf32>
      %123 = arith.truncf %122 : vector<8x32xf32> to vector<8x32xbf16>
      %c5_84 = arith.constant 5 : index
      %c0_85 = arith.constant 0 : index
      %c0_86 = arith.constant 0 : index
      %124 = vector.load %arg16[%c5_84, %c0_85, %c0_86] : memref<8x8x32xbf16, #tpu.memory_space<vmem>>, vector<1x8x32xbf16>
      %125 = vector.shape_cast %124 : vector<1x8x32xbf16> to vector<8x32xbf16>
      %126 = vector.shape_cast %123 : vector<8x32xbf16> to vector<1x8x32xbf16>
      tpu.vector_store %arg16[%c5_84, %c0_85, %c0_86], %126 {strides = array<i32>} : memref<8x8x32xbf16, #tpu.memory_space<vmem>>, vector<1x8x32xbf16>,
      %127 = vector.extract_strided_slice %58 {offsets = [0, 6], sizes = [8, 1], strides = [1, 1]} : vector<8x8xi32> to vector<8x1xi32>
      %128 = vector.broadcast %127 : vector<8x1xi32> to vector<8x64xi32>
      %129 = arith.cmpi eq, %60, %128 : vector<8x64xi32>
      %cst_87 = arith.constant 1.000000e+00 : f32
      %cst_88 = arith.constant 0.000000e+00 : f32
      %130 = vector.broadcast %cst_87 : f32 to vector<8x64xf32>
      %131 = vector.broadcast %cst_88 : f32 to vector<8x64xf32>
      %132 = arith.select %129, %130, %131 : vector<8x64xi1>, vector<8x64xf32>
      %cst_89 = arith.constant dense<0.000000e+00> : vector<8x32xf32>
      %133 = tpu.matmul %132, %59, %cst_89 {dimension_numbers = #tpu.dot_dimension_numbers<[1], [0], [0], [1], [0, 0, 1, 1], [], []>} : vector<8x64xf32>, vector<64x32xf32>, vector<8x32xf32> -> vector<8x32xf32>
      %134 = arith.truncf %133 : vector<8x32xf32> to vector<8x32xbf16>
      %c6_90 = arith.constant 6 : index
      %c0_91 = arith.constant 0 : index
      %c0_92 = arith.constant 0 : index
      %135 = vector.load %arg16[%c6_90, %c0_91, %c0_92] : memref<8x8x32xbf16, #tpu.memory_space<vmem>>, vector<1x8x32xbf16>
      %136 = vector.shape_cast %135 : vector<1x8x32xbf16> to vector<8x32xbf16>
      %137 = vector.shape_cast %134 : vector<8x32xbf16> to vector<1x8x32xbf16>
      tpu.vector_store %arg16[%c6_90, %c0_91, %c0_92], %137 {strides = array<i32>} : memref<8x8x32xbf16, #tpu.memory_space<vmem>>, vector<1x8x32xbf16>,
      %138 = vector.extract_strided_slice %58 {offsets = [0, 7], sizes = [8, 1], strides = [1, 1]} : vector<8x8xi32> to vector<8x1xi32>
      %139 = vector.broadcast %138 : vector<8x1xi32> to vector<8x64xi32>
      %140 = arith.cmpi eq, %60, %139 : vector<8x64xi32>
      %cst_93 = arith.constant 1.000000e+00 : f32
      %cst_94 = arith.constant 0.000000e+00 : f32
      %141 = vector.broadcast %cst_93 : f32 to vector<8x64xf32>
      %142 = vector.broadcast %cst_94 : f32 to vector<8x64xf32>
      %143 = arith.select %140, %141, %142 : vector<8x64xi1>, vector<8x64xf32>
      %cst_95 = arith.constant dense<0.000000e+00> : vector<8x32xf32>
      %144 = tpu.matmul %143, %59, %cst_95 {dimension_numbers = #tpu.dot_dimension_numbers<[1], [0], [0], [1], [0, 0, 1, 1], [], []>} : vector<8x64xf32>, vector<64x32xf32>, vector<8x32xf32> -> vector<8x32xf32>
      %145 = arith.truncf %144 : vector<8x32xf32> to vector<8x32xbf16>
      %c7_96 = arith.constant 7 : index
      %c0_97 = arith.constant 0 : index
      %c0_98 = arith.constant 0 : index
      %146 = vector.load %arg16[%c7_96, %c0_97, %c0_98] : memref<8x8x32xbf16, #tpu.memory_space<vmem>>, vector<1x8x32xbf16>
      %147 = vector.shape_cast %146 : vector<1x8x32xbf16> to vector<8x32xbf16>
      %148 = vector.shape_cast %145 : vector<8x32xbf16> to vector<1x8x32xbf16>
      tpu.vector_store %arg16[%c7_96, %c0_97, %c0_98], %148 {strides = array<i32>} : memref<8x8x32xbf16, #tpu.memory_space<vmem>>, vector<1x8x32xbf16>,
    } else {
    }
    %cst = arith.constant 0.000000e+00 : f32
    %3 = vector.broadcast %cst : f32 to vector<8x1024xf32>
    %c0 = arith.constant 0 : index
    %c0_1 = arith.constant 0 : index
    %c0_2 = arith.constant 0 : index
    %4 = vector.load %arg16[%c0, %c0_1, %c0_2] : memref<8x8x32xbf16, #tpu.memory_space<vmem>>, vector<1x8x32xbf16>
    %5 = vector.shape_cast %4 : vector<1x8x32xbf16> to vector<8x32xbf16>
    %c0_3 = arith.constant 0 : index
    %c0_4 = arith.constant 0 : index
    %6 = vector.load %arg3[%c0_3, %c0_4] : memref<256x1024xbf16, #tpu.memory_space<vmem>>, vector<32x1024xbf16>
    %cst_5 = arith.constant dense<0.000000e+00> : vector<8x1024xf32>
    %7 = tpu.matmul %5, %6, %cst_5 {dimension_numbers = #tpu.dot_dimension_numbers<[1], [0], [0], [1], [0, 0, 1, 1], [], []>} : vector<8x32xbf16>, vector<32x1024xbf16>, vector<8x1024xf32> -> vector<8x1024xf32>
    %8 = arith.addf %3, %7 : vector<8x1024xf32>
    %c1 = arith.constant 1 : index
    %c0_6 = arith.constant 0 : index
    %c0_7 = arith.constant 0 : index
    %9 = vector.load %arg16[%c1, %c0_6, %c0_7] : memref<8x8x32xbf16, #tpu.memory_space<vmem>>, vector<1x8x32xbf16>
    %10 = vector.shape_cast %9 : vector<1x8x32xbf16> to vector<8x32xbf16>
    %c32 = arith.constant 32 : index
    %c0_8 = arith.constant 0 : index
    %11 = vector.load %arg3[%c32, %c0_8] : memref<256x1024xbf16, #tpu.memory_space<vmem>>, vector<32x1024xbf16>
    %cst_9 = arith.constant dense<0.000000e+00> : vector<8x1024xf32>
    %12 = tpu.matmul %10, %11, %cst_9 {dimension_numbers = #tpu.dot_dimension_numbers<[1], [0], [0], [1], [0, 0, 1, 1], [], []>} : vector<8x32xbf16>, vector<32x1024xbf16>, vector<8x1024xf32> -> vector<8x1024xf32>
    %13 = arith.addf %8, %12 : vector<8x1024xf32>
    %c2 = arith.constant 2 : index
    %c0_10 = arith.constant 0 : index
    %c0_11 = arith.constant 0 : index
    %14 = vector.load %arg16[%c2, %c0_10, %c0_11] : memref<8x8x32xbf16, #tpu.memory_space<vmem>>, vector<1x8x32xbf16>
    %15 = vector.shape_cast %14 : vector<1x8x32xbf16> to vector<8x32xbf16>
    %c64 = arith.constant 64 : index
    %c0_12 = arith.constant 0 : index
    %16 = vector.load %arg3[%c64, %c0_12] : memref<256x1024xbf16, #tpu.memory_space<vmem>>, vector<32x1024xbf16>
    %cst_13 = arith.constant dense<0.000000e+00> : vector<8x1024xf32>
    %17 = tpu.matmul %15, %16, %cst_13 {dimension_numbers = #tpu.dot_dimension_numbers<[1], [0], [0], [1], [0, 0, 1, 1], [], []>} : vector<8x32xbf16>, vector<32x1024xbf16>, vector<8x1024xf32> -> vector<8x1024xf32>
    %18 = arith.addf %13, %17 : vector<8x1024xf32>
    %c3 = arith.constant 3 : index
    %c0_14 = arith.constant 0 : index
    %c0_15 = arith.constant 0 : index
    %19 = vector.load %arg16[%c3, %c0_14, %c0_15] : memref<8x8x32xbf16, #tpu.memory_space<vmem>>, vector<1x8x32xbf16>
    %20 = vector.shape_cast %19 : vector<1x8x32xbf16> to vector<8x32xbf16>
    %c96 = arith.constant 96 : index
    %c0_16 = arith.constant 0 : index
    %21 = vector.load %arg3[%c96, %c0_16] : memref<256x1024xbf16, #tpu.memory_space<vmem>>, vector<32x1024xbf16>
    %cst_17 = arith.constant dense<0.000000e+00> : vector<8x1024xf32>
    %22 = tpu.matmul %20, %21, %cst_17 {dimension_numbers = #tpu.dot_dimension_numbers<[1], [0], [0], [1], [0, 0, 1, 1], [], []>} : vector<8x32xbf16>, vector<32x1024xbf16>, vector<8x1024xf32> -> vector<8x1024xf32>
    %23 = arith.addf %18, %22 : vector<8x1024xf32>
    %c4 = arith.constant 4 : index
    %c0_18 = arith.constant 0 : index
    %c0_19 = arith.constant 0 : index
    %24 = vector.load %arg16[%c4, %c0_18, %c0_19] : memref<8x8x32xbf16, #tpu.memory_space<vmem>>, vector<1x8x32xbf16>
    %25 = vector.shape_cast %24 : vector<1x8x32xbf16> to vector<8x32xbf16>
    %c128 = arith.constant 128 : index
    %c0_20 = arith.constant 0 : index
    %26 = vector.load %arg3[%c128, %c0_20] : memref<256x1024xbf16, #tpu.memory_space<vmem>>, vector<32x1024xbf16>
    %cst_21 = arith.constant dense<0.000000e+00> : vector<8x1024xf32>
    %27 = tpu.matmul %25, %26, %cst_21 {dimension_numbers = #tpu.dot_dimension_numbers<[1], [0], [0], [1], [0, 0, 1, 1], [], []>} : vector<8x32xbf16>, vector<32x1024xbf16>, vector<8x1024xf32> -> vector<8x1024xf32>
    %28 = arith.addf %23, %27 : vector<8x1024xf32>
    %c5 = arith.constant 5 : index
    %c0_22 = arith.constant 0 : index
    %c0_23 = arith.constant 0 : index
    %29 = vector.load %arg16[%c5, %c0_22, %c0_23] : memref<8x8x32xbf16, #tpu.memory_space<vmem>>, vector<1x8x32xbf16>
    %30 = vector.shape_cast %29 : vector<1x8x32xbf16> to vector<8x32xbf16>
    %c160 = arith.constant 160 : index
    %c0_24 = arith.constant 0 : index
    %31 = vector.load %arg3[%c160, %c0_24] : memref<256x1024xbf16, #tpu.memory_space<vmem>>, vector<32x1024xbf16>
    %cst_25 = arith.constant dense<0.000000e+00> : vector<8x1024xf32>
    %32 = tpu.matmul %30, %31, %cst_25 {dimension_numbers = #tpu.dot_dimension_numbers<[1], [0], [0], [1], [0, 0, 1, 1], [], []>} : vector<8x32xbf16>, vector<32x1024xbf16>, vector<8x1024xf32> -> vector<8x1024xf32>
    %33 = arith.addf %28, %32 : vector<8x1024xf32>
    %c6 = arith.constant 6 : index
    %c0_26 = arith.constant 0 : index
    %c0_27 = arith.constant 0 : index
    %34 = vector.load %arg16[%c6, %c0_26, %c0_27] : memref<8x8x32xbf16, #tpu.memory_space<vmem>>, vector<1x8x32xbf16>
    %35 = vector.shape_cast %34 : vector<1x8x32xbf16> to vector<8x32xbf16>
    %c192 = arith.constant 192 : index
    %c0_28 = arith.constant 0 : index
    %36 = vector.load %arg3[%c192, %c0_28] : memref<256x1024xbf16, #tpu.memory_space<vmem>>, vector<32x1024xbf16>
    %cst_29 = arith.constant dense<0.000000e+00> : vector<8x1024xf32>
    %37 = tpu.matmul %35, %36, %cst_29 {dimension_numbers = #tpu.dot_dimension_numbers<[1], [0], [0], [1], [0, 0, 1, 1], [], []>} : vector<8x32xbf16>, vector<32x1024xbf16>, vector<8x1024xf32> -> vector<8x1024xf32>
    %38 = arith.addf %33, %37 : vector<8x1024xf32>
    %c7 = arith.constant 7 : index
    %c0_30 = arith.constant 0 : index
    %c0_31 = arith.constant 0 : index
    %39 = vector.load %arg16[%c7, %c0_30, %c0_31] : memref<8x8x32xbf16, #tpu.memory_space<vmem>>, vector<1x8x32xbf16>
    %40 = vector.shape_cast %39 : vector<1x8x32xbf16> to vector<8x32xbf16>
    %c224 = arith.constant 224 : index
    %c0_32 = arith.constant 0 : index
    %41 = vector.load %arg3[%c224, %c0_32] : memref<256x1024xbf16, #tpu.memory_space<vmem>>, vector<32x1024xbf16>
    %cst_33 = arith.constant dense<0.000000e+00> : vector<8x1024xf32>
    %42 = tpu.matmul %40, %41, %cst_33 {dimension_numbers = #tpu.dot_dimension_numbers<[1], [0], [0], [1], [0, 0, 1, 1], [], []>} : vector<8x32xbf16>, vector<32x1024xbf16>, vector<8x1024xf32> -> vector<8x1024xf32>
    %43 = arith.addf %38, %42 : vector<8x1024xf32>
    %c0_34 = arith.constant 0 : index
    %c0_35 = arith.constant 0 : index
    %44 = vector.load %arg4[%c0_34, %c0_35] : memref<1x1024xf32, #tpu.memory_space<vmem>>, vector<1x1024xf32>
    %45 = vector.broadcast %44 : vector<1x1024xf32> to vector<8x1024xf32>
    %46 = arith.addf %43, %45 : vector<8x1024xf32>
    %c0_36 = arith.constant 0 : index
    %c0_37 = arith.constant 0 : index
    %47 = vector.load %arg17[%c0_36, %c0_37] : memref<8x128xf32, #tpu.memory_space<vmem>>, vector<8x128xf32>
    %48 = arith.truncf %46 : vector<8x1024xf32> to vector<8x1024xbf16>
    %c0_38 = arith.constant 0 : index
    %c0_39 = arith.constant 0 : index
    %49 = vector.load %arg5[%c0_38, %c0_39] : memref<1024x128xbf16, #tpu.memory_space<vmem>>, vector<1024x128xbf16>
    %cst_40 = arith.constant dense<0.000000e+00> : vector<8x128xf32>
    %50 = tpu.matmul %48, %49, %cst_40 {dimension_numbers = #tpu.dot_dimension_numbers<[1], [0], [0], [1], [0, 0, 1, 1], [], []>} : vector<8x1024xbf16>, vector<1024x128xbf16>, vector<8x128xf32> -> vector<8x128xf32>
    %51 = arith.addf %47, %50 : vector<8x128xf32>
    %c0_41 = arith.constant 0 : index
    %c0_42 = arith.constant 0 : index
    %52 = vector.load %arg17[%c0_41, %c0_42] : memref<8x128xf32, #tpu.memory_space<vmem>>, vector<8x128xf32>
    tpu.vector_store %arg17[%c0_41, %c0_42], %51 {strides = array<i32>} : memref<8x128xf32, #tpu.memory_space<vmem>>, vector<8x128xf32>,
    %c3_i32 = arith.constant 3 : i32
    %53 = arith.cmpi eq, %arg0, %c3_i32 : i32
    %54 = arith.extui %53 : i1 to i32
    %c0_i32_43 = arith.constant 0 : i32
    %55 = arith.cmpi ne, %54, %c0_i32_43 : i32
    scf.if %55 {
      %c0_44 = arith.constant 0 : index
      %c0_45 = arith.constant 0 : index
      %56 = vector.load %arg17[%c0_44, %c0_45] : memref<8x128xf32, #tpu.memory_space<vmem>>, vector<8x128xf32>
      %c0_46 = arith.constant 0 : index
      %c0_47 = arith.constant 0 : index
      %57 = vector.load %arg6[%c0_46, %c0_47] : memref<1x128xf32, #tpu.memory_space<vmem>>, vector<1x128xf32>
      %58 = vector.broadcast %57 : vector<1x128xf32> to vector<8x128xf32>
      %59 = arith.addf %56, %58 : vector<8x128xf32>
      %c0_48 = arith.constant 0 : index
      %c0_49 = arith.constant 0 : index
      %60 = vector.load %arg7[%c0_48, %c0_49] : memref<1x128xf32, #tpu.memory_space<vmem>>, vector<1x128xf32>
      %c0_50 = arith.constant 0 : index
      %c0_51 = arith.constant 0 : index
      %61 = vector.load %arg8[%c0_50, %c0_51] : memref<1x128xf32, #tpu.memory_space<vmem>>, vector<1x128xf32>
      %cst_52 = arith.constant dense<0.000000e+00> : vector<128xf32>
      %62 = vector.multi_reduction <add>, %59, %cst_52 [0] : vector<8x128xf32> to vector<128xf32>
      %63 = vector.shape_cast %62 : vector<128xf32> to vector<1x128xf32>
      %cst_53 = arith.constant 8.000000e+00 : f32
      %64 = vector.broadcast %cst_53 : f32 to vector<1x128xf32>
      %65 = arith.divf %63, %64 : vector<1x128xf32>
      %66 = vector.broadcast %65 : vector<1x128xf32> to vector<8x128xf32>
      %67 = arith.subf %59, %66 : vector<8x128xf32>
      %68 = arith.mulf %67, %67 : vector<8x128xf32>
      %cst_54 = arith.constant dense<0.000000e+00> : vector<128xf32>
      %69 = vector.multi_reduction <add>, %68, %cst_54 [0] : vector<8x128xf32> to vector<128xf32>
      %70 = vector.shape_cast %69 : vector<128xf32> to vector<1x128xf32>
      %cst_55 = arith.constant 8.000000e+00 : f32
      %71 = vector.broadcast %cst_55 : f32 to vector<1x128xf32>
      %72 = arith.divf %70, %71 : vector<1x128xf32>
      %73 = vector.broadcast %65 : vector<1x128xf32> to vector<8x128xf32>
      %74 = arith.subf %59, %73 : vector<8x128xf32>
      %cst_56 = arith.constant 9.99999974E-6 : f32
      %75 = vector.broadcast %cst_56 : f32 to vector<1x128xf32>
      %76 = arith.addf %72, %75 : vector<1x128xf32>
      %77 = math.rsqrt %76 : vector<1x128xf32>
      %78 = vector.broadcast %77 : vector<1x128xf32> to vector<8x128xf32>
      %79 = arith.mulf %74, %78 : vector<8x128xf32>
      %80 = vector.broadcast %60 : vector<1x128xf32> to vector<8x128xf32>
      %81 = arith.mulf %79, %80 : vector<8x128xf32>
      %82 = vector.broadcast %61 : vector<1x128xf32> to vector<8x128xf32>
      %83 = arith.addf %81, %82 : vector<8x128xf32>
      %cst_57 = arith.constant 0.000000e+00 : f32
      %84 = vector.broadcast %cst_57 : f32 to vector<8x128xf32>
      %85 = arith.maximumf %83, %84 : vector<8x128xf32>
      %86 = arith.truncf %85 : vector<8x128xf32> to vector<8x128xbf16>
      %c0_58 = arith.constant 0 : index
      %c0_59 = arith.constant 0 : index
      %87 = vector.load %arg9[%c0_58, %c0_59] : memref<128x128xbf16, #tpu.memory_space<vmem>>, vector<128x128xbf16>
      %cst_60 = arith.constant dense<0.000000e+00> : vector<8x128xf32>
      %88 = tpu.matmul %86, %87, %cst_60 {dimension_numbers = #tpu.dot_dimension_numbers<[1], [0], [0], [1], [0, 0, 1, 1], [], []>} : vector<8x128xbf16>, vector<128x128xbf16>, vector<8x128xf32> -> vector<8x128xf32>
      %c0_61 = arith.constant 0 : index
      %c0_62 = arith.constant 0 : index
      %89 = vector.load %arg10[%c0_61, %c0_62] : memref<1x128xf32, #tpu.memory_space<vmem>>, vector<1x128xf32>
      %90 = vector.broadcast %89 : vector<1x128xf32> to vector<8x128xf32>
      %91 = arith.addf %88, %90 : vector<8x128xf32>
      %c0_63 = arith.constant 0 : index
      %c0_64 = arith.constant 0 : index
      %92 = vector.load %arg11[%c0_63, %c0_64] : memref<1x128xf32, #tpu.memory_space<vmem>>, vector<1x128xf32>
      %c0_65 = arith.constant 0 : index
      %c0_66 = arith.constant 0 : index
      %93 = vector.load %arg12[%c0_65, %c0_66] : memref<1x128xf32, #tpu.memory_space<vmem>>, vector<1x128xf32>
      %cst_67 = arith.constant dense<0.000000e+00> : vector<128xf32>
      %94 = vector.multi_reduction <add>, %91, %cst_67 [0] : vector<8x128xf32> to vector<128xf32>
      %95 = vector.shape_cast %94 : vector<128xf32> to vector<1x128xf32>
      %cst_68 = arith.constant 8.000000e+00 : f32
      %96 = vector.broadcast %cst_68 : f32 to vector<1x128xf32>
      %97 = arith.divf %95, %96 : vector<1x128xf32>
      %98 = vector.broadcast %97 : vector<1x128xf32> to vector<8x128xf32>
      %99 = arith.subf %91, %98 : vector<8x128xf32>
      %100 = arith.mulf %99, %99 : vector<8x128xf32>
      %cst_69 = arith.constant dense<0.000000e+00> : vector<128xf32>
      %101 = vector.multi_reduction <add>, %100, %cst_69 [0] : vector<8x128xf32> to vector<128xf32>
      %102 = vector.shape_cast %101 : vector<128xf32> to vector<1x128xf32>
      %cst_70 = arith.constant 8.000000e+00 : f32
      %103 = vector.broadcast %cst_70 : f32 to vector<1x128xf32>
      %104 = arith.divf %102, %103 : vector<1x128xf32>
      %105 = vector.broadcast %97 : vector<1x128xf32> to vector<8x128xf32>
      %106 = arith.subf %91, %105 : vector<8x128xf32>
      %cst_71 = arith.constant 9.99999974E-6 : f32
      %107 = vector.broadcast %cst_71 : f32 to vector<1x128xf32>
      %108 = arith.addf %104, %107 : vector<1x128xf32>
      %109 = math.rsqrt %108 : vector<1x128xf32>
      %110 = vector.broadcast %109 : vector<1x128xf32> to vector<8x128xf32>
      %111 = arith.mulf %106, %110 : vector<8x128xf32>
      %112 = vector.broadcast %92 : vector<1x128xf32> to vector<8x128xf32>
      %113 = arith.mulf %111, %112 : vector<8x128xf32>
      %114 = vector.broadcast %93 : vector<1x128xf32> to vector<8x128xf32>
      %115 = arith.addf %113, %114 : vector<8x128xf32>
      %cst_72 = arith.constant 0.000000e+00 : f32
      %116 = vector.broadcast %cst_72 : f32 to vector<8x128xf32>
      %117 = arith.maximumf %115, %116 : vector<8x128xf32>
      %c0_73 = arith.constant 0 : index
      %c0_74 = arith.constant 0 : index
      %118 = vector.load %arg13[%c0_73, %c0_74] : memref<128x16xf32, #tpu.memory_space<vmem>>, vector<128x16xf32>
      %cst_75 = arith.constant dense<0.000000e+00> : vector<8x16xf32>
      %119 = tpu.matmul %117, %118, %cst_75 {dimension_numbers = #tpu.dot_dimension_numbers<[1], [0], [0], [1], [0, 0, 1, 1], [], []>} : vector<8x128xf32>, vector<128x16xf32>, vector<8x16xf32> -> vector<8x16xf32>
      %c0_76 = arith.constant 0 : index
      %c0_77 = arith.constant 0 : index
      %120 = vector.load %arg14[%c0_76, %c0_77] : memref<1x16xf32, #tpu.memory_space<vmem>>, vector<1x16xf32>
      %121 = vector.broadcast %120 : vector<1x16xf32> to vector<8x16xf32>
      %122 = arith.addf %119, %121 : vector<8x16xf32>
      %c0_78 = arith.constant 0 : index
      %c0_79 = arith.constant 0 : index
      %123 = vector.load %arg15[%c0_78, %c0_79] : memref<8x16xf32, #tpu.memory_space<vmem>>, vector<8x16xf32>
      tpu.vector_store %arg15[%c0_78, %c0_79], %122 {strides = array<i32>} : memref<8x16xf32, #tpu.memory_space<vmem>>, vector<8x16xf32>,
    } else {
    }
    return
  }
  func.func @transform_0(%arg0: i32) -> (i32, i32) {
    %c0_i32 = arith.constant 0 : i32
    %c0_i32_0 = arith.constant 0 : i32
    %c0_i32_1 = arith.constant 0 : i32
    return %c0_i32, %c0_i32_0 : i32, i32
  }
  func.func @transform_1(%arg0: i32) -> (i32, i32) {
    %c0_i32 = arith.constant 0 : i32
    %c0_i32_0 = arith.constant 0 : i32
    %c0_i32_1 = arith.constant 0 : i32
    return %c0_i32, %c0_i32_0 : i32, i32
  }
  func.func @transform_2(%arg0: i32) -> (i32, i32) {
    %c0_i32 = arith.constant 0 : i32
    %c0_i32_0 = arith.constant 0 : i32
    return %c0_i32, %arg0 : i32, i32
  }
  func.func @transform_3(%arg0: i32) -> (i32, i32) {
    %c0_i32 = arith.constant 0 : i32
    %c0_i32_0 = arith.constant 0 : i32
    return %c0_i32, %arg0 : i32, i32
  }
  func.func @transform_4(%arg0: i32) -> (i32, i32) {
    %c0_i32 = arith.constant 0 : i32
    %c0_i32_0 = arith.constant 0 : i32
    return %arg0, %c0_i32 : i32, i32
  }
  func.func @transform_5(%arg0: i32) -> (i32, i32) {
    %c0_i32 = arith.constant 0 : i32
    %c0_i32_0 = arith.constant 0 : i32
    %c0_i32_1 = arith.constant 0 : i32
    return %c0_i32, %c0_i32_0 : i32, i32
  }
  func.func @transform_6(%arg0: i32) -> (i32, i32) {
    %c0_i32 = arith.constant 0 : i32
    %c0_i32_0 = arith.constant 0 : i32
    %c0_i32_1 = arith.constant 0 : i32
    return %c0_i32, %c0_i32_0 : i32, i32
  }
  func.func @transform_7(%arg0: i32) -> (i32, i32) {
    %c0_i32 = arith.constant 0 : i32
    %c0_i32_0 = arith.constant 0 : i32
    %c0_i32_1 = arith.constant 0 : i32
    return %c0_i32, %c0_i32_0 : i32, i32
  }
  func.func @transform_8(%arg0: i32) -> (i32, i32) {
    %c0_i32 = arith.constant 0 : i32
    %c0_i32_0 = arith.constant 0 : i32
    %c0_i32_1 = arith.constant 0 : i32
    return %c0_i32, %c0_i32_0 : i32, i32
  }
  func.func @transform_9(%arg0: i32) -> (i32, i32) {
    %c0_i32 = arith.constant 0 : i32
    %c0_i32_0 = arith.constant 0 : i32
    %c0_i32_1 = arith.constant 0 : i32
    return %c0_i32, %c0_i32_0 : i32, i32
  }
  func.func @transform_10(%arg0: i32) -> (i32, i32) {
    %c0_i32 = arith.constant 0 : i32
    %c0_i32_0 = arith.constant 0 : i32
    %c0_i32_1 = arith.constant 0 : i32
    return %c0_i32, %c0_i32_0 : i32, i32
  }
  func.func @transform_11(%arg0: i32) -> (i32, i32) {
    %c0_i32 = arith.constant 0 : i32
    %c0_i32_0 = arith.constant 0 : i32
    %c0_i32_1 = arith.constant 0 : i32
    return %c0_i32, %c0_i32_0 : i32, i32
  }
  func.func @transform_12(%arg0: i32) -> (i32, i32) {
    %c0_i32 = arith.constant 0 : i32
    %c0_i32_0 = arith.constant 0 : i32
    %c0_i32_1 = arith.constant 0 : i32
    return %c0_i32, %c0_i32_0 : i32, i32
  }
  func.func @transform_13(%arg0: i32) -> (i32, i32) {
    %c0_i32 = arith.constant 0 : i32
    %c0_i32_0 = arith.constant 0 : i32
    %c0_i32_1 = arith.constant 0 : i32
    return %c0_i32, %c0_i32_0 : i32, i32
  }
  func.func @transform_14(%arg0: i32) -> (i32, i32) {
    %c0_i32 = arith.constant 0 : i32
    %c0_i32_0 = arith.constant 0 : i32
    %c0_i32_1 = arith.constant 0 : i32
    return %c0_i32, %c0_i32_0 : i32, i32
  }
}

</mosaic_0001>

<bundles_post_ra>
// kernel: tpu_custom_call.1
= control target key start
LH: loop header
LB: loop body
LE: loop exit
PB: predicated region body
PF: predicated region fallthrough
CT: control target
= control target key end

     0   :  { %s7118_s0 = inlined_call_operand.hbm [shape: s32[8,8], index: 0, kind: input, shape index: {}]   ;;  %s7119_s1 = inlined_call_operand.vmem [shape: f32[64,32], index: 1, kind: input, shape index: {}]   ;;  %s7120_s2 = inlined_call_operand.hbm [shape: bf16[256,4096], index: 2, kind: input, shape index: {}]   ;;  %s7121_s3 = inlined_call_operand.hbm [shape: f32[1,4096], index: 3, kind: input, shape index: {}]   ;;  %s7122_s4 = inlined_call_operand.hbm [shape: bf16[4096,128], index: 4, kind: input, shape index: {}]   ;;  %s7123_s5 = inlined_call_operand.hbm [shape: f32[1,128], index: 5, kind: input, shape index: {}]   ;;  %s7124_s6 = inlined_call_operand.hbm [shape: f32[1,128], index: 6, kind: input, shape index: {}]   ;;  %s7125_s7 = inlined_call_operand.hbm [shape: f32[1,128], index: 7, kind: input, shape index: {}]   ;;  %s7126_s8 = inlined_call_operand.hbm [shape: bf16[128,128], index: 8, kind: input, shape index: {}]   ;;  %s7127_s9 = inlined_call_operand.hbm [shape: f32[1,128], index: 9, kind: input, shape index: {}]   ;;  %s7128_s10 = inlined_call_operand.hbm [shape: f32[1,128], index: 10, kind: input, shape index: {}]   ;;  %s7129_s11 = inlined_call_operand.hbm [shape: f32[1,128], index: 11, kind: input, shape index: {}]   ;;  %s7130_s12 = inlined_call_operand.vmem [shape: f32[128,16], index: 12, kind: input, shape index: {}]   ;;  %s7131_s13 = inlined_call_operand.hbm [shape: f32[1,16], index: 13, kind: input, shape index: {}]   ;;  %s7132_s14 = inlined_call_operand.hbm [shape: f32[8,16], index: 14, kind: output, shape index: {}]  }
   0x1   :  { %7151 = sst [smem:[#allocation37_spill]] %s7118_s0 }
   0x2   :  { %7152 = sst [smem:[#allocation38_spill]] %s7120_s2 }
   0x3   :  { %7153 = sst [smem:[#allocation39_spill]] %s7123_s5 }
   0x4   :  { %7154 = sst [smem:[#allocation40_spill]] %s7124_s6 }
   0x5   :  { %7155 = sst [smem:[#allocation41_spill]] %s7126_s8 }
   0x6   :  { %7156 = sst [smem:[#allocation42_spill]] %s7128_s10 }
   0x7   :  { %7157 = sst [smem:[#allocation43_spill]] %s7130_s12 }
   0x8   :  { %7158 = sst [smem:[#allocation44_spill]] %s7132_s14 }
   0x9   :  { %19 = vsyncpa [#allocation5], 0 }
   0xa   :  { %20 = vsyncpa [#allocation8], 0 }
   0xb   :  { %22 = vsyncpa [#allocation8 + $0x1], 0 }
   0xc   :  { %23 = vsyncpa [#allocation11], 0 }
   0xd   :  { %25 = vsyncpa [#allocation11 + $0x1], 0 }
   0xe   :  { %26 = vsyncpa [#allocation14], 0 }
   0xf   :  { %27 = vsyncpa [#allocation17], 0 }
  0x10   :  { %28 = vsyncpa [#allocation20], 0 }
  0x11   :  { %29 = vsyncpa [#allocation23], 0 }
  0x12   :  { %30 = vsyncpa [#allocation6], 0  ;;  %s6164_s29 = smov 0   ;;  %s6166_s30 = smov 0  }
  0x13   :  { %s6168_s15 = smov 0   ;;  %s6170_s16 = smov 0  }
  0x14 LB: > { %7159 = sst [smem:[#allocation34_spill]] %s6052_s15  ;;  %s6058_s17 = smov [#allocation12]   ;;  %s6056_s16 = sphi %s6170_s16, %s7199_s16   ;;  %s6052_s15 = sphi %s6168_s15, %s7201_s15   ;;  %s6048_s30 = sphi %s6166_s30, %s7203_s30   ;;  %s6044_s29 = sphi %s6164_s29, %s7202_s29  }
  0x15   : > { %s398_s18 = sshll.u32 %s6058_s17, 4  ;;  %s6185_s19 = sadd.s32 4294967295, %s6056_s16   ;;  %s399_s18 = int_to_ptr.vmem [resolvable:$true] %s398_s18 }
  0x16   : > { %p4716_p0 = scmp.ge.s32.totalorder %s6056_s16, 1  ;;  %p7133_p1 = scmp.eq.s32.totalorder %s6185_s19, 0 }
  0x17   : > { %p371_p2 = scmp.lt.s32.totalorder %s6056_s16, 5  ;;  %s6059_s21 = smov [#allocation13]  }
  0x18   : > { %s409_s22 = sshll.u32 %s6059_s21, 4  ;;  %s6060_s23 = smov [#allocation16]   ;;  %s410_s22 = int_to_ptr.vmem [resolvable:$true] %s409_s22 }
  0x19   : > { %p6191_p4 = pnand %p4716_p0, %p371_p2  ;;  %s430_s24 = sshll.u32 %s6060_s23, 4  ;;  %s6203_s24 = int_to_ptr.vmem [resolvable:$true] %s430_s24 }
  0x1a   : > { %s5659_s27 = scalar_lea.vmem %s399_s18, 16  ;;  %s5666_s28 = scalar_lea.vmem %s399_s18, 32 }
  0x1b   : > { %s7160_s20 = scalar_select %p6191_p4, 1, 0 }
  0x1c   : > { %p5444_p5 = pneg %p6191_p4  ;;  %p5660_p8 = scmp.ne.s32.totalorder %s399_s18, %s5659_s27 }
  0x1d   : > { %p5667_p11 = scmp.lt.s32.totalorder %s399_s18, %s399_s18  ;;  %p5668_p12 = scmp.lt.s32.totalorder %s5666_s28, %s5659_s27 }
  0x1e   : > { %p6199_p6 = pnand %p5444_p5, %p7133_p1 }
  0x1f   : > { %p5669_p13 = por %p5668_p12, %p5667_p11 }
  0x20   : > { %s7161_s25 = scalar_select %p6199_p6, 1, 0 }
  0x21   : > { %p6207_p7 = pneg %p6199_p6 }
  0x23   : > { %s7162_s26 = scalar_select %p6207_p7, 1, 0 }
  0x24   : > { %p5662_p9 = pnand %p5660_p8, %p6207_p7 }
  0x26   : > { %p5663_p10 = pneg %p5662_p9 }
  0x28   : > { %p5670_p0 = pnand %p5669_p13, %p5663_p10 }
  0x2a   : > { %5673 = shalt.err (!%p5670_p0)
}
  0x2b   : > { %s7163_s5 = sld [smem:[#allocation39_spill]]  ;;  %s5685_s23 = scalar_lea.vmem %s410_s22, 16 }
  0x2c   : > { %p5686_p2 = scmp.ne.s32.totalorder %s410_s22, %s5685_s23  ;;  %s5692_s14 = scalar_lea.vmem %s410_s22, 32 }
  0x2d   : > { %p5693_p8 = scmp.lt.s32.totalorder %s410_s22, %s410_s22  ;;  %p5694_p9 = scmp.lt.s32.totalorder %s5692_s14, %s5685_s23 }
  0x2e   : > { %p5688_p5 = pnand %p5686_p2, %p6207_p7 }
  0x2f   : > { %p5695_p1 = por %p5694_p9, %p5693_p8 }
  0x30   : > { %p5689_p3 = pneg %p5688_p5 }
  0x31   : > { %5450 = dma.hbm_to_vmem [thread:$0]  (!%p6199_p6), %s7163_s5, 16, %s399_s18, [#allocation11]  }
  0x32   : > { %p5696_p4 = pnand %p5695_p1, %p5689_p3 }
  0x34   : > { %5699 = shalt.err (!%p5696_p4)
}
  0x35   : > { %s7164_s6 = sld [smem:[#allocation40_spill]]  ;;  %s5711_s18 = scalar_lea.vmem %s6203_s24, 1024 }
  0x36   : > { %p5712_p10 = scmp.ne.s32.totalorder %s6203_s24, %s5711_s18  ;;  %p5719_p13 = scmp.lt.s32.totalorder %s6203_s24, %s6203_s24 }
  0x37   : > { %p5720_p0 = scmp.lt.s32.totalorder %s5711_s18, %s5711_s18 }
  0x38   : > { %p5714_p11 = pnand %p5712_p10, %p6207_p7 }
  0x39   : > { %p5721_p1 = por %p5720_p0, %p5719_p13 }
  0x3a   : > { %p5715_p12 = pneg %p5714_p11 }
  0x3b   : > { %5453 = dma.hbm_to_vmem [thread:$0]  (!%p6199_p6), %s7164_s6, 16, %s410_s22, [#allocation14]  }
  0x3c   : > { %p5722_p3 = pnand %p5721_p1, %p5715_p12 }
  0x3e   : > { %5725 = shalt.err (!%p5722_p3)
}
  0x3f   : > { %s7135_s14 = smov 64   ;;  %s7136_s17 = smov 4  }
  0x40   : > { %s7165_s8 = sld [smem:[#allocation41_spill]]  ;;  %s6063_s23 = smov [#allocation19]  }
  0x41   : > { %s455_s27 = sshll.u32 %s6063_s23, 4  ;;  %s456_s27 = int_to_ptr.vmem [resolvable:$true] %s455_s27 }
  0x42   : > { %s5737_s28 = scalar_lea.vmem %s456_s27, 16  ;;  %s5744_s18 = scalar_lea.vmem %s456_s27, 32 }
  0x43   : > { %p5738_p4 = scmp.ne.s32.totalorder %s456_s27, %s5737_s28  ;;  %p5745_p8 = scmp.lt.s32.totalorder %s456_s27, %s456_s27 }
  0x44   : > { %p5746_p9 = scmp.lt.s32.totalorder %s5744_s18, %s5737_s28 }
  0x45   : > { %p5740_p2 = pnand %p5738_p4, %p6207_p7 }
  0x46   : > { %5459 = dma.hbm_to_vmem [thread:$0]  (!%p6199_p6), %s7165_s8, 1024, %s6203_s24, [#allocation17], %s7135_s14, %s7135_s14, %s7136_s17  }
  0x47   : > { %p5741_p5 = pneg %p5740_p2  ;;  %p5747_p10 = por %p5746_p9, %p5745_p8 }
  0x49   : > { %p5748_p11 = pnand %p5747_p10, %p5741_p5 }
  0x4b   : > { %5751 = shalt.err (!%p5748_p11)
}
  0x4c   : > { %s7166_s10 = sld [smem:[#allocation42_spill]]  ;;  %s6248_s24 = sadd.s32 1, %s6056_s16  }
  0x4d   : > { %7167 = sst [smem:[#allocation35_spill]] %s6248_s24  ;;  %s85_s22 = sadd.s32 1, %s6052_s15 }
  0x4e   : > { %s82_s5 = ssub.s32 %s6056_s16, %s6248_s24  ;;  %p92_p12 = scmp.ne.s32.totalorder %s6052_s15, %s6048_s30 }
  0x4f   : > { %p83_p13 = scmp.eq.s32.totalorder %s82_s5, 0  ;;  %p93_p0 = scmp.eq.s32.totalorder %s6056_s16, 0 }
  0x50   : > { %p98_p1 = scmp.ne.s32.totalorder %s6048_s30, %s6044_s29  ;;  %p5491_p3 = scmp.lt.s32.totalorder %s6056_s16, 4 }
  0x51   : > { %s6260_s6 = scalar_select %p83_p13, %s6052_s15, %s85_s22  }
  0x52   : > { %5465 = dma.hbm_to_vmem [thread:$0]  (!%p6199_p6), %s7166_s10, 16, %s456_s27, [#allocation20]  }
  0x53   : > { %7168 = sst [smem:[#allocation36_spill]] %s6260_s6  ;;  %p94_p4 = por %p93_p0, %p92_p12 }
  0x54   : > { %p7169_p2 = scmp.eq.s32.totalorder %s6185_s19, 0  ;;  %s7138_s23 = sand.u32 1, %s6056_s16  }
  0x55   : > { %s6270_s27 = sand.u32 1, %s6052_s15   ;;  %s5002_s18 = sshll.u32 %s6056_s16, 9 }
  0x56   : > { %p6264_p5 = por %p7169_p2, %p98_p1  ;;  %s4727_s28 = sshll.u32 %s6270_s27, 10 }
  0x57   : > { %s7171_s2 = sld [smem:[#allocation38_spill]]  ;;  %s495_s29 = scalar_lea.vmem [#allocation7], %s4727_s28 }
  0x58   : > { %s7170_s21 = scalar_select %p6264_p5, 1, 0 }
  0x59   : > { %s502_s22 = sshll.u32 %s495_s29, 4  ;;  %p6281_p8 = pnand %p5491_p3, %p94_p4  ;;  %s6279_s22 = int_to_ptr.vmem [resolvable:$true] %s502_s22 }
  0x5a   : > { %s6287_s10 = scalar_lea.sflag [#allocation8], %s7138_s23 }
  0x5b   : > { %s7172_s8 = scalar_select %p6281_p8, 1, 0 }
  0x5c   : > { %p6293_p10 = pneg %p6281_p8 }
  0x5d   : > { %s6277_s17 = scalar_lea.hbm %s7171_s2, %s5002_s18  ;;  %s5757_s5 = scalar_lea.hbm %s7171_s2, 65536 }
  0x5e   : > { %s5752_s6 = scalar_lea.hbm %s6277_s17, 16384  ;;  %p5758_p13 = scmp.lt.s32.totalorder %s6277_s17, %s7171_s2 }
  0x5f   : > { %p5753_p9 = scmp.ne.s32.totalorder %s6277_s17, %s5752_s6  ;;  %p5759_p0 = scmp.lt.s32.totalorder %s5757_s5, %s5752_s6 }
  0x60   : > { %s7173_s14 = scalar_select %p6293_p10, 1, 0 }
  0x61   : > { %p5755_p11 = pnand %p6293_p10, %p5753_p9  ;;  %p5760_p1 = por %p5759_p0, %p5758_p13 }
  0x63   : > { %p5756_p12 = pneg %p5755_p11 }
  0x65   : > { %p5761_p3 = pnand %p5760_p1, %p5756_p12 }
  0x67   : > { %5764 = shalt.err (!%p5761_p3)
}
  0x68   : > { %s5765_s23 = scalar_lea.vmem %s6279_s22, 16384  ;;  %s6064_s24 = smov [#allocation7]  }
  0x69   : > { %p5766_p4 = scmp.ne.s32.totalorder %s6279_s22, %s5765_s23  ;;  %s5770_s28 = sshll.u32 %s6064_s24, 4  ;;  %s5771_s28 = int_to_ptr.vmem [resolvable:$false] %s5770_s28 }
  0x6a   : > { %s5772_s18 = scalar_lea.vmem %s5771_s28, 32768  ;;  %p5773_p11 = scmp.lt.s32.totalorder %s6279_s22, %s5771_s28 }
  0x6b   : > { %p5768_p2 = pnand %p5766_p4, %p6293_p10  ;;  %p5774_p5 = scmp.lt.s32.totalorder %s5772_s18, %s5765_s23 }
  0x6d   : > { %p5769_p9 = pneg %p5768_p2  ;;  %p5775_p6 = por %p5774_p5, %p5773_p11 }
  0x6f   : > { %p5776_p7 = pnand %p5775_p6, %p5769_p9 }
  0x71   : > { %5779 = shalt.err (!%p5776_p7)
}
  0x72   : > { %s6065_s15 = smov 2048   ;;  %s6066_s6 = smov 512  }
  0x73   : > { %s6067_s5 = smov 32   ;;  %s6068_s29 = smov [#allocation4]  }
  0x74   : > { %5475 = dma.hbm_to_vmem [thread:$0]  (!%p6281_p8), %s6277_s17, 16384, %s6279_s22, %s6287_s10, %s6065_s15, %s6066_s6, %s6067_s5  }
  0x75   : > { %s384_s2 = sshll.u32 %s6068_s29, 4  ;;  %s6069_s24 = smov [#allocation15]   ;;  %s385_s2 = int_to_ptr.vmem [resolvable:$true] %s384_s2 }
  0x76   : > { %s420_s12 = sshll.u32 %s6069_s24, 4  ;;  %s5791_s23 = scalar_lea.vmem %s385_s2, 128  ;;  %s421_s12 = int_to_ptr.vmem [resolvable:$true] %s420_s12 }
  0x77   : > { %p5792_p5 = scmp.ne.s32.totalorder %s385_s2, %s5791_s23  ;;  %p7174_p6 = scmp.ne.s32.totalorder %s7162_s26, 0 }
  0x78   : > { %p5799_p13 = scmp.lt.s32.totalorder %s385_s2, %s385_s2  ;;  %p5800_p0 = scmp.lt.s32.totalorder %s5791_s23, %s5791_s23 }
  0x79   : > { %p5794_p7 = pnand %p5792_p5, %p7174_p6 }
  0x7a   : > { %p5801_p1 = por %p5800_p0, %p5799_p13 }
  0x7b   : > { %p5795_p12 = pneg %p5794_p7 }
  0x7d   : > { %p5802_p3 = pnand %p5801_p1, %p5795_p12 }
  0x7f   : > { %5805 = shalt.err (!%p5802_p3)
}
  0x80   : > { %p7175_p4 = scmp.ne.s32.totalorder %s7161_s25, 0  ;;  %s7176_s0 = sld [smem:[#allocation37_spill]] }
  0x81   : > { %s5817_s22 = scalar_lea.vmem %s421_s12, 16  ;;  %s5824_s18 = scalar_lea.vmem %s421_s12, 32 }
  0x82   : > { %p5818_p2 = scmp.ne.s32.totalorder %s421_s12, %s5817_s22  ;;  %p5825_p5 = scmp.lt.s32.totalorder %s421_s12, %s421_s12 }
  0x83   : > { %p5826_p7 = scmp.lt.s32.totalorder %s5824_s18, %s5817_s22 }
  0x84   : > { %p5820_p9 = pnand %p5818_p2, %p7174_p6 }
  0x85   : > { %p5827_p8 = por %p5826_p7, %p5825_p5 }
  0x86   : > { %5447 = dma.hbm_to_vmem [thread:$0]  (!%p7175_p4), %s7176_s0, 128, %s385_s2, [#allocation5]  }
  0x87   : > { %p5821_p11 = pneg %p5820_p9 }
  0x89   : > { %p5828_p10 = pnand %p5827_p8, %p5821_p11 }
  0x8b   : > { %5831 = shalt.err (!%p5828_p10)
}
  0x8c   : > { %5456 = dma.hbm_to_vmem [thread:$0]  (!%p7175_p4), %s7125_s7, 16, %s421_s12, [#allocation14]  }
  0x8d   : > { %s6070_s5 = smov [#allocation18]   ;;  %s6071_s29 = smov [#allocation21]  }
  0x8e   : > { %s444_s2 = sshll.u32 %s6070_s5, 4  ;;  %s466_s24 = sshll.u32 %s6071_s29, 4  ;;  %s445_s2 = int_to_ptr.vmem [resolvable:$true] %s444_s2  ;;  %s467_s24 = int_to_ptr.vmem [resolvable:$true] %s466_s24 }
  0x8f   : > { %s5843_s23 = scalar_lea.vmem %s445_s2, 16  ;;  %s5850_s28 = scalar_lea.vmem %s445_s2, 32 }
  0x90   : > { %p5844_p12 = scmp.ne.s32.totalorder %s445_s2, %s5843_s23  ;;  %p5851_p8 = scmp.lt.s32.totalorder %s445_s2, %s445_s2 }
  0x91   : > { %p5852_p10 = scmp.lt.s32.totalorder %s5850_s28, %s5843_s23 }
  0x92   : > { %p5846_p13 = pnand %p5844_p12, %p7174_p6 }
  0x93   : > { %p5853_p1 = por %p5852_p10, %p5851_p8 }
  0x94   : > { %p5847_p0 = pneg %p5846_p13 }
  0x96   : > { %p5854_p3 = pnand %p5853_p1, %p5847_p0 }
  0x98   : > { %5857 = shalt.err (!%p5854_p3)
}
  0x99   : > { %5462 = dma.hbm_to_vmem [thread:$0]  (!%p7175_p4), %s7127_s9, 16, %s445_s2, [#allocation17]  }
  0x9a   : > { %s5869_s22 = scalar_lea.vmem %s467_s24, 16  ;;  %s5876_s18 = scalar_lea.vmem %s467_s24, 32 }
  0x9b   : > { %p5870_p2 = scmp.ne.s32.totalorder %s467_s24, %s5869_s22  ;;  %p5877_p5 = scmp.lt.s32.totalorder %s467_s24, %s467_s24 }
  0x9c   : > { %p5878_p7 = scmp.lt.s32.totalorder %s5876_s18, %s5869_s22 }
  0x9d   : > { %p5872_p9 = pnand %p5870_p2, %p7174_p6 }
  0x9e   : > { %p5879_p12 = por %p5878_p7, %p5877_p5 }
  0x9f   : > { %p5873_p11 = pneg %p5872_p9 }
  0xa1   : > { %p5880_p13 = pnand %p5879_p12, %p5873_p11 }
  0xa3   : > { %5883 = shalt.err (!%p5880_p13)
}
  0xa4   : > { %5468 = dma.hbm_to_vmem [thread:$0]  (!%p7175_p4), %s7129_s11, 16, %s467_s24, [#allocation20]  }
  0xa5   : > { %s4730_s5 = sshll.u32 %s6270_s27, 3  ;;  %s6072_s2 = smov [#allocation22]  }
  0xa6   : > { %s480_s29 = sshll.u32 %s6072_s2, 4  ;;  %s5003_s23 = sshll.u32 %s6056_s16, 7  ;;  %s481_s29 = int_to_ptr.vmem [resolvable:$true] %s480_s29 }
  0xa7   : > { %s5895_s28 = scalar_lea.vmem %s481_s29, 16  ;;  %s5902_s12 = scalar_lea.vmem %s481_s29, 32 }
  0xa8   : > { %p5896_p0 = scmp.ne.s32.totalorder %s481_s29, %s5895_s28  ;;  %p5903_p1 = scmp.lt.s32.totalorder %s481_s29, %s481_s29 }
  0xa9   : > { %p5904_p3 = scmp.lt.s32.totalorder %s5902_s12, %s5895_s28 }
  0xaa   : > { %p5898_p8 = pnand %p5896_p0, %p7174_p6 }
  0xab   : > { %p5905_p2 = por %p5904_p3, %p5903_p1 }
  0xac   : > { %p5899_p10 = pneg %p5898_p8 }
  0xae   : > { %p5906_p9 = pnand %p5905_p2, %p5899_p10 }
  0xb0   : > { %5909 = shalt.err (!%p5906_p9)
}
  0xb1   : > { %5471 = dma.hbm_to_vmem [thread:$0]  (!%p7175_p4), %s7131_s13, 16, %s481_s29, [#allocation23]  }
  0xb2   : > { %s522_s15 = scalar_lea.hbm %s7121_s3, %s5003_s23  ;;  %s516_s26 = scalar_lea.vmem [#allocation9], %s4730_s5 }
  0xb3   : > { %s524_s6 = sshll.u32 %s516_s26, 4  ;;  %s5910_s2 = scalar_lea.hbm %s522_s15, 128  ;;  %s525_s6 = int_to_ptr.vmem [resolvable:$true] %s524_s6 }
  0xb4   : > { %p5911_p6 = scmp.ne.s32.totalorder %s522_s15, %s5910_s2  ;;  %p7177_p11 = scmp.ne.s32.totalorder %s7173_s14, 0 }
  0xb5   : > { %s5915_s25 = scalar_lea.hbm %s7121_s3, 512  ;;  %p5916_p4 = scmp.lt.s32.totalorder %s522_s15, %s7121_s3 }
  0xb6   : > { %p5913_p5 = pnand %p5911_p6, %p7177_p11  ;;  %p5917_p12 = scmp.lt.s32.totalorder %s5915_s25, %s5910_s2 }
  0xb8   : > { %p5914_p7 = pneg %p5913_p5  ;;  %p5918_p13 = por %p5917_p12, %p5916_p4 }
  0xba   : > { %p5919_p0 = pnand %p5918_p13, %p5914_p7 }
  0xbc   : > { %5922 = shalt.err (!%p5919_p0)
}
  0xbd   : > { %s5923_s5 = scalar_lea.vmem %s525_s6, 128  ;;  %s6073_s29 = smov [#allocation9]  }
  0xbe   : > { %p5924_p8 = scmp.ne.s32.totalorder %s525_s6, %s5923_s5  ;;  %s5928_s23 = sshll.u32 %s6073_s29, 4  ;;  %s5929_s23 = int_to_ptr.vmem [resolvable:$false] %s5928_s23 }
  0xbf   : > { %s5930_s24 = scalar_lea.vmem %s5929_s23, 256  ;;  %p5931_p3 = scmp.lt.s32.totalorder %s525_s6, %s5929_s23 }
  0xc0   : > { %p5926_p10 = pnand %p5924_p8, %p7177_p11  ;;  %p5932_p2 = scmp.lt.s32.totalorder %s5930_s24, %s5923_s5 }
  0xc2   : > { %p5927_p1 = pneg %p5926_p10  ;;  %p5933_p9 = por %p5932_p2, %p5931_p3 }
  0xc4   : > { %p5934_p6 = pnand %p5933_p9, %p5927_p1 }
  0xc6   : > { %5937 = shalt.err (!%p5934_p6)
}
  0xc7   : > { %p7178_p5 = scmp.ne.s32.totalorder %s7172_s8, 0  ;;  %s4733_s0 = sshll.u32 %s6270_s27, 9 }
  0xc8   : > { %s5004_s22 = sshll.u32 %s6056_s16, 13  ;;  %s535_s28 = scalar_lea.vmem [#allocation10], %s4733_s0 }
  0xc9   : > { %5478 = dma.hbm_to_vmem [thread:$0]  (!%p7178_p5), %s522_s15, 128, %s525_s6, %s6287_s10  }
  0xca   : > { %s6374_s2 = scalar_lea.hbm %s7122_s4, %s5004_s22  ;;  %s542_s12 = sshll.u32 %s535_s28, 4  ;;  %s6376_s12 = int_to_ptr.vmem [resolvable:$true] %s542_s12 }
  0xcb   : > { %s7179_s25 = sand.u32 1, %s6056_s16   ;;  %s5938_s5 = scalar_lea.hbm %s6374_s2, 8192 }
  0xcc   : > { %s532_s17 = scalar_lea.sflag [#allocation11], %s7179_s25  ;;  %p5939_p7 = scmp.ne.s32.totalorder %s6374_s2, %s5938_s5 }
  0xcd   : > { %s5943_s15 = scalar_lea.hbm %s7122_s4, 32768  ;;  %p5944_p13 = scmp.lt.s32.totalorder %s6374_s2, %s7122_s4 }
  0xce   : > { %p5941_p4 = pnand %p5939_p7, %p7177_p11  ;;  %p5945_p0 = scmp.lt.s32.totalorder %s5943_s15, %s5938_s5 }
  0xd0   : > { %p5942_p12 = pneg %p5941_p4  ;;  %p5946_p8 = por %p5945_p0, %p5944_p13 }
  0xd2   : > { %p5947_p10 = pnand %p5946_p8, %p5942_p12 }
  0xd4   : > { %5950 = shalt.err (!%p5947_p10)
}
  0xd5   : > { %s5951_s16 = scalar_lea.vmem %s6376_s12, 8192  ;;  %s6074_s23 = smov [#allocation10]  }
  0xd6   : > { %p5952_p1 = scmp.ne.s32.totalorder %s6376_s12, %s5951_s16  ;;  %s5956_s24 = sshll.u32 %s6074_s23, 4  ;;  %s5957_s24 = int_to_ptr.vmem [resolvable:$false] %s5956_s24 }
  0xd7   : > { %s5958_s0 = scalar_lea.vmem %s5957_s24, 16384  ;;  %p5959_p9 = scmp.lt.s32.totalorder %s6376_s12, %s5957_s24 }
  0xd8   : > { %p5954_p3 = pnand %p5952_p1, %p7177_p11  ;;  %p5960_p6 = scmp.lt.s32.totalorder %s5958_s0, %s5951_s16 }
  0xda   : > { %p5955_p2 = pneg %p5954_p3  ;;  %p5961_p7 = por %p5960_p6, %p5959_p9 }
  0xdc   : > { %p5962_p4 = pnand %p5961_p7, %p5955_p2 }
  0xde   : > { %5965 = shalt.err (!%p5962_p4)
}
  0xdf   : > { %s7180_s22 = smov 4   ;;  %s7181_s18 = smov 64  }
  0xe0   : > { %5481 = dma.hbm_to_vmem [thread:$0]  (!%p7178_p5), %s6374_s2, 8192, %s6376_s12, %s532_s17, %s7181_s18, %s7181_s18, %s7180_s22  }
  0xe1   : > { %p7182_p11 = scmp.ne.s32.totalorder %s7160_s20, 0 }
  0xe2   : > { %p7183_p12 = scmp.eq.s32.totalorder (!%p7182_p11), %s6185_s19, 0 }
  0xe3   : > { %554 = sbr.rel (%p7182_p11) target bundleno = 1743 (0x6cf), region = 76 }
  0xe8   : > { %6007 = dma.done.wait (%p7183_p12), [#allocation5], 128   ;;  %p7184_p13 = pmov %p7183_p12 }
  0xe9   : > { %s560_s14 = sand.u32 1, %s6185_s19   ;;  %s562_s8 = sand.u32 1, %s6048_s30  }
  0xea   : > { %6009 = vsyncadd (%p7184_p13), [#allocation5], 4294967168  ;;  %s4738_s26 = sshll.u32 %s562_s8, 10  ;;  %s561_s28 = scalar_lea.sflag [#allocation8], %s560_s14 }
  0xeb   : > { %s6411_s25 = scalar_lea.vmem [#allocation7], %s4738_s26  ;;  %p7185_p0 = scmp.ne.s32.totalorder %s7170_s21, 0 }
  0xed   : > { %6011 = dma.done.wait (%p7185_p0), %s561_s28, 16512  }
  0xee   : > { %6013 = vsyncadd (%p7185_p0), %s561_s28, 4294950784  ;;  %s4739_s20 = sshll.u32 %s562_s8, 3  ;;  %s4740_s2 = sshll.u32 %s562_s8, 9 }
  0xef   : > { %s6417_s12 = scalar_lea.vmem [#allocation9], %s4739_s20  ;;  %s579_s17 = scalar_lea.sflag [#allocation11], %s560_s14 }
  0xf0   : > { %s6419_s5 = scalar_lea.vmem [#allocation10], %s4740_s2 }
  0xf1   : > { %6015 = dma.done.wait (%p7185_p0), %s579_s17, 8192  }
  0xf2   : > { %6017 = vsyncadd (%p7185_p0), %s579_s17, 4294959104  ;;  %p7186_p5 = pmov %p7183_p12 }
  0xf4   : > { %6019 = dma.done.wait (%p7186_p5), [#allocation11], 16   ;;  %p7187_p8 = pmov %p7186_p5 }
  0xf5   : > { %p7188_p10 = pmov %p7186_p5 }
  0xf6   : > { %6021 = vsyncadd (%p7187_p8), [#allocation11], 4294967280 }
  0xf7   : > { %6023 = dma.done.wait (%p7188_p10), [#allocation14], 32   ;;  %p7189_p1 = pmov %p7186_p5 }
  0xf9   : > { %6025 = vsyncadd (%p7189_p1), [#allocation14], 4294967264  ;;  %p7190_p3 = pmov %p7189_p1 }
  0xfa   : > { %p7191_p2 = pmov %p7189_p1 }
  0xfb   : > { %6027 = dma.done.wait (%p7190_p3), [#allocation17], 1040  }
  0xfc   : > { %6029 = vsyncadd (%p7191_p2), [#allocation17], 4294966256  ;;  %p7192_p9 = pmov %p7189_p1 }
  0xfd   : > { %p7193_p6 = pmov %p7189_p1 }
  0xfe   : > { %6031 = dma.done.wait (%p7192_p9), [#allocation20], 32  }
  0xff   : > { %6033 = vsyncadd (%p7193_p6), [#allocation20], 4294967264  ;;  %p7194_p7 = pmov %p7189_p1 }
 0x100   : > { %p7195_p4 = pmov %p7189_p1 }
 0x101   : > { %6035 = dma.done.wait (%p7194_p7), [#allocation23], 16  }
 0x102   : > { %6037 = vsyncadd (%p7195_p4), [#allocation23], 4294967280  ;;  %p7196_p11 = scmp.ne.s32.totalorder %s6185_s19, 0 }
 0x104   : > { %671 = sbr.rel (%p7196_p11) target bundleno = 646 (0x286), region = 128 }
 0x109   : > { %v673_v0 = vld [vmem:[#allocation4] sm:$0xff]  ;;  %v6075_v1 = vmov 0   ;;  %v6076_v2 = vmov 2   ;;  %v6450_v3 = vld [vmem:[%s7119_s1 + $0x38] sm:$0xff]  ;;  %v6077_v4 = vmov 0.0   ;;  %v6461_v5 = vld [vmem:[%s7119_s1 + $0x30] sm:$0xff]  ;;  %v682_v18 = vlaneseq }
 0x10a   : > { %5563 = vset.pattern.permute.xlu0 %v6075_v1  ;;  %5565 = vset.pattern.permute.xlu1 %v6076_v2  ;;  %672 = vst [vmem:[#allocation3] sm:$0xff] %v6077_v4  ;;  %v6078_v6 = vmov 1   ;;  %v6079_v7 = vmov 3   ;;  %v6467_v8 = vld [vmem:[%s7119_s1 + $0x28] sm:$0xff]  ;;  %v6080_v9 = vmov 4   ;;  %v6081_v10 = vmov 5  }
 0x10b   : > { %685 = vperm.xlu0 %5563, %v673_v0   ;;  %848 = vperm.xlu1 %5565, %v673_v0   ;;  %v6478_v11 = vld [vmem:[%s7119_s1 + $0x20] sm:$0xff]  ;;  %v6484_v12 = vld [vmem:[%s7119_s1 + $0x18] sm:$0xff]  ;;  %v6493_v13 = vld [vmem:[%s7119_s1 + $0x10] sm:$0xff]  ;;  %v6082_v14 = vmov 6   ;;  %vm6083_vm0 = vmmov 0   ;;  %v6084_v17 = vmov 7  }
 0x10c   : > { %5191 = vmatprep.subr.mxu0 %v6077_v4  ;;  %5210 = vmatprep.subr.mxu1 %v6077_v4  ;;  %v6501_v15 = vld [vmem:[%s7119_s1 + $0x8] sm:$0xff]  ;;  %v6509_v16 = vld [vmem:[%s7119_s1] sm:$0xff]  ;;  %v6526_v19 = vand.u32 127, %v682_v18  ;;  %vm689_vm1 = vcmask 523264   ;;  %vm764_vm10 = vcmask 257024  }
 0x10d   : > { %5192 = vmatpush3.msra.mxu0 %v6450_v3  ;;  %5211 = vmatpush3.msra.mxu1 %v6450_v3 }
 0x10e   : > { %5193 = vmatprep.subr.mxu0 %v6077_v4  ;;  %5212 = vmatprep.subr.mxu1 %v6077_v4 }
 0x10f   : > { %5564 = vset.pattern.permute.xlu0 %v6078_v6  ;;  %5566 = vset.pattern.permute.xlu1 %v6079_v7 }
 0x110   : > { %767 = vperm.xlu0 %5564, %v673_v0   ;;  %929 = vperm.xlu1 %5566, %v673_v0  }
 0x111   : > { %5194 = vmatpush3.msra.mxu0 %v6461_v5  ;;  %5213 = vmatpush3.msra.mxu1 %v6461_v5 }
 0x112   : > { %5195 = vmatprep.subr.mxu0 %v6077_v4  ;;  %5214 = vmatprep.subr.mxu1 %v6077_v4 }
 0x113   : > { %5196 = vmatpush3.msra.mxu0 %v6467_v8  ;;  %5215 = vmatpush3.msra.mxu1 %v6467_v8 }
 0x114   : > { %5567 = vset.pattern.permute.xlu1 %v6080_v9  ;;  %5568 = vset.pattern.permute.xlu0 %v6081_v10 }
 0x115   : > { %1010 = vperm.xlu1 %5567, %v673_v0   ;;  %1091 = vperm.xlu0 %5568, %v673_v0  }
 0x116   : > { %5197 = vmatprep.subr.mxu0 %v6077_v4  ;;  %5216 = vmatprep.subr.mxu1 %v6077_v4 }
 0x117   : > { %5198 = vmatpush3.msra.mxu0 %v6478_v11  ;;  %5217 = vmatpush3.msra.mxu1 %v6478_v11 }
 0x118   : > { %5199 = vmatprep.subr.mxu0 %v6077_v4  ;;  %5218 = vmatprep.subr.mxu1 %v6077_v4 }
 0x119   : > { %5569 = vset.pattern.permute.xlu1 %v6082_v14  ;;  %5200 = vmatpush3.msra.mxu0 %v6484_v12 }
 0x11a   : > { %1172 = vperm.xlu1 %5569, %v673_v0   ;;  %5201 = vmatprep.subr.mxu0 %v6077_v4 }
 0x11b   : > { %5202 = vmatpush3.msra.mxu0 %v6493_v13  ;;  %5219 = vmatpush3.msra.mxu1 %v6484_v12 }
 0x11c   : > { %5203 = vmatprep.subr.mxu0 %v6077_v4  ;;  %5220 = vmatprep.subr.mxu1 %v6077_v4 }
 0x11d   : > { %5204 = vmatpush3.msra.mxu0 %v6501_v15  ;;  %5207 = vmatprep.mubr.msk.f32.mxu0 %vm6083_vm0, %v6077_v4 }
 0x11e   : > { %5570 = vset.pattern.permute.xlu1 %v6084_v17  ;;  %5205 = vmatprep.subr.mxu0 %v6077_v4 }
 0x11f   : > { %1253 = vperm.xlu1 %5570, %v673_v0   ;;  %5206 = vmatpush3.msra.mxu0 %v6509_v16 }
 0x120   : > { %5221 = vmatpush3.msra.mxu1 %v6493_v13  ;;  %5229 = vmatprep.subr.mxu0 %v6077_v4 }
 0x121   : > { %5222 = vmatprep.subr.mxu1 %v6077_v4  ;;  %5226 = vmatprep.mubr.msk.f32.mxu1 %vm6083_vm0, %v6077_v4 }
 0x122   : > { %5223 = vmatpush3.msra.mxu1 %v6501_v15  ;;  %5571 = vset.pattern.permute.xlu0 %v6084_v17 }
 0x123   : > { %5224 = vmatprep.subr.mxu1 %v6077_v4 }
 0x124   : > { %5225 = vmatpush3.msra.mxu1 %v6509_v16 }
 0x125   : > { %5248 = vmatprep.subr.mxu1 %v6077_v4 }
 0x186   : > { %v686_v20 = vpop.permute.xlu0 %685  ;;  %v849_v24 = vpop.permute.xlu1 %848 }
 0x187   : > { %vm687_vm2 = vcmp.eq.s32.totalorder %v6526_v19, %v686_v20  ;;  %vm850_vm4 = vcmp.eq.s32.totalorder %v6526_v19, %v849_v24 }
 0x188   : > { %v688_v21 = vsel %vm687_vm2, 1.0, %v6077_v4  ;;  %v851_v25 = vsel %vm850_vm4, 1.0, %v6077_v4 }
 0x189   : > { %5208 = vmatmul.mubr.msk.f32.vlgmr.msra.gmra.mxu0 %vm689_vm1, %v688_v21 }
 0x18a   : > { %5230 = vmatpush3.msra.mxu0 %v6450_v3  ;;  %5245 = vmatprep.mubr.msk.f32.mxu0 %vm6083_vm0, %v6077_v4 }
 0x18b   : > { %5231 = vmatprep.subr.mxu0 %v6077_v4  ;;  %v768_v22 = vpop.permute.xlu0 %767  ;;  %v930_v26 = vpop.permute.xlu1 %929 }
 0x18c   : > { %vm769_vm3 = vcmp.eq.s32.totalorder %v6526_v19, %v768_v22  ;;  %5232 = vmatpush3.msra.mxu0 %v6461_v5  ;;  %vm931_vm5 = vcmp.eq.s32.totalorder %v6526_v19, %v930_v26 }
 0x18d   : > { %v770_v23 = vsel %vm769_vm3, 1.0, %v6077_v4  ;;  %5233 = vmatprep.subr.mxu0 %v6077_v4  ;;  %v932_v27 = vsel %vm931_vm5, 1.0, %v6077_v4 }
 0x18e   : > { %5234 = vmatpush3.msra.mxu0 %v6467_v8  ;;  %5227 = vmatmul.mubr.msk.f32.vlgmr.msra.gmra.mxu1 %vm689_vm1, %v770_v23 }
 0x18f   : > { %5235 = vmatprep.subr.mxu0 %v6077_v4  ;;  %5249 = vmatpush3.msra.mxu1 %v6450_v3 }
 0x190   : > { %5236 = vmatpush3.msra.mxu0 %v6478_v11  ;;  %5250 = vmatprep.subr.mxu1 %v6077_v4  ;;  %v1011_v28 = vpop.permute.xlu1 %1010  ;;  %v1092_v29 = vpop.permute.xlu0 %1091 }
 0x191   : > { %5237 = vmatprep.subr.mxu0 %v6077_v4  ;;  %5251 = vmatpush3.msra.mxu1 %v6461_v5  ;;  %vm1012_vm6 = vcmp.eq.s32.totalorder %v6526_v19, %v1011_v28  ;;  %vm1093_vm7 = vcmp.eq.s32.totalorder %v6526_v19, %v1092_v29 }
 0x192   : > { %5238 = vmatpush3.msra.mxu0 %v6484_v12  ;;  %5252 = vmatprep.subr.mxu1 %v6077_v4  ;;  %v1013_v30 = vsel %vm1012_vm6, 1.0, %v6077_v4  ;;  %v1094_v31 = vsel %vm1093_vm7, 1.0, %v6077_v4 }
 0x193   : > { %5239 = vmatprep.subr.mxu0 %v6077_v4  ;;  %5253 = vmatpush3.msra.mxu1 %v6467_v8 }
 0x194   : > { %5240 = vmatpush3.msra.mxu0 %v6493_v13  ;;  %5254 = vmatprep.subr.mxu1 %v6077_v4 }
 0x195   : > { %5241 = vmatprep.subr.mxu0 %v6077_v4  ;;  %5255 = vmatpush3.msra.mxu1 %v6478_v11  ;;  %v1173_v32 = vpop.permute.xlu1 %1172 }
 0x196   : > { %5242 = vmatpush3.msra.mxu0 %v6501_v15  ;;  %5256 = vmatprep.subr.mxu1 %v6077_v4  ;;  %vm1174_vm8 = vcmp.eq.s32.totalorder %v6526_v19, %v1173_v32 }
 0x197   : > { %5243 = vmatprep.subr.mxu0 %v6077_v4  ;;  %5257 = vmatpush3.msra.mxu1 %v6484_v12  ;;  %v1175_v34 = vsel %vm1174_vm8, 1.0, %v6077_v4 }
 0x198   : > { %5244 = vmatpush3.msra.mxu0 %v6509_v16  ;;  %5258 = vmatprep.subr.mxu1 %v6077_v4 }
 0x199   : > { %5246 = vmatmul.mubr.msk.f32.vlgmr.msra.gmra.mxu0 %vm689_vm1, %v851_v25  ;;  %5259 = vmatpush3.msra.mxu1 %v6493_v13 }
 0x19a   : > { %5267 = vmatprep.subr.mxu0 %v6077_v4  ;;  %5260 = vmatprep.subr.mxu1 %v6077_v4  ;;  %v1254_v33 = vpop.permute.xlu1 %1253 }
 0x19b   : > { %5268 = vmatpush3.msra.mxu0 %v6450_v3  ;;  %5261 = vmatpush3.msra.mxu1 %v6501_v15  ;;  %vm1255_vm9 = vcmp.eq.s32.totalorder %v6526_v19, %v1254_v33 }
 0x19c   : > { %5269 = vmatprep.subr.mxu0 %v6077_v4  ;;  %5262 = vmatprep.subr.mxu1 %v6077_v4  ;;  %v1256_v35 = vsel %vm1255_vm9, 1.0, %v6077_v4 }
 0x19d   : > { %5270 = vmatpush3.msra.mxu0 %v6461_v5  ;;  %5263 = vmatpush3.msra.mxu1 %v6509_v16 }
 0x19e   : > { %5264 = vmatprep.mubr.msk.f32.mxu1 %vm6083_vm0, %v6077_v4  ;;  %5271 = vmatprep.subr.mxu0 %v6077_v4 }
 0x19f   : > { %5265 = vmatmul.mubr.msk.f32.vlgmr.msra.gmra.mxu1 %vm689_vm1, %v932_v27  ;;  %5272 = vmatpush3.msra.mxu0 %v6467_v8 }
 0x1a0   : > { %5286 = vmatprep.subr.mxu1 %v6077_v4  ;;  %5273 = vmatprep.subr.mxu0 %v6077_v4 }
 0x1a1   : > { %5287 = vmatpush3.msra.mxu1 %v6450_v3  ;;  %5274 = vmatpush3.msra.mxu0 %v6478_v11 }
 0x1a2   : > { %5288 = vmatprep.subr.mxu1 %v6077_v4  ;;  %5275 = vmatprep.subr.mxu0 %v6077_v4 }
 0x1a3   : > { %5289 = vmatpush3.msra.mxu1 %v6461_v5  ;;  %5276 = vmatpush3.msra.mxu0 %v6484_v12 }
 0x1a4   : > { %5290 = vmatprep.subr.mxu1 %v6077_v4  ;;  %5277 = vmatprep.subr.mxu0 %v6077_v4 }
 0x1a5   : > { %5291 = vmatpush3.msra.mxu1 %v6467_v8  ;;  %5278 = vmatpush3.msra.mxu0 %v6493_v13 }
 0x1a6   : > { %5292 = vmatprep.subr.mxu1 %v6077_v4  ;;  %5279 = vmatprep.subr.mxu0 %v6077_v4 }
 0x1a7   : > { %5293 = vmatpush3.msra.mxu1 %v6478_v11  ;;  %5280 = vmatpush3.msra.mxu0 %v6501_v15 }
 0x1a8   : > { %5294 = vmatprep.subr.mxu1 %v6077_v4  ;;  %5281 = vmatprep.subr.mxu0 %v6077_v4 }
 0x1a9   : > { %5295 = vmatpush3.msra.mxu1 %v6484_v12  ;;  %5282 = vmatpush3.msra.mxu0 %v6509_v16 }
 0x1aa   : > { %5296 = vmatprep.subr.mxu1 %v6077_v4  ;;  %5283 = vmatprep.mubr.msk.f32.mxu0 %vm6083_vm0, %v6077_v4 }
 0x1ab   : > { %5297 = vmatpush3.msra.mxu1 %v6493_v13  ;;  %5305 = vmatprep.subr.mxu0 %v6077_v4 }
 0x1ac   : > { %5284 = vmatmul.mubr.msk.f32.vlgmr.msra.gmra.mxu0 %vm689_vm1, %v1013_v30  ;;  %5298 = vmatprep.subr.mxu1 %v6077_v4 }
 0x1ad   : > { %5306 = vmatpush3.msra.mxu0 %v6450_v3  ;;  %5299 = vmatpush3.msra.mxu1 %v6501_v15 }
 0x1ae   : > { %5307 = vmatprep.subr.mxu0 %v6077_v4  ;;  %5300 = vmatprep.subr.mxu1 %v6077_v4 }
 0x1af   : > { %5308 = vmatpush3.msra.mxu0 %v6461_v5  ;;  %5301 = vmatpush3.msra.mxu1 %v6509_v16 }
 0x1b0   : > { %5302 = vmatprep.mubr.msk.f32.mxu1 %vm6083_vm0, %v6077_v4  ;;  %5309 = vmatprep.subr.mxu0 %v6077_v4 }
 0x1b1   : > { %5303 = vmatmul.mubr.msk.f32.vlgmr.msra.gmra.mxu1 %vm689_vm1, %v1094_v31  ;;  %5310 = vmatpush3.msra.mxu0 %v6467_v8 }
 0x1b2   : > { %5324 = vmatprep.subr.mxu1 %v6077_v4  ;;  %5311 = vmatprep.subr.mxu0 %v6077_v4 }
 0x1b3   : > { %5325 = vmatpush3.msra.mxu1 %v6450_v3  ;;  %5312 = vmatpush3.msra.mxu0 %v6478_v11 }
 0x1b4   : > { %5326 = vmatprep.subr.mxu1 %v6077_v4  ;;  %5313 = vmatprep.subr.mxu0 %v6077_v4 }
 0x1b5   : > { %5327 = vmatpush3.msra.mxu1 %v6461_v5  ;;  %5314 = vmatpush3.msra.mxu0 %v6484_v12 }
 0x1b6   : > { %5328 = vmatprep.subr.mxu1 %v6077_v4  ;;  %5315 = vmatprep.subr.mxu0 %v6077_v4 }
 0x1b7   : > { %5329 = vmatpush3.msra.mxu1 %v6467_v8  ;;  %5316 = vmatpush3.msra.mxu0 %v6493_v13 }
 0x1b8   : > { %5330 = vmatprep.subr.mxu1 %v6077_v4  ;;  %5317 = vmatprep.subr.mxu0 %v6077_v4 }
 0x1b9   : > { %5331 = vmatpush3.msra.mxu1 %v6478_v11  ;;  %5318 = vmatpush3.msra.mxu0 %v6501_v15 }
 0x1ba   : > { %5332 = vmatprep.subr.mxu1 %v6077_v4  ;;  %5319 = vmatprep.subr.mxu0 %v6077_v4 }
 0x1bb   : > { %5333 = vmatpush3.msra.mxu1 %v6484_v12  ;;  %5320 = vmatpush3.msra.mxu0 %v6509_v16 }
 0x1bc   : > { %5321 = vmatprep.mubr.msk.f32.mxu0 %vm6083_vm0, %v6077_v4  ;;  %5334 = vmatprep.subr.mxu1 %v6077_v4 }
 0x1bd   : > { %5322 = vmatmul.mubr.msk.f32.vlgmr.msra.gmra.mxu0 %vm689_vm1, %v1175_v34  ;;  %5335 = vmatpush3.msra.mxu1 %v6493_v13 }
 0x1be   : > { %5336 = vmatprep.subr.mxu1 %v6077_v4  ;;  %5340 = vmatprep.mubr.msk.f32.mxu1 %vm6083_vm0, %v6077_v4 }
 0x1bf   : > { %5337 = vmatpush3.msra.mxu1 %v6501_v15 }
 0x1c0   : > { %5338 = vmatprep.subr.mxu1 %v6077_v4 }
 0x1c1   : > { %5339 = vmatpush3.msra.mxu1 %v6509_v16 }
 0x1c2   : > { %5341 = vmatmul.mubr.msk.f32.vlgmr.msra.gmra.mxu1 %vm689_vm1, %v1256_v35 }
 0x249   : > { %v759_v36 = vpop.f32.mrf.mxu0 }
 0x24a   : > { %v763_v37 = vpack.c.bf16 %v759_v36, %v759_v36 }
 0x24b   : > { %v5209_v38 = vpop.f32.mrf.mxu0 }
 0x24c   : > { %765 = vst.msk [vmem:[#allocation2] sm:$0xf] %vm764_vm10, %v763_v37 }
 0x24e   : > { %v840_v39 = vpop.f32.mrf.mxu1 }
 0x24f   : > { %v844_v40 = vpack.c.bf16 %v840_v39, %v840_v39 }
 0x250   : > { %v5228_v41 = vpop.f32.mrf.mxu1 }
 0x251   : > { %846 = vst.msk [vmem:[#allocation2 + $0x4] sm:$0xf] %vm764_vm10, %v844_v40 }
 0x259   : > { %v921_v42 = vpop.f32.mrf.mxu0 }
 0x25a   : > { %v925_v43 = vpack.c.bf16 %v921_v42, %v921_v42 }
 0x25b   : > { %v5247_v44 = vpop.f32.mrf.mxu0 }
 0x25c   : > { %927 = vst.msk [vmem:[#allocation2 + $0x8] sm:$0xf] %vm764_vm10, %v925_v43 }
 0x25f   : > { %v1002_v45 = vpop.f32.mrf.mxu1 }
 0x260   : > { %v1006_v46 = vpack.c.bf16 %v1002_v45, %v1002_v45 }
 0x261   : > { %v5266_v47 = vpop.f32.mrf.mxu1 }
 0x262   : > { %1008 = vst.msk [vmem:[#allocation2 + $0xc] sm:$0xf] %vm764_vm10, %v1006_v46 }
 0x26c   : > { %v1083_v48 = vpop.f32.mrf.mxu0 }
 0x26d   : > { %v1087_v49 = vpack.c.bf16 %v1083_v48, %v1083_v48 }
 0x26e   : > { %v5285_v50 = vpop.f32.mrf.mxu0 }
 0x26f   : > { %1089 = vst.msk [vmem:[#allocation2 + $0x10] sm:$0xf] %vm764_vm10, %v1087_v49 }
 0x271   : > { %v1164_v51 = vpop.f32.mrf.mxu1 }
 0x272   : > { %v1168_v52 = vpack.c.bf16 %v1164_v51, %v1164_v51 }
 0x273   : > { %v5304_v53 = vpop.f32.mrf.mxu1 }
 0x274   : > { %1170 = vst.msk [vmem:[#allocation2 + $0x14] sm:$0xf] %vm764_vm10, %v1168_v52 }
 0x27d   : > { %v1245_v54 = vpop.f32.mrf.mxu0 }
 0x27e   : > { %v1249_v55 = vpack.c.bf16 %v1245_v54, %v1245_v54 }
 0x27f   : > { %v5323_v56 = vpop.f32.mrf.mxu0 }
 0x280   : > { %1251 = vst.msk [vmem:[#allocation2 + $0x18] sm:$0xf] %vm764_vm10, %v1249_v55 }
 0x282   : > { %v1326_v57 = vpop.f32.mrf.mxu1 }
 0x283   : > { %v1330_v58 = vpack.c.bf16 %v1326_v57, %v1326_v57 }
 0x284   : > { %v5342_v59 = vpop.f32.mrf.mxu1 }
 0x285   : > { %1332 = vst.msk [vmem:[#allocation2 + $0x1c] sm:$0xf] %vm764_vm10, %v1330_v58 }
 0x286 PF: > { %v1360_v60 = vld [vmem:[%s6411_s25 + $0xc0] sm:$0xff]  ;;  %v1361_v62 = vld [vmem:[%s6411_s25 + $0xc8] sm:$0xff]  ;;  %v6085_v4 = vmov 0   ;;  %v1362_v11 = vld [vmem:[%s6411_s25 + $0xd0] sm:$0xff]  ;;  %vm1448_vm11 = vcmask 261120   ;;  %p4982_p12 = scmp.ne.s32.totalorder %s6185_s19, 3 }
 0x287   : > { %v1364_v61 = vld [vmem:[%s6411_s25 + $0xe0] sm:$0xff]  ;;  %v1365_v0 = vld [vmem:[%s6411_s25 + $0xe8] sm:$0xff]  ;;  %1484 = vmatprep.mubr.bf16.mxu0 %v6085_v4  ;;  %1525 = vmatprep.mubr.bf16.mxu1 %v6085_v4  ;;  %v1366_v12 = vld [vmem:[%s6411_s25 + $0xf0] sm:$0xff]  ;;  %s7197_s2 = sld [smem:[#allocation43_spill]] (!%p4982_p12) }
 0x288   : > { %v4767_v63 = vcombine.high %v1360_v60, %v1364_v61  ;;  %v4766_v1 = vcombine.low %v1360_v60, %v1364_v61  ;;  %v1352_v2 = vld [vmem:[%s6411_s25 + $0x80] sm:$0xff]  ;;  %v4769_v5 = vcombine.high %v1361_v62, %v1365_v0  ;;  %v4768_v6 = vcombine.low %v1361_v62, %v1365_v0  ;;  %v1353_v8 = vld [vmem:[%s6411_s25 + $0x88] sm:$0xff]  ;;  %v1363_v13 = vld [vmem:[%s6411_s25 + $0xd8] sm:$0xff] }
 0x289   : > { %v1356_v3 = vld [vmem:[%s6411_s25 + $0xa0] sm:$0xff]  ;;  %v1357_v9 = vld [vmem:[%s6411_s25 + $0xa8] sm:$0xff]  ;;  %v1367_v15 = vld [vmem:[%s6411_s25 + $0xf8] sm:$0xff]  ;;  %v4771_v17 = vcombine.high %v1362_v11, %v1366_v12  ;;  %v4770_v24 = vcombine.low %v1362_v11, %v1366_v12 }
 0x28a   : > { %v4759_v7 = vcombine.high %v1352_v2, %v1356_v3  ;;  %1464 = vmatprep.subr.bf16.mxu0 %v4767_v63  ;;  %v4761_v10 = vcombine.high %v1353_v8, %v1357_v9  ;;  %1505 = vmatprep.subr.bf16.mxu1 %v4769_v5  ;;  %v4758_v14 = vcombine.low %v1352_v2, %v1356_v3  ;;  %v1354_v19 = vld [vmem:[%s6411_s25 + $0x90] sm:$0xff]  ;;  %v1355_v21 = vld [vmem:[%s6411_s25 + $0x98] sm:$0xff]  ;;  %v1342_v28 = vld [vmem:[%s6411_s25 + $0x40] sm:$0xff] }
 0x28b   : > { %1465 = vmatpush1.bf16.msra.mxu0 %v4766_v1  ;;  %1506 = vmatpush1.bf16.msra.mxu1 %v4768_v6  ;;  %v4760_v16 = vcombine.low %v1353_v8, %v1357_v9  ;;  %v4773_v18 = vcombine.high %v1363_v13, %v1367_v15  ;;  %v1358_v20 = vld [vmem:[%s6411_s25 + $0xb0] sm:$0xff]  ;;  %v1359_v22 = vld [vmem:[%s6411_s25 + $0xb8] sm:$0xff]  ;;  %v4772_v25 = vcombine.low %v1363_v13, %v1367_v15  ;;  %v1346_v29 = vld [vmem:[%s6411_s25 + $0x60] sm:$0xff] }
 0x28c   : > { %1466 = vmatprep.subr.bf16.mxu0 %v4759_v7  ;;  %1507 = vmatprep.subr.bf16.mxu1 %v4761_v10  ;;  %v1351_v23 = vld [vmem:[#allocation2 + $0x4] sm:$0xf]  ;;  %v4763_v26 = vcombine.high %v1354_v19, %v1358_v20  ;;  %v4765_v27 = vcombine.high %v1355_v21, %v1359_v22  ;;  %v1343_v30 = vld [vmem:[%s6411_s25 + $0x48] sm:$0xff]  ;;  %v4762_v32 = vcombine.low %v1354_v19, %v1358_v20  ;;  %v1334_v36 = vld [vmem:[%s6411_s25] sm:$0xff] }
 0x28d   : > { %v1347_v31 = vld [vmem:[%s6411_s25 + $0x68] sm:$0xff]  ;;  %v4764_v33 = vcombine.low %v1355_v21, %v1359_v22  ;;  %v4787_v34 = vcombine.high %v1342_v28, %v1346_v29  ;;  %v1338_v37 = vld [vmem:[%s6411_s25 + $0x20] sm:$0xff]  ;;  %v4786_v40 = vcombine.low %v1342_v28, %v1346_v29  ;;  %v1344_v44 = vld [vmem:[%s6411_s25 + $0x50] sm:$0xff] }
 0x28e   : > { %v4789_v35 = vcombine.high %v1343_v30, %v1347_v31  ;;  %v1335_v38 = vld [vmem:[%s6411_s25 + $0x8] sm:$0xff]  ;;  %v4788_v41 = vcombine.low %v1343_v30, %v1347_v31  ;;  %v4779_v42 = vcombine.high %v1334_v36, %v1338_v37  ;;  %v1348_v45 = vld [vmem:[%s6411_s25 + $0x70] sm:$0xff]  ;;  %v1345_v46 = vld [vmem:[%s6411_s25 + $0x58] sm:$0xff]  ;;  %v4778_v48 = vcombine.low %v1334_v36, %v1338_v37 }
 0x28f   : > { %1467 = vmatpush1.bf16.msra.mxu0 %v4758_v14  ;;  %1508 = vmatpush1.bf16.msra.mxu1 %v4760_v16  ;;  %v1339_v39 = vld [vmem:[%s6411_s25 + $0x28] sm:$0xff]  ;;  %v1349_v47 = vld [vmem:[%s6411_s25 + $0x78] sm:$0xff]  ;;  %v4791_v50 = vcombine.high %v1344_v44, %v1348_v45  ;;  %v1336_v52 = vld [vmem:[%s6411_s25 + $0x10] sm:$0xff]  ;;  %v4790_v57 = vcombine.low %v1344_v44, %v1348_v45 }
 0x290   : > { %1546 = vmatprep.subr.bf16.mxu0 %v4771_v17  ;;  %1587 = vmatprep.subr.bf16.mxu1 %v4773_v18  ;;  %v4781_v43 = vcombine.high %v1335_v38, %v1339_v39  ;;  %v4780_v49 = vcombine.low %v1335_v38, %v1339_v39  ;;  %v4793_v51 = vcombine.high %v1345_v46, %v1349_v47  ;;  %v1340_v53 = vld [vmem:[%s6411_s25 + $0x30] sm:$0xff]  ;;  %v1337_v54 = vld [vmem:[%s6411_s25 + $0x18] sm:$0xff]  ;;  %v1873_v61 = vld [vmem:[%s6411_s25 + $0x140] sm:$0xff] }
 0x291   : > { %v1341_v55 = vld [vmem:[%s6411_s25 + $0x38] sm:$0xff]  ;;  %v1333_v56 = vld [vmem:[#allocation2] sm:$0xf]  ;;  %v4792_v58 = vcombine.low %v1345_v46, %v1349_v47  ;;  %v4783_v59 = vcombine.high %v1336_v52, %v1340_v53  ;;  %v1877_v62 = vld [vmem:[%s6411_s25 + $0x160] sm:$0xff]  ;;  %v4782_v1 = vcombine.low %v1336_v52, %v1340_v53 }
 0x292   : > { %4774 = vmatmul.mubr.msk.bf16.vlgmr.msra.gmra.mxu0 %vm1448_vm11, %v1351_v23  ;;  %4775 = vmatmul.mubr.msk.bf16.vlgmr.msra.gmra.mxu1 %vm1448_vm11, %v1351_v23  ;;  %v4785_v60 = vcombine.high %v1337_v54, %v1341_v55  ;;  %v1874_v63 = vld [vmem:[%s6411_s25 + $0x148] sm:$0xff]  ;;  %v4784_v2 = vcombine.low %v1337_v54, %v1341_v55  ;;  %v4807_v3 = vcombine.high %v1873_v61, %v1877_v62  ;;  %v1865_v6 = vld [vmem:[%s6411_s25 + $0x100] sm:$0xff]  ;;  %v1875_v14 = vld [vmem:[%s6411_s25 + $0x150] sm:$0xff] }
 0x293   : > { %1547 = vmatpush1.bf16.msra.mxu0 %v4770_v24  ;;  %1588 = vmatpush1.bf16.msra.mxu1 %v4772_v25  ;;  %v1878_v0 = vld [vmem:[%s6411_s25 + $0x168] sm:$0xff]  ;;  %v1869_v7 = vld [vmem:[%s6411_s25 + $0x120] sm:$0xff]  ;;  %v4806_v10 = vcombine.low %v1873_v61, %v1877_v62  ;;  %v1879_v15 = vld [vmem:[%s6411_s25 + $0x170] sm:$0xff] }
 0x294   : > { %1548 = vmatprep.subr.bf16.mxu0 %v4763_v26  ;;  %1589 = vmatprep.subr.bf16.mxu1 %v4765_v27  ;;  %v4809_v5 = vcombine.high %v1874_v63, %v1878_v0  ;;  %v1866_v8 = vld [vmem:[%s6411_s25 + $0x108] sm:$0xff]  ;;  %v4808_v11 = vcombine.low %v1874_v63, %v1878_v0  ;;  %v4799_v12 = vcombine.high %v1865_v6, %v1869_v7  ;;  %v1876_v16 = vld [vmem:[%s6411_s25 + $0x158] sm:$0xff]  ;;  %v1867_v22 = vld [vmem:[%s6411_s25 + $0x110] sm:$0xff] }
 0x295   : > { %1566 = vmatprep.mubr.bf16.mxu0 %v6085_v4  ;;  %1607 = vmatprep.mubr.bf16.mxu1 %v6085_v4  ;;  %v1870_v9 = vld [vmem:[%s6411_s25 + $0x128] sm:$0xff]  ;;  %v1880_v17 = vld [vmem:[%s6411_s25 + $0x178] sm:$0xff]  ;;  %v4798_v18 = vcombine.low %v1865_v6, %v1869_v7  ;;  %v4811_v20 = vcombine.high %v1875_v14, %v1879_v15  ;;  %v4810_v27 = vcombine.low %v1875_v14, %v1879_v15  ;;  %v2146_v31 = vld [vmem:[%s6411_s25 + $0x1c0] sm:$0xff] }
 0x296   : > { %v4801_v13 = vcombine.high %v1866_v8, %v1870_v9  ;;  %v4800_v19 = vcombine.low %v1866_v8, %v1870_v9  ;;  %v4813_v21 = vcombine.high %v1876_v16, %v1880_v17  ;;  %v1868_v24 = vld [vmem:[%s6411_s25 + $0x118] sm:$0xff]  ;;  %v4812_v28 = vcombine.low %v1876_v16, %v1880_v17  ;;  %v2138_v36 = vld [vmem:[%s6411_s25 + $0x180] sm:$0xff]  ;;  %v2148_v44 = vld [vmem:[%s6411_s25 + $0x1d0] sm:$0xff] }
 0x297   : > { %1549 = vmatpush1.bf16.msra.mxu0 %v4762_v32  ;;  %1590 = vmatpush1.bf16.msra.mxu1 %v4764_v33  ;;  %v1872_v25 = vld [vmem:[%s6411_s25 + $0x138] sm:$0xff]  ;;  %v2150_v32 = vld [vmem:[%s6411_s25 + $0x1e0] sm:$0xff]  ;;  %v2147_v33 = vld [vmem:[%s6411_s25 + $0x1c8] sm:$0xff] }
 0x298   : > { %1711 = vmatprep.subr.bf16.mxu0 %v4787_v34  ;;  %1752 = vmatprep.subr.bf16.mxu1 %v4789_v35  ;;  %v1864_v26 = vld [vmem:[#allocation2 + $0x8] sm:$0xf]  ;;  %v4805_v30 = vcombine.high %v1868_v24, %v1872_v25  ;;  %v2151_v34 = vld [vmem:[%s6411_s25 + $0x1e8] sm:$0xff]  ;;  %v2142_v37 = vld [vmem:[%s6411_s25 + $0x1a0] sm:$0xff]  ;;  %v4804_v38 = vcombine.low %v1868_v24, %v1872_v25  ;;  %v4827_v39 = vcombine.high %v2146_v31, %v2150_v32 }
 0x299   : > { %v2152_v45 = vld [vmem:[%s6411_s25 + $0x1f0] sm:$0xff]  ;;  %v4828_v46 = vcombine.low %v2147_v33, %v2151_v34  ;;  %v4819_v47 = vcombine.high %v2138_v36, %v2142_v37  ;;  %v2419_v61 = vld [vmem:[%s6411_s25 + $0x240] sm:$0xff] }
 0x29a   : > { %4776 = vmatmul.mubr.msk.bf16.vlgmr.msra.gmra.mxu0 %vm1448_vm11, %v1351_v23  ;;  %4777 = vmatmul.mubr.msk.bf16.vlgmr.msra.gmra.mxu1 %vm1448_vm11, %v1351_v23  ;;  %v1871_v23 = vld [vmem:[%s6411_s25 + $0x130] sm:$0xff]  ;;  %v4831_v55 = vcombine.high %v2148_v44, %v2152_v45  ;;  %v2423_v62 = vld [vmem:[%s6411_s25 + $0x260] sm:$0xff] }
 0x29b   : > { %1712 = vmatpush1.bf16.msra.mxu0 %v4786_v40  ;;  %1753 = vmatpush1.bf16.msra.mxu1 %v4788_v41  ;;  %v4803_v29 = vcombine.high %v1867_v22, %v1871_v23  ;;  %v4802_v35 = vcombine.low %v1867_v22, %v1871_v23  ;;  %v2139_v40 = vld [vmem:[%s6411_s25 + $0x188] sm:$0xff]  ;;  %v2140_v52 = vld [vmem:[%s6411_s25 + $0x190] sm:$0xff]  ;;  %v2411_v6 = vld [vmem:[%s6411_s25 + $0x200] sm:$0xff]  ;;  %v4847_v9 = vcombine.high %v2419_v61, %v2423_v62 }
 0x29c   : > { %1713 = vmatprep.subr.bf16.mxu0 %v4779_v42  ;;  %1754 = vmatprep.subr.bf16.mxu1 %v4781_v43  ;;  %v2143_v41 = vld [vmem:[%s6411_s25 + $0x1a8] sm:$0xff]  ;;  %v4829_v42 = vcombine.high %v2147_v33, %v2151_v34  ;;  %v4826_v43 = vcombine.low %v2146_v31, %v2150_v32  ;;  %v2144_v53 = vld [vmem:[%s6411_s25 + $0x1b0] sm:$0xff]  ;;  %v2415_v7 = vld [vmem:[%s6411_s25 + $0x220] sm:$0xff] }
 0x29d   : > { %1731 = vmatprep.mubr.bf16.mxu0 %v6085_v4  ;;  %1772 = vmatprep.mubr.bf16.mxu1 %v6085_v4  ;;  %v4820_v54 = vcombine.low %v2139_v40, %v2143_v41  ;;  %v4823_v0 = vcombine.high %v2140_v52, %v2144_v53  ;;  %v2421_v14 = vld [vmem:[%s6411_s25 + $0x250] sm:$0xff]  ;;  %v4839_v17 = vcombine.high %v2411_v6, %v2415_v7  ;;  %v2692_v31 = vld [vmem:[%s6411_s25 + $0x2c0] sm:$0xff] }
 0x29e   : > { %v2425_v15 = vld [vmem:[%s6411_s25 + $0x270] sm:$0xff]  ;;  %v2696_v32 = vld [vmem:[%s6411_s25 + $0x2e0] sm:$0xff] }
 0x29f   : > { %1714 = vmatpush1.bf16.msra.mxu0 %v4778_v48  ;;  %1755 = vmatpush1.bf16.msra.mxu1 %v4780_v49  ;;  %v2149_v48 = vld [vmem:[%s6411_s25 + $0x1d8] sm:$0xff]  ;;  %v2413_v22 = vld [vmem:[%s6411_s25 + $0x210] sm:$0xff]  ;;  %v4851_v25 = vcombine.high %v2421_v14, %v2425_v15 }
 0x2a0   : > { %1793 = vmatprep.subr.bf16.mxu0 %v4791_v50  ;;  %1834 = vmatprep.subr.bf16.mxu1 %v4793_v51  ;;  %v2153_v49 = vld [vmem:[%s6411_s25 + $0x1f8] sm:$0xff]  ;;  %v4821_v50 = vcombine.high %v2139_v40, %v2143_v41  ;;  %v4818_v51 = vcombine.low %v2138_v36, %v2142_v37  ;;  %v2417_v23 = vld [vmem:[%s6411_s25 + $0x230] sm:$0xff]  ;;  %v2697_v36 = vld [vmem:[%s6411_s25 + $0x2e8] sm:$0xff] }
 0x2a1   : > { %v4832_v63 = vcombine.low %v2149_v48, %v2153_v49  ;;  %v4843_v34 = vcombine.high %v2413_v22, %v2417_v23  ;;  %v2688_v40 = vld [vmem:[%s6411_s25 + $0x2a0] sm:$0xff] }
 0x2a2   : > { %4794 = vmatmul.mubr.msk.bf16.vlgmr.msra.gmra.mxu0 %vm1448_vm11, %v1333_v56  ;;  %4795 = vmatmul.mubr.msk.bf16.vlgmr.msra.gmra.mxu1 %vm1448_vm11, %v1333_v56 }
 0x2a3   : > { %1794 = vmatpush1.bf16.msra.mxu0 %v4790_v57  ;;  %1835 = vmatpush1.bf16.msra.mxu1 %v4792_v58  ;;  %v2145_v57 = vld [vmem:[%s6411_s25 + $0x1b8] sm:$0xff] }
 0x2a4   : > { %1795 = vmatprep.subr.bf16.mxu0 %v4783_v59  ;;  %1836 = vmatprep.subr.bf16.mxu1 %v4785_v60  ;;  %v2137_v58 = vld [vmem:[#allocation2 + $0xc] sm:$0xf]  ;;  %v4833_v59 = vcombine.high %v2149_v48, %v2153_v49  ;;  %v4830_v60 = vcombine.low %v2148_v44, %v2152_v45  ;;  %v2689_v44 = vld [vmem:[%s6411_s25 + $0x2a8] sm:$0xff]  ;;  %v2698_v48 = vld [vmem:[%s6411_s25 + $0x2f0] sm:$0xff] }
 0x2a5   : > { %1813 = vmatprep.mubr.bf16.mxu0 %v6085_v4  ;;  %1854 = vmatprep.mubr.bf16.mxu1 %v6085_v4 }
 0x2a7   : > { %1796 = vmatpush1.bf16.msra.mxu0 %v4782_v1  ;;  %1837 = vmatpush1.bf16.msra.mxu1 %v4784_v2  ;;  %v2420_v1 = vld [vmem:[%s6411_s25 + $0x248] sm:$0xff] }
 0x2a8   : > { %1976 = vmatprep.subr.bf16.mxu0 %v4807_v3  ;;  %2017 = vmatprep.subr.bf16.mxu1 %v4809_v5  ;;  %v2424_v2 = vld [vmem:[%s6411_s25 + $0x268] sm:$0xff]  ;;  %v4822_v5 = vcombine.low %v2140_v52, %v2144_v53  ;;  %v2699_v52 = vld [vmem:[%s6411_s25 + $0x2f8] sm:$0xff] }
 0x2a9   : > { %v4848_v16 = vcombine.low %v2420_v1, %v2424_v2 }
 0x2aa   : > { %4796 = vmatmul.mubr.msk.bf16.vlgmr.msra.gmra.mxu0 %vm1448_vm11, %v1333_v56  ;;  %4797 = vmatmul.mubr.msk.bf16.vlgmr.msra.gmra.mxu1 %vm1448_vm11, %v1333_v56  ;;  %v2141_v56 = vld [vmem:[%s6411_s25 + $0x198] sm:$0xff] }
 0x2ab   : > { %1977 = vmatpush1.bf16.msra.mxu0 %v4806_v10  ;;  %2018 = vmatpush1.bf16.msra.mxu1 %v4808_v11  ;;  %v4825_v3 = vcombine.high %v2141_v56, %v2145_v57  ;;  %v4824_v8 = vcombine.low %v2141_v56, %v2145_v57  ;;  %v2412_v10 = vld [vmem:[%s6411_s25 + $0x208] sm:$0xff]  ;;  %v2690_v56 = vld [vmem:[%s6411_s25 + $0x2b0] sm:$0xff] }
 0x2ac   : > { %1978 = vmatprep.subr.bf16.mxu0 %v4799_v12  ;;  %2019 = vmatprep.subr.bf16.mxu1 %v4801_v13  ;;  %v2416_v11 = vld [vmem:[%s6411_s25 + $0x228] sm:$0xff]  ;;  %v4849_v12 = vcombine.high %v2420_v1, %v2424_v2  ;;  %v4846_v13 = vcombine.low %v2419_v61, %v2423_v62  ;;  %v2683_v62 = vld [vmem:[#allocation2 + $0x14] sm:$0xf] }
 0x2ad   : > { %1996 = vmatprep.mubr.bf16.mxu0 %v6085_v4  ;;  %2037 = vmatprep.mubr.bf16.mxu1 %v6085_v4  ;;  %v4840_v24 = vcombine.low %v2412_v10, %v2416_v11 }
 0x2af   : > { %1979 = vmatpush1.bf16.msra.mxu0 %v4798_v18  ;;  %2020 = vmatpush1.bf16.msra.mxu1 %v4800_v19  ;;  %v2422_v18 = vld [vmem:[%s6411_s25 + $0x258] sm:$0xff] }
 0x2b0   : > { %2058 = vmatprep.subr.bf16.mxu0 %v4811_v20  ;;  %2099 = vmatprep.subr.bf16.mxu1 %v4813_v21  ;;  %v2426_v19 = vld [vmem:[%s6411_s25 + $0x278] sm:$0xff]  ;;  %v4841_v20 = vcombine.high %v2412_v10, %v2416_v11  ;;  %v4838_v21 = vcombine.low %v2411_v6, %v2415_v7  ;;  %v2966_v6 = vld [vmem:[%s6411_s25 + $0x348] sm:$0xff] }
 0x2b1   : > { %v4852_v33 = vcombine.low %v2422_v18, %v2426_v19  ;;  %v2970_v7 = vld [vmem:[%s6411_s25 + $0x368] sm:$0xff] }
 0x2b2   : > { %4814 = vmatmul.mubr.msk.bf16.vlgmr.msra.gmra.mxu0 %vm1448_vm11, %v1864_v26  ;;  %4815 = vmatmul.mubr.msk.bf16.vlgmr.msra.gmra.mxu1 %vm1448_vm11, %v1864_v26  ;;  %v4889_v11 = vcombine.high %v2966_v6, %v2970_v7 }
 0x2b3   : > { %2059 = vmatpush1.bf16.msra.mxu0 %v4810_v27  ;;  %2100 = vmatpush1.bf16.msra.mxu1 %v4812_v28  ;;  %v2418_v27 = vld [vmem:[%s6411_s25 + $0x238] sm:$0xff]  ;;  %v2410_v28 = vld [vmem:[#allocation2 + $0x10] sm:$0xf] }
 0x2b4   : > { %2060 = vmatprep.subr.bf16.mxu0 %v4803_v29  ;;  %2101 = vmatprep.subr.bf16.mxu1 %v4805_v30  ;;  %v4853_v29 = vcombine.high %v2422_v18, %v2426_v19  ;;  %v4850_v30 = vcombine.low %v2421_v14, %v2425_v15  ;;  %v2958_v14 = vld [vmem:[%s6411_s25 + $0x308] sm:$0xff] }
 0x2b5   : > { %2078 = vmatprep.mubr.bf16.mxu0 %v6085_v4  ;;  %2119 = vmatprep.mubr.bf16.mxu1 %v6085_v4  ;;  %v2962_v15 = vld [vmem:[%s6411_s25 + $0x328] sm:$0xff] }
 0x2b6   : > { %v4881_v19 = vcombine.high %v2958_v14, %v2962_v15 }
 0x2b7   : > { %2061 = vmatpush1.bf16.msra.mxu0 %v4802_v35  ;;  %2102 = vmatpush1.bf16.msra.mxu1 %v4804_v38  ;;  %v2693_v35 = vld [vmem:[%s6411_s25 + $0x2c8] sm:$0xff]  ;;  %v4842_v38 = vcombine.low %v2413_v22, %v2417_v23  ;;  %v2968_v22 = vld [vmem:[%s6411_s25 + $0x358] sm:$0xff] }
 0x2b8   : > { %2249 = vmatprep.subr.bf16.mxu0 %v4827_v39  ;;  %2290 = vmatprep.subr.bf16.mxu1 %v4829_v42  ;;  %v2684_v39 = vld [vmem:[%s6411_s25 + $0x280] sm:$0xff]  ;;  %v4867_v42 = vcombine.high %v2692_v31, %v2696_v32  ;;  %v4869_v45 = vcombine.high %v2693_v35, %v2697_v36  ;;  %v4868_v49 = vcombine.low %v2693_v35, %v2697_v36  ;;  %v2972_v23 = vld [vmem:[%s6411_s25 + $0x378] sm:$0xff] }
 0x2ba   : > { %4816 = vmatmul.mubr.msk.bf16.vlgmr.msra.gmra.mxu0 %vm1448_vm11, %v1864_v26  ;;  %4817 = vmatmul.mubr.msk.bf16.vlgmr.msra.gmra.mxu1 %vm1448_vm11, %v1864_v26  ;;  %v2414_v26 = vld [vmem:[%s6411_s25 + $0x218] sm:$0xff] }
 0x2bb   : > { %2250 = vmatpush1.bf16.msra.mxu0 %v4826_v43  ;;  %2291 = vmatpush1.bf16.msra.mxu1 %v4828_v46  ;;  %v4845_v37 = vcombine.high %v2414_v26, %v2418_v27  ;;  %v4844_v41 = vcombine.low %v2414_v26, %v2418_v27  ;;  %v2685_v43 = vld [vmem:[%s6411_s25 + $0x288] sm:$0xff]  ;;  %v4866_v46 = vcombine.low %v2692_v31, %v2696_v32  ;;  %v2964_v31 = vld [vmem:[%s6411_s25 + $0x338] sm:$0xff] }
 0x2bc   : > { %2251 = vmatprep.subr.bf16.mxu0 %v4819_v47  ;;  %2292 = vmatprep.subr.bf16.mxu1 %v4821_v50  ;;  %v2694_v47 = vld [vmem:[%s6411_s25 + $0x2d0] sm:$0xff]  ;;  %v4859_v50 = vcombine.high %v2684_v39, %v2688_v40  ;;  %v4861_v53 = vcombine.high %v2685_v43, %v2689_v44  ;;  %v4860_v57 = vcombine.low %v2685_v43, %v2689_v44  ;;  %v2956_v32 = vld [vmem:[#allocation2 + $0x18] sm:$0xf] }
 0x2bd   : > { %2269 = vmatprep.mubr.bf16.mxu0 %v6085_v4  ;;  %2310 = vmatprep.mubr.bf16.mxu1 %v6085_v4  ;;  %v4893_v27 = vcombine.high %v2968_v22, %v2972_v23 }
 0x2bf   : > { %2252 = vmatpush1.bf16.msra.mxu0 %v4818_v51  ;;  %2293 = vmatpush1.bf16.msra.mxu1 %v4820_v54  ;;  %v2695_v51 = vld [vmem:[%s6411_s25 + $0x2d8] sm:$0xff]  ;;  %v4858_v54 = vcombine.low %v2684_v39, %v2688_v40  ;;  %v3239_v39 = vld [vmem:[%s6411_s25 + $0x3c8] sm:$0xff] }
 0x2c0   : > { %2331 = vmatprep.subr.bf16.mxu0 %v4831_v55  ;;  %2372 = vmatprep.subr.bf16.mxu1 %v4833_v59  ;;  %v2686_v55 = vld [vmem:[%s6411_s25 + $0x290] sm:$0xff]  ;;  %v2687_v59 = vld [vmem:[%s6411_s25 + $0x298] sm:$0xff]  ;;  %v4873_v61 = vcombine.high %v2695_v51, %v2699_v52  ;;  %v3243_v40 = vld [vmem:[%s6411_s25 + $0x3e8] sm:$0xff] }
 0x2c1   : > { %v4863_v1 = vcombine.high %v2686_v55, %v2690_v56  ;;  %v4909_v44 = vcombine.high %v3239_v39, %v3243_v40 }
 0x2c2   : > { %4834 = vmatmul.mubr.msk.bf16.vlgmr.msra.gmra.mxu0 %vm1448_vm11, %v2137_v58  ;;  %4835 = vmatmul.mubr.msk.bf16.vlgmr.msra.gmra.mxu1 %vm1448_vm11, %v2137_v58 }
 0x2c3   : > { %2332 = vmatpush1.bf16.msra.mxu0 %v4830_v60  ;;  %2373 = vmatpush1.bf16.msra.mxu1 %v4832_v63  ;;  %v2691_v60 = vld [vmem:[%s6411_s25 + $0x2b8] sm:$0xff]  ;;  %v4870_v63 = vcombine.low %v2694_v47, %v2698_v48 }
 0x2c4   : > { %2333 = vmatprep.subr.bf16.mxu0 %v4823_v0  ;;  %2374 = vmatprep.subr.bf16.mxu1 %v4825_v3  ;;  %v4872_v0 = vcombine.low %v2695_v51, %v2699_v52  ;;  %v4865_v2 = vcombine.high %v2687_v59, %v2691_v60  ;;  %v2965_v3 = vld [vmem:[%s6411_s25 + $0x340] sm:$0xff] }
 0x2c5   : > { %2351 = vmatprep.mubr.bf16.mxu0 %v6085_v4  ;;  %2392 = vmatprep.mubr.bf16.mxu1 %v6085_v4 }
 0x2c7   : > { %2334 = vmatpush1.bf16.msra.mxu0 %v4822_v5  ;;  %2375 = vmatpush1.bf16.msra.mxu1 %v4824_v8  ;;  %v2969_v5 = vld [vmem:[%s6411_s25 + $0x360] sm:$0xff]  ;;  %v4862_v8 = vcombine.low %v2686_v55, %v2690_v56  ;;  %v3241_v55 = vld [vmem:[%s6411_s25 + $0x3d8] sm:$0xff] }
 0x2c8   : > { %2522 = vmatprep.subr.bf16.mxu0 %v4847_v9  ;;  %2563 = vmatprep.subr.bf16.mxu1 %v4849_v12  ;;  %v4864_v9 = vcombine.low %v2687_v59, %v2691_v60  ;;  %v4887_v10 = vcombine.high %v2965_v3, %v2969_v5  ;;  %v2957_v12 = vld [vmem:[%s6411_s25 + $0x300] sm:$0xff]  ;;  %v3245_v56 = vld [vmem:[%s6411_s25 + $0x3f8] sm:$0xff] }
 0x2c9   : > { %v4913_v60 = vcombine.high %v3241_v55, %v3245_v56 }
 0x2ca   : > { %4836 = vmatmul.mubr.msk.bf16.vlgmr.msra.gmra.mxu0 %vm1448_vm11, %v2137_v58  ;;  %4837 = vmatmul.mubr.msk.bf16.vlgmr.msra.gmra.mxu1 %vm1448_vm11, %v2137_v58  ;;  %v4871_v58 = vcombine.high %v2694_v47, %v2698_v48  ;;  %v3231_v47 = vld [vmem:[%s6411_s25 + $0x388] sm:$0xff] }
 0x2cb   : > { %2523 = vmatpush1.bf16.msra.mxu0 %v4846_v13  ;;  %2564 = vmatpush1.bf16.msra.mxu1 %v4848_v16  ;;  %v2961_v13 = vld [vmem:[%s6411_s25 + $0x320] sm:$0xff]  ;;  %v4886_v16 = vcombine.low %v2965_v3, %v2969_v5  ;;  %v3235_v48 = vld [vmem:[%s6411_s25 + $0x3a8] sm:$0xff]  ;;  %v4912_v3 = vcombine.low %v3241_v55, %v3245_v56 }
 0x2cc   : > { %2524 = vmatprep.subr.bf16.mxu0 %v4839_v17  ;;  %2565 = vmatprep.subr.bf16.mxu1 %v4841_v20  ;;  %v4888_v17 = vcombine.low %v2966_v6, %v2970_v7  ;;  %v4879_v18 = vcombine.high %v2957_v12, %v2961_v13  ;;  %v2967_v20 = vld [vmem:[%s6411_s25 + $0x350] sm:$0xff]  ;;  %v4901_v52 = vcombine.high %v3231_v47, %v3235_v48 }
 0x2cd   : > { %2542 = vmatprep.mubr.bf16.mxu0 %v6085_v4  ;;  %2583 = vmatprep.mubr.bf16.mxu1 %v6085_v4 }
 0x2cf   : > { %2525 = vmatpush1.bf16.msra.mxu0 %v4838_v21  ;;  %2566 = vmatpush1.bf16.msra.mxu1 %v4840_v24  ;;  %v2971_v21 = vld [vmem:[%s6411_s25 + $0x370] sm:$0xff]  ;;  %v4878_v24 = vcombine.low %v2957_v12, %v2961_v13  ;;  %v5575_v12 = vld [vmem:[%s6419_s5 + $0xb8] sm:$0xff]   ;;  %v5577_v13 = vld [vmem:[%s6419_s5 + $0xf0] sm:$0xff]  }
 0x2d0   : > { %2604 = vmatprep.subr.bf16.mxu0 %v4851_v25  ;;  %2645 = vmatprep.subr.bf16.mxu1 %v4853_v29  ;;  %v4880_v25 = vcombine.low %v2958_v14, %v2962_v15  ;;  %v4891_v26 = vcombine.high %v2967_v20, %v2971_v21  ;;  %v2963_v29 = vld [vmem:[%s6411_s25 + $0x330] sm:$0xff]  ;;  %v5578_v14 = vld [vmem:[%s6419_s5 + $0x30] sm:$0xff]  }
 0x2d1   : > { %v5579_v15 = vld [vmem:[%s6419_s5 + $0xb0] sm:$0xff]  }
 0x2d2   : > { %4854 = vmatmul.mubr.msk.bf16.vlgmr.msra.gmra.mxu0 %vm1448_vm11, %v2410_v28  ;;  %4855 = vmatmul.mubr.msk.bf16.vlgmr.msra.gmra.mxu1 %vm1448_vm11, %v2410_v28 }
 0x2d3   : > { %2605 = vmatpush1.bf16.msra.mxu0 %v4850_v30  ;;  %2646 = vmatpush1.bf16.msra.mxu1 %v4852_v33  ;;  %v2960_v30 = vld [vmem:[%s6411_s25 + $0x318] sm:$0xff]  ;;  %v4890_v33 = vcombine.low %v2967_v20, %v2971_v21  ;;  %v5584_v20 = vld [vmem:[%s6419_s5 + $0x60] sm:$0xff]  }
 0x2d4   : > { %2606 = vmatprep.subr.bf16.mxu0 %v4843_v34  ;;  %2647 = vmatprep.subr.bf16.mxu1 %v4845_v37  ;;  %v4892_v34 = vcombine.low %v2968_v22, %v2972_v23  ;;  %v4885_v36 = vcombine.high %v2960_v30, %v2964_v31  ;;  %v3238_v37 = vld [vmem:[%s6411_s25 + $0x3c0] sm:$0xff]  ;;  %v5585_v21 = vld [vmem:[%s6419_s5 + $0xe0] sm:$0xff]  }
 0x2d5   : > { %2624 = vmatprep.mubr.bf16.mxu0 %v6085_v4  ;;  %2665 = vmatprep.mubr.bf16.mxu1 %v6085_v4  ;;  %v5586_v22 = vld [vmem:[%s6419_s5 + $0x20] sm:$0xff]  }
 0x2d6   : > { %v5587_v23 = vld [vmem:[%s6419_s5 + $0xa0] sm:$0xff]  }
 0x2d7   : > { %2607 = vmatpush1.bf16.msra.mxu0 %v4842_v38  ;;  %2648 = vmatpush1.bf16.msra.mxu1 %v4844_v41  ;;  %v3242_v38 = vld [vmem:[%s6411_s25 + $0x3e0] sm:$0xff] }
 0x2d8   : > { %2795 = vmatprep.subr.bf16.mxu0 %v4867_v42  ;;  %2836 = vmatprep.subr.bf16.mxu1 %v4869_v45  ;;  %v4884_v42 = vcombine.low %v2960_v30, %v2964_v31  ;;  %v4907_v43 = vcombine.high %v3238_v37, %v3242_v38  ;;  %v3230_v45 = vld [vmem:[%s6411_s25 + $0x380] sm:$0xff] }
 0x2d9   : > { %v5594_v30 = vld [vmem:[%s6419_s5 + $0x10] sm:$0xff]  }
 0x2da   : > { %4856 = vmatmul.mubr.msk.bf16.vlgmr.msra.gmra.mxu0 %vm1448_vm11, %v2410_v28  ;;  %4857 = vmatmul.mubr.msk.bf16.vlgmr.msra.gmra.mxu1 %vm1448_vm11, %v2410_v28  ;;  %v2959_v28 = vld [vmem:[%s6411_s25 + $0x310] sm:$0xff]  ;;  %v5595_v31 = vld [vmem:[%s6419_s5 + $0x90] sm:$0xff]  }
 0x2db   : > { %2796 = vmatpush1.bf16.msra.mxu0 %v4866_v46  ;;  %2837 = vmatpush1.bf16.msra.mxu1 %v4868_v49  ;;  %v4883_v35 = vcombine.high %v2959_v28, %v2963_v29  ;;  %v4882_v41 = vcombine.low %v2959_v28, %v2963_v29  ;;  %v3234_v46 = vld [vmem:[%s6411_s25 + $0x3a0] sm:$0xff]  ;;  %v4906_v49 = vcombine.low %v3238_v37, %v3242_v38  ;;  %v5601_v37 = vld [vmem:[%s6419_s5 + $0xc0] sm:$0xff]  }
 0x2dc   : > { %2797 = vmatprep.subr.bf16.mxu0 %v4859_v50  ;;  %2838 = vmatprep.subr.bf16.mxu1 %v4861_v53  ;;  %v4908_v50 = vcombine.low %v3239_v39, %v3243_v40  ;;  %v4899_v51 = vcombine.high %v3230_v45, %v3234_v46  ;;  %v3240_v53 = vld [vmem:[%s6411_s25 + $0x3d0] sm:$0xff]  ;;  %v5592_v28 = vld [vmem:[%s6419_s5 + $0x50] sm:$0xff]   ;;  %v5604_v40 = vld [vmem:[%s6419_s5 + $0x178] sm:$0xff]  }
 0x2dd   : > { %2815 = vmatprep.mubr.bf16.mxu0 %v6085_v4  ;;  %2856 = vmatprep.mubr.bf16.mxu1 %v6085_v4  ;;  %v5593_v29 = vld [vmem:[%s6419_s5 + $0xd0] sm:$0xff]   ;;  %v5602_v38 = vld [vmem:[%s6419_s5] sm:$0xff]  }
 0x2de   : > { %v5603_v39 = vld [vmem:[%s6419_s5 + $0x80] sm:$0xff]  }
 0x2df   : > { %2798 = vmatpush1.bf16.msra.mxu0 %v4858_v54  ;;  %2839 = vmatpush1.bf16.msra.mxu1 %v4860_v57  ;;  %v3244_v54 = vld [vmem:[%s6411_s25 + $0x3f0] sm:$0xff]  ;;  %v4898_v57 = vcombine.low %v3230_v45, %v3234_v46 }
 0x2e0   : > { %2877 = vmatprep.subr.bf16.mxu0 %v4871_v58  ;;  %2918 = vmatprep.subr.bf16.mxu1 %v4873_v61  ;;  %v4900_v58 = vcombine.low %v3231_v47, %v3235_v48  ;;  %v4911_v59 = vcombine.high %v3240_v53, %v3244_v54  ;;  %v3232_v61 = vld [vmem:[%s6411_s25 + $0x390] sm:$0xff] }
 0x2e2   : > { %4874 = vmatmul.mubr.msk.bf16.vlgmr.msra.gmra.mxu0 %vm1448_vm11, %v2683_v62  ;;  %4875 = vmatmul.mubr.msk.bf16.vlgmr.msra.gmra.mxu1 %vm1448_vm11, %v2683_v62 }
 0x2e3   : > { %2878 = vmatpush1.bf16.msra.mxu0 %v4870_v63  ;;  %2919 = vmatpush1.bf16.msra.mxu1 %v4872_v0  ;;  %v3233_v63 = vld [vmem:[%s6411_s25 + $0x398] sm:$0xff] }
 0x2e4   : > { %2879 = vmatprep.subr.bf16.mxu0 %v4863_v1  ;;  %2920 = vmatprep.subr.bf16.mxu1 %v4865_v2  ;;  %v3237_v0 = vld [vmem:[%s6411_s25 + $0x3b8] sm:$0xff]  ;;  %v3229_v1 = vld [vmem:[#allocation2 + $0x1c] sm:$0xf]  ;;  %v4910_v2 = vcombine.low %v3240_v53, %v3244_v54 }
 0x2e5   : > { %2897 = vmatprep.mubr.bf16.mxu0 %v6085_v4  ;;  %2938 = vmatprep.mubr.bf16.mxu1 %v6085_v4  ;;  %v4905_v6 = vcombine.high %v3233_v63, %v3237_v0 }
 0x2e7   : > { %2880 = vmatpush1.bf16.msra.mxu0 %v4862_v8  ;;  %2921 = vmatpush1.bf16.msra.mxu1 %v4864_v9  ;;  %v4904_v8 = vcombine.low %v3233_v63, %v3237_v0  ;;  %v5572_v9 = vld [vmem:[%s6419_s5 + $0x78] sm:$0xff]  }
 0x2e8   : > { %3068 = vmatprep.subr.bf16.mxu0 %v4887_v10  ;;  %3109 = vmatprep.subr.bf16.mxu1 %v4889_v11  ;;  %v5573_v10 = vld [vmem:[%s6419_s5 + $0xf8] sm:$0xff]  }
 0x2e9   : > { %v5574_v11 = vld [vmem:[%s6419_s5 + $0x38] sm:$0xff]  }
 0x2ea   : > { %4876 = vmatmul.mubr.msk.bf16.vlgmr.msra.gmra.mxu0 %vm1448_vm11, %v2683_v62  ;;  %4877 = vmatmul.mubr.msk.bf16.vlgmr.msra.gmra.mxu1 %vm1448_vm11, %v2683_v62  ;;  %v3236_v62 = vld [vmem:[%s6411_s25 + $0x3b0] sm:$0xff] }
 0x2eb   : > { %3069 = vmatpush1.bf16.msra.mxu0 %v4886_v16  ;;  %3110 = vmatpush1.bf16.msra.mxu1 %v4888_v17  ;;  %v4903_v5 = vcombine.high %v3232_v61, %v3236_v62  ;;  %v4902_v7 = vcombine.low %v3232_v61, %v3236_v62  ;;  %v5580_v16 = vld [vmem:[%s6419_s5 + $0x68] sm:$0xff]  }
 0x2ec   : > { %3070 = vmatprep.subr.bf16.mxu0 %v4879_v18  ;;  %3111 = vmatprep.subr.bf16.mxu1 %v4881_v19  ;;  %v5581_v17 = vld [vmem:[%s6419_s5 + $0xe8] sm:$0xff]  }
 0x2ed   : > { %3088 = vmatprep.mubr.bf16.mxu0 %v6085_v4  ;;  %3129 = vmatprep.mubr.bf16.mxu1 %v6085_v4  ;;  %v5582_v18 = vld [vmem:[%s6419_s5 + $0x28] sm:$0xff]  }
 0x2ee   : > { %v5583_v19 = vld [vmem:[%s6419_s5 + $0xa8] sm:$0xff]  }
 0x2ef   : > { %3071 = vmatpush1.bf16.msra.mxu0 %v4878_v24  ;;  %3112 = vmatpush1.bf16.msra.mxu1 %v4880_v25  ;;  %v5588_v24 = vld [vmem:[%s6419_s5 + $0x58] sm:$0xff]  }
 0x2f0   : > { %3150 = vmatprep.subr.bf16.mxu0 %v4891_v26  ;;  %3191 = vmatprep.subr.bf16.mxu1 %v4893_v27  ;;  %v5589_v25 = vld [vmem:[%s6419_s5 + $0xd8] sm:$0xff]  }
 0x2f1   : > { %v5590_v26 = vld [vmem:[%s6419_s5 + $0x18] sm:$0xff]  }
 0x2f2   : > { %4894 = vmatmul.mubr.msk.bf16.vlgmr.msra.gmra.mxu0 %vm1448_vm11, %v2956_v32  ;;  %4895 = vmatmul.mubr.msk.bf16.vlgmr.msra.gmra.mxu1 %vm1448_vm11, %v2956_v32  ;;  %v5591_v27 = vld [vmem:[%s6419_s5 + $0x98] sm:$0xff]  }
 0x2f3   : > { %3151 = vmatpush1.bf16.msra.mxu0 %v4890_v33  ;;  %3192 = vmatpush1.bf16.msra.mxu1 %v4892_v34  ;;  %v5597_v33 = vld [vmem:[%s6419_s5 + $0xc8] sm:$0xff]  }
 0x2f4   : > { %3152 = vmatprep.subr.bf16.mxu0 %v4883_v35  ;;  %3193 = vmatprep.subr.bf16.mxu1 %v4885_v36  ;;  %v5598_v34 = vld [vmem:[%s6419_s5 + $0x8] sm:$0xff]   ;;  %v5600_v36 = vld [vmem:[%s6419_s5 + $0x40] sm:$0xff]  }
 0x2f5   : > { %3170 = vmatprep.mubr.bf16.mxu0 %v6085_v4  ;;  %3211 = vmatprep.mubr.bf16.mxu1 %v6085_v4  ;;  %v5599_v35 = vld [vmem:[%s6419_s5 + $0x88] sm:$0xff]  }
 0x2f7   : > { %3153 = vmatpush1.bf16.msra.mxu0 %v4882_v41  ;;  %3194 = vmatpush1.bf16.msra.mxu1 %v4884_v42  ;;  %v5605_v41 = vld [vmem:[%s6419_s5 + $0x1f8] sm:$0xff]  }
 0x2f8   : > { %3341 = vmatprep.subr.bf16.mxu0 %v4907_v43  ;;  %3382 = vmatprep.subr.bf16.mxu1 %v4909_v44 }
 0x2fa   : > { %4896 = vmatmul.mubr.msk.bf16.vlgmr.msra.gmra.mxu0 %vm1448_vm11, %v2956_v32  ;;  %4897 = vmatmul.mubr.msk.bf16.vlgmr.msra.gmra.mxu1 %vm1448_vm11, %v2956_v32  ;;  %v5596_v32 = vld [vmem:[%s6419_s5 + $0x48] sm:$0xff]  }
 0x2fb   : > { %3342 = vmatpush1.bf16.msra.mxu0 %v4906_v49  ;;  %3383 = vmatpush1.bf16.msra.mxu1 %v4908_v50 }
 0x2fc   : > { %3343 = vmatprep.subr.bf16.mxu0 %v4899_v51  ;;  %3384 = vmatprep.subr.bf16.mxu1 %v4901_v52 }
 0x2fd   : > { %3361 = vmatprep.mubr.bf16.mxu0 %v6085_v4  ;;  %3402 = vmatprep.mubr.bf16.mxu1 %v6085_v4 }
 0x2ff   : > { %3344 = vmatpush1.bf16.msra.mxu0 %v4898_v57  ;;  %3385 = vmatpush1.bf16.msra.mxu1 %v4900_v58 }
 0x300   : > { %3423 = vmatprep.subr.bf16.mxu0 %v4911_v59  ;;  %3464 = vmatprep.subr.bf16.mxu1 %v4913_v60 }
 0x302   : > { %4914 = vmatmul.mubr.msk.bf16.vlgmr.msra.gmra.mxu0 %vm1448_vm11, %v3229_v1  ;;  %4915 = vmatmul.mubr.msk.bf16.vlgmr.msra.gmra.mxu1 %vm1448_vm11, %v3229_v1 }
 0x303   : > { %3424 = vmatpush1.bf16.msra.mxu0 %v4910_v2  ;;  %3465 = vmatpush1.bf16.msra.mxu1 %v4912_v3 }
 0x304   : > { %3425 = vmatprep.subr.bf16.mxu0 %v4903_v5  ;;  %3466 = vmatprep.subr.bf16.mxu1 %v4905_v6 }
 0x305   : > { %3443 = vmatprep.mubr.bf16.mxu0 %v6085_v4  ;;  %3484 = vmatprep.mubr.bf16.mxu1 %v6085_v4  ;;  %v5576_v4 = vld [vmem:[%s6419_s5 + $0x70] sm:$0xff]  }
 0x307   : > { %3426 = vmatpush1.bf16.msra.mxu0 %v4902_v7  ;;  %3467 = vmatpush1.bf16.msra.mxu1 %v4904_v8 }
 0x308   : > { %5077 = vmatprep.subr.bf16.mxu0 %v5572_v9  ;;  %5099 = vmatprep.subr.bf16.mxu1 %v5573_v10 }
 0x30a   : > { %4916 = vmatmul.mubr.msk.bf16.vlgmr.msra.gmra.mxu0 %vm1448_vm11, %v3229_v1  ;;  %4917 = vmatmul.mubr.msk.bf16.vlgmr.msra.gmra.mxu1 %vm1448_vm11, %v3229_v1 }
 0x30b   : > { %5078 = vmatpush3.bf16.msra.mxu0 %v5574_v11  ;;  %5100 = vmatpush3.bf16.msra.mxu1 %v5575_v12 }
 0x30c   : > { %5079 = vmatprep.subr.bf16.mxu0 %v5576_v4  ;;  %5101 = vmatprep.subr.bf16.mxu1 %v5577_v13 }
 0x30f   : > { %5080 = vmatpush3.bf16.msra.mxu0 %v5578_v14  ;;  %5102 = vmatpush3.bf16.msra.mxu1 %v5579_v15 }
 0x310   : > { %5081 = vmatprep.subr.bf16.mxu0 %v5580_v16  ;;  %5103 = vmatprep.subr.bf16.mxu1 %v5581_v17 }
 0x313   : > { %5082 = vmatpush3.bf16.msra.mxu0 %v5582_v18  ;;  %5104 = vmatpush3.bf16.msra.mxu1 %v5583_v19 }
 0x314   : > { %5083 = vmatprep.subr.bf16.mxu0 %v5584_v20  ;;  %5105 = vmatprep.subr.bf16.mxu1 %v5585_v21 }
 0x317   : > { %5084 = vmatpush3.bf16.msra.mxu0 %v5586_v22  ;;  %5106 = vmatpush3.bf16.msra.mxu1 %v5587_v23 }
 0x318   : > { %5085 = vmatprep.subr.bf16.mxu0 %v5588_v24  ;;  %5107 = vmatprep.subr.bf16.mxu1 %v5589_v25 }
 0x31b   : > { %5086 = vmatpush3.bf16.msra.mxu0 %v5590_v26  ;;  %5108 = vmatpush3.bf16.msra.mxu1 %v5591_v27 }
 0x31c   : > { %5087 = vmatprep.subr.bf16.mxu0 %v5592_v28  ;;  %5109 = vmatprep.subr.bf16.mxu1 %v5593_v29 }
 0x31f   : > { %5088 = vmatpush3.bf16.msra.mxu0 %v5594_v30  ;;  %5110 = vmatpush3.bf16.msra.mxu1 %v5595_v31 }
 0x320   : > { %5089 = vmatprep.subr.bf16.mxu0 %v5596_v32  ;;  %5111 = vmatprep.subr.bf16.mxu1 %v5597_v33 }
 0x323   : > { %5090 = vmatpush3.bf16.msra.mxu0 %v5598_v34  ;;  %5112 = vmatpush3.bf16.msra.mxu1 %v5599_v35 }
 0x324   : > { %5091 = vmatprep.subr.bf16.mxu0 %v5600_v36  ;;  %5113 = vmatprep.subr.bf16.mxu1 %v5601_v37 }
 0x327   : > { %5092 = vmatpush3.bf16.msra.mxu0 %v5602_v38  ;;  %5114 = vmatpush3.bf16.msra.mxu1 %v5603_v39 }
 0x328   : > { %5121 = vmatprep.subr.bf16.mxu0 %v5604_v40  ;;  %5143 = vmatprep.subr.bf16.mxu1 %v5605_v41 }
 0x352   : > { %v1486_v42 = vpop.f32.mrf.mxu0  ;;  %v1527_v43 = vpop.f32.mrf.mxu1 }
 0x354   : > { %v1488_v44 = vpop.f32.mrf.mxu0  ;;  %v1529_v45 = vpop.f32.mrf.mxu1 }
 0x356   : > { %v1490_v46 = vpop.f32.mrf.mxu0  ;;  %v1531_v47 = vpop.f32.mrf.mxu1 }
 0x358   : > { %v1491_v48 = vpop.f32.mrf.mxu0  ;;  %v1532_v49 = vpop.f32.mrf.mxu1 }
 0x35a   : > { %v1568_v50 = vpop.f32.mrf.mxu0  ;;  %v1609_v51 = vpop.f32.mrf.mxu1 }
 0x35c   : > { %v1570_v52 = vpop.f32.mrf.mxu0  ;;  %v1611_v53 = vpop.f32.mrf.mxu1 }
 0x35e   : > { %v1572_v54 = vpop.f32.mrf.mxu0  ;;  %v1613_v55 = vpop.f32.mrf.mxu1 }
 0x360   : > { %v1573_v56 = vpop.f32.mrf.mxu0  ;;  %v1614_v57 = vpop.f32.mrf.mxu1 }
 0x362   : > { %v1733_v58 = vpop.f32.mrf.mxu0  ;;  %v1774_v60 = vpop.f32.mrf.mxu1 }
 0x363   : > { %v1734_v59 = vadd.f32 %v1733_v58, %v1486_v42  ;;  %v1775_v61 = vadd.f32 %v1774_v60, %v1527_v43 }
 0x364   : > { %v1735_v62 = vpop.f32.mrf.mxu0  ;;  %v1776_v0 = vpop.f32.mrf.mxu1 }
 0x365   : > { %v1736_v63 = vadd.f32 %v1735_v62, %v1488_v44  ;;  %v1777_v1 = vadd.f32 %v1776_v0, %v1529_v45 }
 0x366   : > { %v1737_v2 = vpop.f32.mrf.mxu0  ;;  %v1778_v3 = vpop.f32.mrf.mxu1 }
 0x368   : > { %v1738_v5 = vpop.f32.mrf.mxu0  ;;  %v1779_v6 = vpop.f32.mrf.mxu1 }
 0x36a   : > { %v1815_v7 = vpop.f32.mrf.mxu0  ;;  %v1856_v9 = vpop.f32.mrf.mxu1 }
 0x36b   : > { %v1816_v8 = vadd.f32 %v1815_v7, %v1568_v50  ;;  %v1857_v10 = vadd.f32 %v1856_v9, %v1609_v51 }
 0x36c   : > { %v1817_v11 = vpop.f32.mrf.mxu0  ;;  %v1858_v4 = vpop.f32.mrf.mxu1 }
 0x36d   : > { %v1818_v12 = vadd.f32 %v1817_v11, %v1570_v52  ;;  %v1859_v13 = vadd.f32 %v1858_v4, %v1611_v53 }
 0x36e   : > { %v1819_v14 = vpop.f32.mrf.mxu0  ;;  %v1860_v15 = vpop.f32.mrf.mxu1 }
 0x370   : > { %v1820_v16 = vpop.f32.mrf.mxu0  ;;  %v1861_v17 = vpop.f32.mrf.mxu1 }
 0x372   : > { %v1998_v18 = vpop.f32.mrf.mxu0  ;;  %v2039_v20 = vpop.f32.mrf.mxu1 }
 0x373   : > { %v6892_v19 = vadd.f32 %v1998_v18, %v1734_v59  ;;  %v6894_v21 = vadd.f32 %v2039_v20, %v1775_v61 }
 0x374   : > { %v2000_v22 = vpop.f32.mrf.mxu0  ;;  %v2041_v24 = vpop.f32.mrf.mxu1 }
 0x375   : > { %v6896_v23 = vadd.f32 %v2000_v22, %v1736_v63  ;;  %v6898_v25 = vadd.f32 %v2041_v24, %v1777_v1 }
 0x376   : > { %v2002_v26 = vpop.f32.mrf.mxu0  ;;  %v2043_v27 = vpop.f32.mrf.mxu1 }
 0x378   : > { %v2003_v28 = vpop.f32.mrf.mxu0  ;;  %v2044_v29 = vpop.f32.mrf.mxu1 }
 0x37a   : > { %v2080_v30 = vpop.f32.mrf.mxu0  ;;  %v2121_v32 = vpop.f32.mrf.mxu1 }
 0x37b   : > { %v2132_v31 = vadd.f32 %v2080_v30, %v1816_v8  ;;  %v2134_v33 = vadd.f32 %v2121_v32, %v1857_v10 }
 0x37c   : > { %v2082_v34 = vpop.f32.mrf.mxu0  ;;  %v2123_v36 = vpop.f32.mrf.mxu1 }
 0x37d   : > { %v6900_v35 = vadd.f32 %v2082_v34, %v1818_v12  ;;  %v6902_v37 = vadd.f32 %v2123_v36, %v1859_v13 }
 0x37e   : > { %v2084_v38 = vpop.f32.mrf.mxu0  ;;  %v2125_v39 = vpop.f32.mrf.mxu1 }
 0x380   : > { %v2085_v40 = vpop.f32.mrf.mxu0  ;;  %v2126_v41 = vpop.f32.mrf.mxu1 }
 0x381   : > { %v3503_v41 = vlaneseq }
 0x382   : > { %v6904_v42 = vpop.f32.mrf.mxu0  ;;  %v6906_v43 = vpop.f32.mrf.mxu1 }
 0x384   : > { %v6908_v44 = vpop.f32.mrf.mxu0  ;;  %v6910_v45 = vpop.f32.mrf.mxu1 }
 0x386   : > { %v2275_v46 = vpop.f32.mrf.mxu0  ;;  %v2316_v47 = vpop.f32.mrf.mxu1 }
 0x388   : > { %v2276_v48 = vpop.f32.mrf.mxu0  ;;  %v2317_v49 = vpop.f32.mrf.mxu1 }
 0x38a   : > { %v2353_v50 = vpop.f32.mrf.mxu0  ;;  %v2394_v52 = vpop.f32.mrf.mxu1 }
 0x38b   : > { %v2405_v51 = vadd.f32 %v2353_v50, %v2132_v31  ;;  %v2407_v53 = vadd.f32 %v2394_v52, %v2134_v33  ;;  %v6934_v50 = vshrl.u32 %v3503_v41, 7 }
 0x38c   : > { %v6912_v54 = vpop.f32.mrf.mxu0  ;;  %v6914_v55 = vpop.f32.mrf.mxu1 }
 0x38e   : > { %v2357_v56 = vpop.f32.mrf.mxu0  ;;  %v2398_v57 = vpop.f32.mrf.mxu1 }
 0x38f   : > { %v2402_v57 = vadd.f32 %v6908_v44, %v6896_v23 }
 0x390   : > { %v2358_v58 = vpop.f32.mrf.mxu0  ;;  %v2399_v59 = vpop.f32.mrf.mxu1 }
 0x392   : > { %v2544_v60 = vpop.f32.mrf.mxu0  ;;  %v2585_v61 = vpop.f32.mrf.mxu1 }
 0x394   : > { %v2546_v62 = vpop.f32.mrf.mxu0  ;;  %v2587_v63 = vpop.f32.mrf.mxu1 }
 0x396   : > { %v2548_v0 = vpop.f32.mrf.mxu0  ;;  %v2589_v1 = vpop.f32.mrf.mxu1 }
 0x397   : > { %v2404_v0 = vadd.f32 %v6910_v45, %v6898_v25 }
 0x398   : > { %v2549_v2 = vpop.f32.mrf.mxu0  ;;  %v2590_v3 = vpop.f32.mrf.mxu1 }
 0x399   : > { %v3505_v3 = vsub.s32 0, %v6934_v50  ;;  %v2677_v23 = vadd.f32 %v2587_v63, %v2404_v0 }
 0x39a   : > { %v2626_v5 = vpop.f32.mrf.mxu0  ;;  %v2667_v7 = vpop.f32.mrf.mxu1 }
 0x39b   : > { %v6916_v6 = vadd.f32 %v2626_v5, %v2405_v51  ;;  %v6918_v8 = vadd.f32 %v2667_v7, %v2407_v53  ;;  %v2401_v51 = vadd.f32 %v6904_v42, %v6892_v19  ;;  %v2403_v53 = vadd.f32 %v6906_v43, %v6894_v21  ;;  %v6950_v7 = vld [vmem:[%s6417_s12] sm:$0xff] }
 0x39c   : > { %v6920_v9 = vpop.f32.mrf.mxu0  ;;  %v6922_v10 = vpop.f32.mrf.mxu1  ;;  %v2675_v19 = vadd.f32 %v2546_v62, %v2402_v57  ;;  %v3513_v21 = vsub.s32 2, %v6934_v50  ;;  %v3509_v43 = vsub.s32 1, %v6934_v50  ;;  %v3506_v62 = vrot.slane %v6950_v7, %v3505_v3  ;;  %v5606_v57 = vld [vmem:[%s6419_s5 + $0x138] sm:$0xff]   ;;  %v5608_v3 = vld [vmem:[%s6419_s5 + $0x170] sm:$0xff]  }
 0x39d   : > { %v2674_v58 = vadd.f32 %v2544_v60, %v2401_v51  ;;  %v2676_v1 = vadd.f32 %v2585_v61, %v2403_v53  ;;  %v3533_v51 = vsub.s32 7, %v6934_v50 }
 0x39e   : > { %v2630_v11 = vpop.f32.mrf.mxu0  ;;  %v2671_v12 = vpop.f32.mrf.mxu1 }
 0x39f   : > { %v3517_v11 = vsub.s32 3, %v6934_v50 }
 0x3a0   : > { %v2631_v4 = vpop.f32.mrf.mxu0  ;;  %v2672_v13 = vpop.f32.mrf.mxu1 }
 0x3a2   : > { %v2817_v14 = vpop.f32.mrf.mxu0  ;;  %v2858_v15 = vpop.f32.mrf.mxu1 }
 0x3a3   : > { %v2947_v42 = vadd.f32 %v2817_v14, %v2674_v58  ;;  %v2949_v44 = vadd.f32 %v2858_v15, %v2676_v1 }
 0x3a4   : > { %v2819_v16 = vpop.f32.mrf.mxu0  ;;  %v2860_v17 = vpop.f32.mrf.mxu1 }
 0x3a5   : > { %v2948_v12 = vadd.f32 %v2819_v16, %v2675_v19  ;;  %v2950_v61 = vadd.f32 %v2860_v17, %v2677_v23  ;;  %v2406_v16 = vadd.f32 %v6912_v54, %v6900_v35 }
 0x3a6   : > { %v2821_v18 = vpop.f32.mrf.mxu0  ;;  %v2862_v20 = vpop.f32.mrf.mxu1 }
 0x3a8   : > { %v2822_v22 = vpop.f32.mrf.mxu0  ;;  %v2863_v24 = vpop.f32.mrf.mxu1 }
 0x3a9   : > { %v3514_v22 = vrot.slane %v6950_v7, %v3513_v21  ;;  %v3510_v24 = vrot.slane %v6950_v7, %v3509_v43  ;;  %v3534_v43 = vrot.slane %v6950_v7, %v3533_v51 }
 0x3aa   : > { %v6924_v26 = vpop.f32.mrf.mxu0  ;;  %v6926_v27 = vpop.f32.mrf.mxu1 }
 0x3ac   : > { %v6928_v28 = vpop.f32.mrf.mxu0  ;;  %v6930_v29 = vpop.f32.mrf.mxu1 }
 0x3ae   : > { %v2903_v30 = vpop.f32.mrf.mxu0  ;;  %v2944_v31 = vpop.f32.mrf.mxu1 }
 0x3af   : > { %v3518_v31 = vrot.slane %v6950_v7, %v3517_v11  ;;  %v5611_v11 = vld [vmem:[%s6419_s5 + $0x1b0] sm:$0xff]  }
 0x3b0   : > { %v2904_v32 = vpop.f32.mrf.mxu0  ;;  %v2945_v33 = vpop.f32.mrf.mxu1 }
 0x3b1   : > { %v2408_v33 = vadd.f32 %v6914_v55, %v6902_v37 }
 0x3b2   : > { %v3090_v34 = vpop.f32.mrf.mxu0  ;;  %v3131_v36 = vpop.f32.mrf.mxu1 }
 0x3b3   : > { %v3220_v25 = vadd.f32 %v3090_v34, %v2947_v42  ;;  %v3222_v4 = vadd.f32 %v3131_v36, %v2949_v44  ;;  %v2681_v35 = vadd.f32 %v6922_v10, %v2408_v33  ;;  %v5624_v33 = vld [vmem:[%s6419_s5 + $0x150] sm:$0xff]  }
 0x3b4   : > { %v3092_v38 = vpop.f32.mrf.mxu0  ;;  %v3133_v39 = vpop.f32.mrf.mxu1 }
 0x3b5   : > { %v3221_v14 = vadd.f32 %v3092_v38, %v2948_v12  ;;  %v3223_v63 = vadd.f32 %v3133_v39, %v2950_v61  ;;  %v5612_v12 = vld [vmem:[%s6419_s5 + $0x168] sm:$0xff]  }
 0x3b6   : > { %v3094_v40 = vpop.f32.mrf.mxu0  ;;  %v3135_v46 = vpop.f32.mrf.mxu1 }
 0x3b7   : > { %v2679_v40 = vadd.f32 %v6920_v9, %v2406_v16  ;;  %v2954_v9 = vadd.f32 %v6930_v29, %v2681_v35  ;;  %v5621_v16 = vld [vmem:[%s6419_s5 + $0x1d8] sm:$0xff]   ;;  %v5629_v35 = vld [vmem:[%s6419_s5 + $0x1c8] sm:$0xff]  }
 0x3b8   : > { %v3095_v47 = vpop.f32.mrf.mxu0  ;;  %v3136_v48 = vpop.f32.mrf.mxu1 }
 0x3b9   : > { %v3525_v47 = vsub.s32 5, %v6934_v50  ;;  %v2952_v37 = vadd.f32 %v6928_v28, %v2679_v40  ;;  %v3521_v40 = vsub.s32 4, %v6934_v50 }
 0x3ba   : > { %v6932_v49 = vpop.f32.mrf.mxu0  ;;  %v6938_v52 = vpop.f32.mrf.mxu1 }
 0x3bb   : > { %v3526_v28 = vrot.slane %v6950_v7, %v3525_v47  ;;  %v3529_v47 = vsub.s32 6, %v6934_v50  ;;  %v3522_v51 = vrot.slane %v6950_v7, %v3521_v40 }
 0x3bc   : > { %v3174_v56 = vpop.f32.mrf.mxu0  ;;  %v6944_v59 = vpop.f32.mrf.mxu1 }
 0x3bd   : > { %v3225_v10 = vadd.f32 %v3174_v56, %v2952_v37  ;;  %v3227_v21 = vadd.f32 %v6944_v59, %v2954_v9  ;;  %v5610_v56 = vld [vmem:[%s6419_s5 + $0x130] sm:$0xff]   ;;  %v3530_v37 = vrot.slane %v6950_v7, %v3529_v47 }
 0x3be   : > { %v3176_v2 = vpop.f32.mrf.mxu0  ;;  %v3217_v5 = vpop.f32.mrf.mxu1 }
 0x3bf   : > { %v5607_v2 = vld [vmem:[%s6419_s5 + $0x1b8] sm:$0xff]   ;;  %v5609_v5 = vld [vmem:[%s6419_s5 + $0x1f0] sm:$0xff]  }
 0x3c0   : > { %v3177_v60 = vpop.f32.mrf.mxu0  ;;  %v3218_v45 = vpop.f32.mrf.mxu1 }
 0x3c1   : > { %v5613_v45 = vld [vmem:[%s6419_s5 + $0x1e8] sm:$0xff]  }
 0x3c2   : > { %v3363_v13 = vpop.f32.mrf.mxu0  ;;  %v3404_v20 = vpop.f32.mrf.mxu1 }
 0x3c3   : > { %v3493_v18 = vadd.f32 %v3363_v13, %v3220_v25  ;;  %v3495_v15 = vadd.f32 %v3404_v20, %v3222_v4 }
 0x3c4   : > { %v3365_v30 = vpop.f32.mrf.mxu0  ;;  %v3406_v32 = vpop.f32.mrf.mxu1 }
 0x3c5   : > { %v3494_v17 = vadd.f32 %v3365_v30, %v3221_v14  ;;  %v3543_v34 = vadd.f32 %v3506_v62, %v3493_v18  ;;  %v3496_v36 = vadd.f32 %v3406_v32, %v3223_v63  ;;  %v3545_v41 = vadd.f32 %v3514_v22, %v3495_v15  ;;  %v5614_v14 = vld [vmem:[%s6419_s5 + $0x128] sm:$0xff]   ;;  %v5617_v63 = vld [vmem:[%s6419_s5 + $0x1e0] sm:$0xff]   ;;  %v5623_v32 = vld [vmem:[%s6419_s5 + $0x198] sm:$0xff]  }
 0x3c6   : > { %v3367_v38 = vpop.f32.mrf.mxu0  ;;  %v3408_v46 = vpop.f32.mrf.mxu1  ;;  %v5615_v22 = vld [vmem:[%s6419_s5 + $0x1a8] sm:$0xff]   ;;  %v5618_v15 = vld [vmem:[%s6419_s5 + $0x120] sm:$0xff]  }
 0x3c7   : > { %v3544_v39 = vadd.f32 %v3510_v24, %v3494_v17  ;;  %v3546_v54 = vadd.f32 %v3518_v31, %v3496_v36  ;;  %v3552_v58 = vpack.c.bf16 %v3543_v34, %v3543_v34  ;;  %v3554_v19 = vpack.c.bf16 %v3545_v41, %v3545_v41  ;;  %v5616_v24 = vld [vmem:[%s6419_s5 + $0x160] sm:$0xff]   ;;  %v5620_v31 = vld [vmem:[%s6419_s5 + $0x158] sm:$0xff]   ;;  %v5625_v34 = vld [vmem:[%s6419_s5 + $0x1d0] sm:$0xff]  }
 0x3c8   : > { %v3368_v48 = vpop.f32.mrf.mxu0  ;;  %v3409_v53 = vpop.f32.mrf.mxu1  ;;  %v5619_v30 = vld [vmem:[%s6419_s5 + $0x1a0] sm:$0xff]   ;;  %v5622_v17 = vld [vmem:[%s6419_s5 + $0x118] sm:$0xff]   ;;  %v5626_v36 = vld [vmem:[%s6419_s5 + $0x110] sm:$0xff]   ;;  %v2951_v38 = vadd.f32 %v6924_v26, %v6916_v6  ;;  %v2953_v46 = vadd.f32 %v6926_v27, %v6918_v8 }
 0x3c9   : > { %v3553_v55 = vpack.c.bf16 %v3544_v39, %v3544_v39  ;;  %v3555_v0 = vpack.c.bf16 %v3546_v54, %v3546_v54  ;;  %v5627_v41 = vld [vmem:[%s6419_s5 + $0x190] sm:$0xff]   ;;  %v5628_v39 = vld [vmem:[%s6419_s5 + $0x148] sm:$0xff]   ;;  %v5632_v27 = vld [vmem:[%s6419_s5 + $0x140] sm:$0xff]  }
 0x3ca   : > { %v6970_v1 = vpop.f32.mrf.mxu0  ;;  %v6974_v42 = vpop.f32.mrf.mxu1  ;;  %v3224_v54 = vadd.f32 %v6932_v49, %v2951_v38  ;;  %v3226_v6 = vadd.f32 %v6938_v52, %v2953_v46  ;;  %v5630_v26 = vld [vmem:[%s6419_s5 + $0x108] sm:$0xff]   ;;  %v5634_v49 = vld [vmem:[%s6419_s5 + $0x100] sm:$0xff]  }
 0x3cb   : > { %4104 = vmatprep.mubr.bf16.mxu0 %v3553_v55  ;;  %4144 = vmatprep.mubr.bf16.mxu1 %v3555_v0  ;;  %v5631_v8 = vld [vmem:[%s6419_s5 + $0x188] sm:$0xff]   ;;  %v5633_v55 = vld [vmem:[%s6419_s5 + $0x1c0] sm:$0xff]  }
 0x3cc   : > { %v3447_v29 = vpop.f32.mrf.mxu0  ;;  %4105 = vmatmul.mubr.bf16.vlgmr.msra.gmra.mxu0 %v3552_v58  ;;  %v3488_v44 = vpop.f32.mrf.mxu1  ;;  %4145 = vmatmul.mubr.bf16.vlgmr.msra.gmra.mxu1 %v3554_v19  ;;  %v3497_v48 = vadd.f32 %v6970_v1, %v3224_v54  ;;  %v3499_v50 = vadd.f32 %v6974_v42, %v3226_v6  ;;  %v5635_v53 = vld [vmem:[%s6419_s5 + $0x180] sm:$0xff]  }
 0x3cd   : > { %v3498_v23 = vadd.f32 %v3447_v29, %v3225_v10  ;;  %5122 = vmatpush3.bf16.msra.mxu0 %v5606_v57  ;;  %v3500_v60 = vadd.f32 %v3488_v44, %v3227_v21  ;;  %5144 = vmatpush3.bf16.msra.mxu1 %v5607_v2 }
 0x3ce   : > { %5123 = vmatprep.subr.bf16.mxu0 %v5608_v3  ;;  %v3449_v59 = vpop.f32.mrf.mxu0  ;;  %5145 = vmatprep.subr.bf16.mxu1 %v5609_v5  ;;  %v3490_v61 = vpop.f32.mrf.mxu1  ;;  %v3547_v52 = vadd.f32 %v3522_v51, %v3497_v48  ;;  %v3549_v57 = vadd.f32 %v3530_v37, %v3499_v50 }
 0x3cf   : > { %v3548_v25 = vadd.f32 %v3526_v28, %v3498_v23  ;;  %v3550_v4 = vadd.f32 %v3534_v43, %v3500_v60 }
 0x3d0   : > { %v3450_v13 = vpop.f32.mrf.mxu0  ;;  %v3491_v18 = vpop.f32.mrf.mxu1  ;;  %v3556_v9 = vpack.c.bf16 %v3547_v52, %v3547_v52  ;;  %v3558_v58 = vpack.c.bf16 %v3549_v57, %v3549_v57 }
 0x3d1   : > { %v3557_v62 = vpack.c.bf16 %v3548_v25, %v3548_v25  ;;  %5124 = vmatpush3.bf16.msra.mxu0 %v5610_v56  ;;  %v3559_v20 = vpack.c.bf16 %v3550_v4, %v3550_v4  ;;  %5146 = vmatpush3.bf16.msra.mxu1 %v5611_v11  ;;  %v3551_v25 = vld [vmem:[#allocation3] sm:$0xff] }
 0x3d2   : > { %5125 = vmatprep.subr.bf16.mxu0 %v5612_v12  ;;  %5147 = vmatprep.subr.bf16.mxu1 %v5613_v45 }
 0x3d3   : > { %4184 = vmatprep.mubr.bf16.mxu0 %v3557_v62  ;;  %4224 = vmatprep.mubr.bf16.mxu1 %v3559_v20 }
 0x3d5   : > { %5126 = vmatpush3.bf16.msra.mxu0 %v5614_v14  ;;  %5148 = vmatpush3.bf16.msra.mxu1 %v5615_v22 }
 0x3d6   : > { %5127 = vmatprep.subr.bf16.mxu0 %v5616_v24  ;;  %5149 = vmatprep.subr.bf16.mxu1 %v5617_v63 }
 0x3d9   : > { %5128 = vmatpush3.bf16.msra.mxu0 %v5618_v15  ;;  %5150 = vmatpush3.bf16.msra.mxu1 %v5619_v30 }
 0x3da   : > { %5129 = vmatprep.subr.bf16.mxu0 %v5620_v31  ;;  %5151 = vmatprep.subr.bf16.mxu1 %v5621_v16 }
 0x3dd   : > { %5130 = vmatpush3.bf16.msra.mxu0 %v5622_v17  ;;  %5152 = vmatpush3.bf16.msra.mxu1 %v5623_v32 }
 0x3de   : > { %5131 = vmatprep.subr.bf16.mxu0 %v5624_v33  ;;  %5153 = vmatprep.subr.bf16.mxu1 %v5625_v34 }
 0x3e1   : > { %5132 = vmatpush3.bf16.msra.mxu0 %v5626_v36  ;;  %5154 = vmatpush3.bf16.msra.mxu1 %v5627_v41 }
 0x3e2   : > { %5133 = vmatprep.subr.bf16.mxu0 %v5628_v39  ;;  %5155 = vmatprep.subr.bf16.mxu1 %v5629_v35 }
 0x3e5   : > { %5134 = vmatpush3.bf16.msra.mxu0 %v5630_v26  ;;  %5156 = vmatpush3.bf16.msra.mxu1 %v5631_v8 }
 0x3e6   : > { %5135 = vmatprep.subr.bf16.mxu0 %v5632_v27  ;;  %5157 = vmatprep.subr.bf16.mxu1 %v5633_v55 }
 0x3e9   : > { %5136 = vmatpush3.bf16.msra.mxu0 %v5634_v49  ;;  %5158 = vmatpush3.bf16.msra.mxu1 %v5635_v53 }
 0x3ec   : > { %4185 = vmatmul.mubr.bf16.vlgmr.msra.gmra.mxu0 %v3556_v9  ;;  %4225 = vmatmul.mubr.bf16.vlgmr.msra.gmra.mxu1 %v3558_v58 }
 0x48c   : > { %v5093_v0 = vpop.f32.mrf.mxu0  ;;  %v5115_v1 = vpop.f32.mrf.mxu1 }
 0x48e   : > { %v5094_v2 = vpop.f32.mrf.mxu0  ;;  %v5116_v7 = vpop.f32.mrf.mxu1 }
 0x48f   : > { %v5095_v28 = vadd.f32 %v5094_v2, %v5093_v0  ;;  %v5117_v5 = vadd.f32 %v5116_v7, %v5115_v1 }
 0x490   : > { %v5096_v3 = vpop.f32.mrf.mxu0  ;;  %v5118_v10 = vpop.f32.mrf.mxu1 }
 0x491   : > { %v4147_v23 = vadd.f32 %v5117_v5, %v5095_v28 }
 0x492   : > { %v5097_v19 = vpop.f32.mrf.mxu0  ;;  %v5119_v42 = vpop.f32.mrf.mxu1 }
 0x4ac   : > { %v5137_v21 = vpop.f32.mrf.mxu0  ;;  %v5159_v29 = vpop.f32.mrf.mxu1 }
 0x4ae   : > { %v5138_v43 = vpop.f32.mrf.mxu0  ;;  %v5160_v56 = vpop.f32.mrf.mxu1 }
 0x4af   : > { %v5139_v44 = vadd.f32 %v5138_v43, %v5137_v21  ;;  %v5161_v12 = vadd.f32 %v5160_v56, %v5159_v29 }
 0x4b0   : > { %v5140_v60 = vpop.f32.mrf.mxu0  ;;  %v5162_v59 = vpop.f32.mrf.mxu1 }
 0x4b1   : > { %v4187_v11 = vadd.f32 %v5139_v44, %v4147_v23 }
 0x4b2   : > { %v5141_v45 = vpop.f32.mrf.mxu0  ;;  %v5163_v4 = vpop.f32.mrf.mxu1 }
 0x4b3   : > { %v4227_v61 = vadd.f32 %v5161_v12, %v4187_v11  ;;  %4237 = sbr.rel (%p4982_p12) target bundleno = 1722 (0x6ba), region = 132 }
 0x4b5   : > { %v4232_v13 = vadd.f32 %v4227_v61, %v3551_v25 }
 0x4b7   : > { %4233 = vst [vmem:[#allocation3] sm:$0xff] %v4232_v13 }
 0x4b8   : > { %v5636_v62 = vld [vmem:[#allocation16 + $0x38] sm:$0xff]   ;;  %v6086_v14 = vmov 0.0   ;;  %v5637_v18 = vld [vmem:[#allocation16 + $0x30] sm:$0xff]   ;;  %vm6087_vm12 = vmmov 0   ;;  %v5638_v20 = vld [vmem:[#allocation16 + $0x28] sm:$0xff]   ;;  %vm4525_vm13 = vcmask 130048  }
 0x4b9   : > { %5343 = vmatprep.subr.bf16.mxu0 %v6086_v14  ;;  %5363 = vmatprep.subr.mxu1 %v6086_v14  ;;  %v4983_v24 = vld [vmem:[#allocation12] ss:$0 sm:$0xff]  ;;  %v5639_v15 = vld [vmem:[#allocation16 + $0x20] sm:$0xff]   ;;  %v5641_v33 = vld [vmem:[#allocation16 + $0x10] sm:$0xff]  }
 0x4ba   : > { %5344 = vmatpush3.bf16.msra.mxu0 %v5636_v62  ;;  %5359 = vmatprep.mubr.msk.bf16.mxu0 %vm6087_vm12, %v6086_v14  ;;  %v5640_v16 = vld [vmem:[#allocation16 + $0x18] sm:$0xff]   ;;  %v5642_v38 = vld [vmem:[#allocation16 + $0x8] sm:$0xff]   ;;  %v5643_v39 = vld [vmem:[#allocation16] sm:$0xff]  }
 0x4bb   : > { %5345 = vmatprep.subr.bf16.mxu0 %v6086_v14  ;;  %5395 = vmatprep.mubr.msk.f32.mxu1 %vm6087_vm12, %v6086_v14  ;;  %v4984_v50 = vld [vmem:[#allocation13] ss:$0 sm:$0xff]  ;;  %v4985_v55 = vld [vmem:[#allocation15] ss:$0 sm:$0xff]  ;;  %v4447_v9 = vld [vmem:[%s7197_s2 + $0x78] sm:$0xff] }
 0x4bc   : > { %5364 = vmatpush3.msra.mxu1 %v4447_v9  ;;  %v4446_v58 = vld [vmem:[%s7197_s2 + $0x70] sm:$0xff]  ;;  %v4445_v0 = vld [vmem:[%s7197_s2 + $0x68] sm:$0xff]  ;;  %v4444_v1 = vld [vmem:[%s7197_s2 + $0x60] sm:$0xff] }
 0x4bd   : > { %5365 = vmatprep.subr.mxu1 %v6086_v14  ;;  %v4443_v2 = vld [vmem:[%s7197_s2 + $0x58] sm:$0xff]  ;;  %v4442_v7 = vld [vmem:[%s7197_s2 + $0x50] sm:$0xff]  ;;  %v4441_v3 = vld [vmem:[%s7197_s2 + $0x48] sm:$0xff] }
 0x4be   : > { %5346 = vmatpush3.bf16.msra.mxu0 %v5637_v18  ;;  %v4238_v22 = vld [vmem:[#allocation3] sm:$0xff]  ;;  %5366 = vmatpush3.msra.mxu1 %v4446_v58  ;;  %v4439_v19 = vld [vmem:[%s7197_s2 + $0x38] sm:$0xff]  ;;  %v4438_v42 = vld [vmem:[%s7197_s2 + $0x30] sm:$0xff] }
 0x4bf   : > { %5347 = vmatprep.subr.bf16.mxu0 %v6086_v14  ;;  %v4246_v63 = vadd.f32 %v4983_v24, %v4238_v22  ;;  %5367 = vmatprep.subr.mxu1 %v6086_v14  ;;  %v4440_v10 = vld [vmem:[%s7197_s2 + $0x40] sm:$0xff]  ;;  %v4437_v28 = vld [vmem:[%s7197_s2 + $0x28] sm:$0xff]  ;;  %v4435_v21 = vld [vmem:[%s7197_s2 + $0x18] sm:$0xff] }
 0x4c0   : > { %5368 = vmatpush3.msra.mxu1 %v4445_v0  ;;  %v4436_v5 = vld [vmem:[%s7197_s2 + $0x20] sm:$0xff]  ;;  %v4434_v29 = vld [vmem:[%s7197_s2 + $0x10] sm:$0xff]  ;;  %v4433_v43 = vld [vmem:[%s7197_s2 + $0x8] sm:$0xff] }
 0x4c1   : > { %v4249_v30 = vrot.slane %v4246_v63, 4  ;;  %5369 = vmatprep.subr.mxu1 %v6086_v14  ;;  %v4432_v23 = vld [vmem:[%s7197_s2] sm:$0xff] }
 0x4c2   : > { %5348 = vmatpush3.bf16.msra.mxu0 %v5638_v20  ;;  %5370 = vmatpush3.msra.mxu1 %v4444_v1  ;;  %v4986_v44 = vld [vmem:[#allocation18] ss:$0 sm:$0xff] }
 0x4c3   : > { %5349 = vmatprep.subr.bf16.mxu0 %v6086_v14  ;;  %v4250_v31 = vadd.f32 %v4249_v30, %v4246_v63  ;;  %5371 = vmatprep.subr.mxu1 %v6086_v14 }
 0x4c4   : > { %5372 = vmatpush3.msra.mxu1 %v4443_v2 }
 0x4c5   : > { %v4251_v17 = vrot.slane %v4250_v31, 2  ;;  %5373 = vmatprep.subr.mxu1 %v6086_v14 }
 0x4c6   : > { %5350 = vmatpush3.bf16.msra.mxu0 %v5639_v15  ;;  %5374 = vmatpush3.msra.mxu1 %v4442_v7 }
 0x4c7   : > { %5351 = vmatprep.subr.bf16.mxu0 %v6086_v14  ;;  %v4252_v32 = vadd.f32 %v4251_v17, %v4250_v31  ;;  %5375 = vmatprep.subr.mxu1 %v6086_v14 }
 0x4c8   : > { %5376 = vmatpush3.msra.mxu1 %v4441_v3 }
 0x4c9   : > { %v4253_v34 = vrot.slane %v4252_v32, 1  ;;  %5377 = vmatprep.subr.mxu1 %v6086_v14 }
 0x4ca   : > { %5352 = vmatpush3.bf16.msra.mxu0 %v5640_v16  ;;  %5378 = vmatpush3.msra.mxu1 %v4440_v10 }
 0x4cb   : > { %5353 = vmatprep.subr.bf16.mxu0 %v6086_v14  ;;  %v4254_v36 = vadd.f32 %v4253_v34, %v4252_v32  ;;  %5379 = vmatprep.subr.mxu1 %v6086_v14 }
 0x4cc   : > { %5380 = vmatpush3.msra.mxu1 %v4439_v19 }
 0x4cd   : > { %v4256_v40 = vmul.f32 0.125, %v4254_v36  ;;  %5381 = vmatprep.subr.mxu1 %v6086_v14  ;;  %v4996_v36 = vld [vmem:[#allocation21] ss:$0 sm:$0xff] }
 0x4ce   : > { %5354 = vmatpush3.bf16.msra.mxu0 %v5641_v33  ;;  %5382 = vmatpush3.msra.mxu1 %v4438_v42  ;;  %v4995_v33 = vld [vmem:[#allocation19] ss:$0 sm:$0xff] }
 0x4cf   : > { %5355 = vmatprep.subr.bf16.mxu0 %v6086_v14  ;;  %v4257_v41 = vsub.f32 %v4246_v63, %v4256_v40  ;;  %5383 = vmatprep.subr.mxu1 %v6086_v14 }
 0x4d0   : > { %5384 = vmatpush3.msra.mxu1 %v4437_v28 }
 0x4d1   : > { %v4258_v46 = vmul.f32 %v4257_v41, %v4257_v41  ;;  %5385 = vmatprep.subr.mxu1 %v6086_v14 }
 0x4d2   : > { %5356 = vmatpush3.bf16.msra.mxu0 %v5642_v38  ;;  %5386 = vmatpush3.msra.mxu1 %v4436_v5 }
 0x4d3   : > { %5357 = vmatprep.subr.bf16.mxu0 %v6086_v14  ;;  %v4259_v47 = vrot.slane %v4258_v46, 4  ;;  %5387 = vmatprep.subr.mxu1 %v6086_v14 }
 0x4d4   : > { %5388 = vmatpush3.msra.mxu1 %v4435_v21 }
 0x4d5   : > { %v4260_v35 = vadd.f32 %v4259_v47, %v4258_v46  ;;  %5389 = vmatprep.subr.mxu1 %v6086_v14 }
 0x4d6   : > { %5358 = vmatpush3.bf16.msra.mxu0 %v5643_v39  ;;  %5390 = vmatpush3.msra.mxu1 %v4434_v29  ;;  %v4997_v39 = vld [vmem:[#allocation22] ss:$0 sm:$0xff] }
 0x4d7   : > { %v4261_v54 = vrot.slane %v4260_v35, 2  ;;  %5391 = vmatprep.subr.mxu1 %v6086_v14 }
 0x4d8   : > { %5392 = vmatpush3.msra.mxu1 %v4433_v43 }
 0x4d9   : > { %v4262_v6 = vadd.f32 %v4261_v54, %v4260_v35  ;;  %5393 = vmatprep.subr.mxu1 %v6086_v14 }
 0x4da   : > { %5394 = vmatpush3.msra.mxu1 %v4432_v23 }
 0x4db   : > { %v4263_v26 = vrot.slane %v4262_v6, 1 }
 0x4dd   : > { %v4264_v48 = vadd.f32 %v4263_v26, %v4262_v6 }
 0x4df   : > { %v4265_v51 = vmul.f32 0.125, %v4264_v48 }
 0x4e1   : > { %v4266_v8 = vadd.f32 1e-05, %v4265_v51 }
 0x4e3   : > { %5644 = vrsqrt.f32 %v4266_v8 }
 0x4f0   : > { %v5645_v27 = vpop.eup %5644 }
 0x4f1   : > { %v4268_v37 = vmul.f32 %v5645_v27, %v4257_v41 }
 0x4f3   : > { %v4275_v49 = vmul.f32 %v4984_v50, %v4268_v37 }
 0x4f5   : > { %v4282_v52 = vadd.f32 %v4985_v55, %v4275_v49 }
 0x4f7   : > { %v4283_v53 = vmax.f32 %v4282_v52, 0.0 }
 0x4f9   : > { %v4284_v57 = vpack.c.bf16 %v4283_v53, %v4283_v53 }
 0x4fb   : > { %5360 = vmatmul.mubr.bf16.vlgmr.msra.gmra.mxu0 %v4284_v57 }
 0x5bb   : > { %v4390_v56 = vpop.f32.mrf.mxu0 }
 0x5bc   : > { %v4391_v60 = vadd.f32 %v4986_v44, %v4390_v56 }
 0x5bd   : > { %v5361_v11 = vpop.f32.mrf.mxu0 }
 0x5be   : > { %v4398_v12 = vrot.slane %v4391_v60, 4 }
 0x5bf   : > { %v4393_v59 = vpop.f32.mrf.mxu0 }
 0x5c0   : > { %v4399_v25 = vadd.f32 %v4398_v12, %v4391_v60 }
 0x5c1   : > { %v5362_v45 = vpop.f32.mrf.mxu0 }
 0x5c2   : > { %v4400_v61 = vrot.slane %v4399_v25, 2 }
 0x5c4   : > { %v4401_v4 = vadd.f32 %v4400_v61, %v4399_v25 }
 0x5c6   : > { %v4402_v13 = vrot.slane %v4401_v4, 1 }
 0x5c8   : > { %v4403_v62 = vadd.f32 %v4402_v13, %v4401_v4 }
 0x5ca   : > { %v4404_v18 = vmul.f32 0.125, %v4403_v62 }
 0x5cc   : > { %v4405_v20 = vsub.f32 %v4391_v60, %v4404_v18 }
 0x5ce   : > { %v4406_v22 = vmul.f32 %v4405_v20, %v4405_v20 }
 0x5d0   : > { %v4407_v24 = vrot.slane %v4406_v22, 4 }
 0x5d2   : > { %v4408_v63 = vadd.f32 %v4407_v24, %v4406_v22 }
 0x5d4   : > { %v4409_v15 = vrot.slane %v4408_v63, 2 }
 0x5d6   : > { %v4410_v14 = vadd.f32 %v4409_v15, %v4408_v63 }
 0x5d8   : > { %v4411_v30 = vrot.slane %v4410_v14, 1 }
 0x5da   : > { %v4412_v31 = vadd.f32 %v4411_v30, %v4410_v14 }
 0x5dc   : > { %v4413_v16 = vmul.f32 0.125, %v4412_v31 }
 0x5de   : > { %v4414_v17 = vadd.f32 1e-05, %v4413_v16 }
 0x5e0   : > { %5646 = vrsqrt.f32 %v4414_v17 }
 0x5ed   : > { %v5647_v32 = vpop.eup %5646 }
 0x5ee   : > { %v4416_v34 = vmul.f32 %v5647_v32, %v4405_v20 }
 0x5f0   : > { %v4423_v38 = vmul.f32 %v4995_v33, %v4416_v34 }
 0x5f2   : > { %v4430_v40 = vadd.f32 %v4996_v36, %v4423_v38 }
 0x5f4   : > { %v4431_v41 = vmax.f32 %v4430_v40, 0.0 }
 0x5f6   : > { %5396 = vmatmul.mubr.f32.vlgmr.msra.gmra.mxu1 %v4431_v41 }
 0x6b6   : > { %v4521_v46 = vpop.f32.mrf.mxu1 }
 0x6b7   : > { %v4522_v47 = vadd.f32 %v4997_v39, %v4521_v46 }
 0x6b8   : > { %v5397_v35 = vpop.f32.mrf.mxu1 }
 0x6b9   : > { %4526 = vst.msk [vmem:[#allocation24] sm:$0xff] %vm4525_vm13, %v4522_v47 }
 0x6ba PF: > { %p5501_p13 = scmp.eq.s32.totalorder %s6185_s19, 3  ;;  %s6088_s16 = smov [#allocation24]  }
 0x6bb   : > { %s4534_s23 = sshll.u32 %s6088_s16, 4  ;;  %s4535_s23 = int_to_ptr.vmem [resolvable:$true] %s4534_s23 }
 0x6bc   : > { %s5966_s24 = scalar_lea.vmem %s4535_s23, 128  ;;  %p5973_p10 = scmp.lt.s32.totalorder %s4535_s23, %s4535_s23 }
 0x6bd   : > { %p5967_p0 = scmp.ne.s32.totalorder %s4535_s23, %s5966_s24  ;;  %p5974_p1 = scmp.lt.s32.totalorder %s5966_s24, %s5966_s24 }
 0x6bf   : > { %p5968_p5 = pnand %p5967_p0, %p5501_p13  ;;  %p5975_p3 = por %p5974_p1, %p5973_p10 }
 0x6c1   : > { %p5969_p8 = pneg %p5968_p5 }
 0x6c3   : > { %p5976_p2 = pnand %p5975_p3, %p5969_p8 }
 0x6c5   : > { %5979 = shalt.err (!%p5976_p2)
}
 0x6c6   : > { %s7198_s18 = sld [smem:[#allocation44_spill]] }
 0x6cc   : > { %5441 = dma.vmem_to_hbm [thread:$0]  (%p5501_p13), %s4535_s23, 128, %s7198_s18, [#allocation6]  }
 0x6cd   : > { %6039 = dma.done.wait (%p5501_p13), [#allocation6], 128  }
 0x6ce   : > { %6041 = vsyncadd (%p5501_p13), [#allocation6], 4294967168 }
 0x6cf PF: > { %s7199_s16 = sld [smem:[#allocation35_spill]]  ;;  %s7202_s29 = smov %s6048_s30 }
 0x6d0   : > { %s7200_s14 = sld [smem:[#allocation34_spill]] }
 0x6d1   : > { %s7201_s15 = sld [smem:[#allocation36_spill]] }
 0x6d5   : > { %p33_p9 = scmp.ge.s32.totalorder %s7199_s16, 6  }
 0x6d6   : > { %s7203_s30 = smov %s7200_s14 }
 0x6d7   :  { %35 = sbr.rel (!%p33_p9) target bundleno = 20 (0x14), region = 196 }
 0x6dc   :  { %4547 = vsyncpa [#allocation5], 1 }
 0x6dd   :  { %4549 = vsyncpa [#allocation5 + $0x1], 1 }
 0x6de   :  { %4550 = vsyncpa [#allocation8], 1 }
 0x6df   :  { %4552 = vsyncpa [#allocation8 + $0x1], 1 }
 0x6e0   :  { %4553 = vsyncpa [#allocation11], 1 }
 0x6e1   :  { %4555 = vsyncpa [#allocation11 + $0x1], 1 }
 0x6e2   :  { %4556 = vsyncpa [#allocation14], 1 }
 0x6e3   :  { %4557 = vsyncpa [#allocation17], 1 }
 0x6e4   :  { %4558 = vsyncpa [#allocation20], 1 }
 0x6e5   :  { %4559 = vsyncpa [#allocation23], 1 }
 0x6e6   :  { %4560 = vsyncpa [#allocation6], 1 }
 0x6e7   :  { %4562 = vsyncpa [#allocation6 + $0x1], 1 }

</bundles_post_ra>
